<compile_context>
chip_gen: v5e
topology: v5e:2x2
jax: 0.10.0
libtpu: 0.0.40
codegen_flags: <defaults>
</compile_context>

<pallas_src>
import jax
import jax.numpy as jnp
from jax import lax
from jax.experimental import pallas as pl
from jax.experimental.pallas import tpu as pltpu


# ---------------------------------------------------------------------------
# Generation-aware VMEM budgeting (v5e/v6e: 128 MiB physical, v7x: 64 MiB).
# ---------------------------------------------------------------------------
def _vmem_budget():
    cap = 128 * 1024 * 1024
    try:
        cap = int(pltpu.get_tpu_info().vmem_capacity_bytes)
    except Exception:
        pass
    vmem_limit = min(3 * cap // 4, 64 * 1024 * 1024)   # 48 MiB on v7x, 64 MiB on 128 MiB parts
    step_target = vmem_limit // 6                      # ~8 MiB double-buffered per-step budget
    return vmem_limit, step_target


def _pick_row_tile(h_lo, w_lo, batch, step_bytes_fn, target_bytes):
    """Largest row tile (in low-res rows) that keeps (tr*Wlo) sublane aligned, fits the
    per-step VMEM budget and leaves >= 4 grid steps for pipelining / megacore."""
    cands = [t for t in range(1, h_lo + 1)
             if h_lo % t == 0 and ((t * w_lo) % 8 == 0 or t == h_lo)]
    under = [t for t in cands if step_bytes_fn(t) <= target_bytes]
    if not under:
        under = [min(cands)]
    piped = [t for t in under if batch * (h_lo // t) >= 4]
    return max(piped) if piped else max(under)


# ---------------------------------------------------------------------------
# Kernel 1: fused "UpsamplingNearest2d(x2) -> 1x1 conv -> + skip" plus the W-direction
# split-pool partial sums.  The 1x1 conv commutes with nearest upsampling, so the channel
# matmul runs on the LOW-res pixels; the 2x2 replication happens in-kernel (W via a lane
# concat, H via a broadcast over an explicit phase dim), fused with the skip add.
#
# Views prepared by the wrapper (pure reshapes of contiguous NHWC memory):
#   x_lo  (B,Hlo,Wlo,Cin)      -> (B*Hlo*Wlo, Cin)            2D matmul lhs
#   skip  (B,2Hlo,2Wlo,Cout)   -> (B*Hlo, 2, Wlo, 2*Cout)     (h-phase, w-phase in lanes)
#   out   same grouped view as skip, stored bf16
#   wpool (B*Hlo, split, Cout) f32  -- per-low-res-row pool-block sums (4*conv + 4 skips)
# ---------------------------------------------------------------------------
def make_upconv_pool_kernel(split, emit_map):
    def kernel(x_ref, w_ref, b_ref, skip_ref, *out_refs):
        tr, _, w_lo, two_cout = skip_ref.shape
        cout = two_cout // 2
        ws = w_lo // split

        # 1x1 conv on low-res pixels: bf16 operands, f32 accumulation on the MXU.
        y = jnp.dot(x_ref[...].astype(jnp.bfloat16), w_ref[...],
                    preferred_element_type=jnp.float32)              # (tr*Wlo, Cout)
        y = y + b_ref[...]                                           # bias (f32)
        skip = skip_ref[...]                                         # (tr,2,Wlo,2C) f32

        if emit_map:
            out_ref = out_refs[0]
            # W-axis nearest x2 lives on the lane axis; H-axis nearest x2 is a broadcast
            # over the phase dim, fused with the skip add; stored in bf16.
            y_w = jnp.concatenate([y, y], axis=-1).reshape(tr, w_lo, two_cout)
            out_ref[...] = (y_w[:, None, :, :] + skip).astype(out_ref.dtype)

        # Fused split-pool partial sums (W direction), kept f32.  Each low-res pixel fans
        # out to 4 identical conv values + its 4 skip values.
        wpool_ref = out_refs[-1]
        skip_h = skip[:, 0] + skip[:, 1]                             # (tr, Wlo, 2C)
        pix = 4.0 * y.reshape(tr, w_lo, cout) + (skip_h[..., :cout] + skip_h[..., cout:])
        wpool_ref[...] = pix.reshape(tr, split, ws, cout).sum(axis=2)  # (tr, split, Cout)
    return kernel


def upconv_add_pool(x_lo, w_io, bias, skip, split, emit_map=True):
    """Returns (x_map or None, wpool):
         x_map (B, 2Hlo, 2Wlo, Cout) bf16  -- conv(up(x_lo)) + skip
         wpool (B, Hlo, split, Cout) f32   -- per-row W-block pixel sums of x_map
    """
    B, Hlo, Wlo, Cin = x_lo.shape
    Cout = w_io.shape[1]
    H, W = 2 * Hlo, 2 * Wlo
    assert skip.shape == (B, H, W, Cout)
    assert Hlo % split == 0 and Wlo % split == 0

    x_v = x_lo.reshape(B * Hlo * Wlo, Cin)                 # pure HBM views, no copies
    skip_v = skip.reshape(B * Hlo, 2, Wlo, 2 * Cout)
    w_bf = w_io.astype(jnp.bfloat16)
    b_v = bias.reshape(1, Cout).astype(jnp.float32)

    vmem_limit, step_target = _vmem_budget()
    x_bpe = jnp.dtype(x_lo.dtype).itemsize

    def step_bytes(t):
        var = (t * Wlo * Cin * x_bpe                               # x tile
               + t * 2 * Wlo * 2 * Cout * 4                        # skip tile (f32)
               + (t * 2 * Wlo * 2 * Cout * 2 if emit_map else 0)   # map tile (bf16)
               + t * split * Cout * 4)                             # wpool tile
        const = Cin * Cout * 2 + Cout * 4                          # weight + bias blocks
        return 2 * (var + const)                                   # double-buffered

    tr = _pick_row_tile(Hlo, Wlo, B, step_bytes, step_target)
    T = Hlo // tr
    grid = (B, T)

    map_struct = jax.ShapeDtypeStruct((B * Hlo, 2, Wlo, 2 * Cout), jnp.bfloat16)
    map_spec = pl.BlockSpec((tr, 2, Wlo, 2 * Cout), lambda b, t: (b * T + t, 0, 0, 0))
    wpool_struct = jax.ShapeDtypeStruct((B * Hlo, split, Cout), jnp.float32)
    wpool_spec = pl.BlockSpec((tr, split, Cout), lambda b, t: (b * T + t, 0, 0))
    if emit_map:
        out_shape, out_specs = (map_struct, wpool_struct), (map_spec, wpool_spec)
    else:
        out_shape, out_specs = wpool_struct, wpool_spec

    flops = 2 * B * Hlo * Wlo * Cin * Cout + 16 * B * Hlo * Wlo * Cout
    bytes_accessed = (B * Hlo * Wlo * Cin * x_bpe + Cin * Cout * 2 + Cout * 4
                      + B * H * W * Cout * 4
                      + (B * H * W * Cout * 2 if emit_map else 0)
                      + B * Hlo * split * Cout * 4)

    res = pl.pallas_call(
        make_upconv_pool_kernel(split, emit_map),
        out_shape=out_shape,
        grid=grid,
        in_specs=[
            pl.BlockSpec((tr * Wlo, Cin), lambda b, t: (b * T + t, 0)),
            pl.BlockSpec((Cin, Cout), lambda b, t: (0, 0)),
            pl.BlockSpec((1, Cout), lambda b, t: (0, 0)),
            pl.BlockSpec((tr, 2, Wlo, 2 * Cout), lambda b, t: (b * T + t, 0, 0, 0)),
        ],
        out_specs=out_specs,
        compiler_params=pltpu.CompilerParams(
            dimension_semantics=("parallel", "parallel"),
            vmem_limit_bytes=vmem_limit),
        cost_estimate=pl.CostEstimate(flops=flops, transcendentals=0,
                                      bytes_accessed=bytes_accessed),
    )(x_v, w_bf, b_v, skip_v)

    if emit_map:
        x_map, wpool = res
        return x_map.reshape(B, H, W, Cout), wpool.reshape(B, Hlo, split, Cout)
    return None, res.reshape(B, Hlo, split, Cout)


# ---------------------------------------------------------------------------
# Kernel 2: feat head -- finish the split x split pooling (H direction / global pool),
# one batched (M=B) matmul with the folded Linear+BN weight, then L2 normalisation.
# ---------------------------------------------------------------------------
def make_feat_head_kernel(split):
    def kernel(x_ref, w_ref, s_ref, out_ref):
        bt, nr, nc, C = x_ref.shape
        hs, ws = nr // split, nc // split
        x = x_ref[...].astype(jnp.float32)
        cols = []
        # (ih outer, iw inner, channel minor) matches torch.cat(dim=1) + .view(B, -1).
        for ih in range(split):
            for iw in range(split):
                blk = x[:, ih * hs:(ih + 1) * hs, iw * ws:(iw + 1) * ws, :]
                cols.append(jnp.sum(jnp.sum(blk, axis=1), axis=1))     # (bt, C)
        pooled = cols[0] if len(cols) == 1 else jnp.concatenate(cols, axis=-1)  # (bt, K)

        # Linear + folded BatchNorm1d + pooling average: w = W^T * bn_scale / npix,
        # s = bias * bn_scale + bn_shift.  bf16 operands, f32 MXU accumulation.
        y = jnp.dot(pooled.astype(jnp.bfloat16), w_ref[...],
                    preferred_element_type=jnp.float32)                # (bt, Fp)
        y = y + s_ref[...]
        # L2 normalisation (no epsilon, matching the reference); pad columns are exactly 0.
        nsq = jnp.sum(y * y, axis=-1, keepdims=True)
        out_ref[...] = y * lax.rsqrt(nsq)
    return kernel


def feat_head(x_sum, split, w_eff, shift):
    """x_sum: (B, nr, nc, C) raw map (split==1) or W-pooled partial sums.  Returns the
    (B, Fp) L2-normalised feature (Fp = F padded to a lane multiple)."""
    B, nr, nc, C = x_sum.shape
    K, Fp = w_eff.shape
    assert K == split * split * C and nr % split == 0 and nc % split == 0

    bt = B
    if B > 64:                                # batch-tile large batches (8-row aligned)
        for t in range(64, 0, -8):
            if B % t == 0:
                bt = t
                break
    grid = (B // bt,)

    vmem_limit, _ = _vmem_budget()
    out = pl.pallas_call(
        make_feat_head_kernel(split),
        out_shape=jax.ShapeDtypeStruct((B, Fp), jnp.float32),
        grid=grid,
        in_specs=[
            pl.BlockSpec((bt, nr, nc, C), lambda i: (i, 0, 0, 0)),
            pl.BlockSpec((K, Fp), lambda i: (0, 0)),
            pl.BlockSpec((1, Fp), lambda i: (0, 0)),
        ],
        out_specs=pl.BlockSpec((bt, Fp), lambda i: (i, 0)),
        compiler_params=pltpu.CompilerParams(
            dimension_semantics=("parallel",),
            vmem_limit_bytes=vmem_limit),
        cost_estimate=pl.CostEstimate(
            flops=2 * B * (nr * nc * C + K * Fp),
            transcendentals=B,
            bytes_accessed=B * nr * nc * C * jnp.dtype(x_sum.dtype).itemsize
                           + K * Fp * 2 + Fp * 4 + B * Fp * 4),
    )(x_sum, w_eff, shift)
    return out


def _fold_feat(w_pt, b, gamma, beta, mean, var, eps, npix):
    """Fold Linear bias + eval-mode BatchNorm1d + the pooling average into one weight/shift.
    w_pt is in PyTorch Linear layout (F, K).  Returns (w_eff (K,Fp) bf16, shift (1,Fp) f32, F)."""
    F, _ = w_pt.shape
    s = gamma * lax.rsqrt(var + eps)
    w_eff = w_pt.T * (s[None, :] / float(npix))
    shift = b * s + (beta - mean * s)
    Fp = ((F + 127) // 128) * 128
    pad = Fp - F
    if pad:
        w_eff = jnp.pad(w_eff, ((0, 0), (0, pad)))
        shift = jnp.pad(shift, (0, pad))
    return w_eff.astype(jnp.bfloat16), shift.reshape(1, Fp).astype(jnp.float32), F


# ---------------------------------------------------------------------------
# ResFpnNet forward (FPN head).  Inputs are the three backbone feature maps in NHWC
# (the NCHW->NHWC layout change is assumed to happen once at the backbone boundary).
# ---------------------------------------------------------------------------
def resfpn_forward(x4, x3, x2, p):
    _, H4, W4, _ = x4.shape
    _, H3, W3, _ = x3.shape
    _, H2, W2, _ = x2.shape
    eps = 1e-5

    # layer4 branch: global avg pool -> feat4 -> feat4_bn -> L2 normalise
    w4, s4, F = _fold_feat(p["feat4_w"], p["feat4_b"], p["feat4_bn_g"], p["feat4_bn_b"],
                           p["feat4_bn_m"], p["feat4_bn_v"], eps, H4 * W4)
    layer4branch = feat_head(x4, 1, w4, s4)[:, :F]

    # x = conv43(Upsample43(x4)) + xlayer3, fused with the 2x2 split-pool partial sums.
    x, wpool3 = upconv_add_pool(x4, p["conv43_w"], p["conv43_b"], x3, split=2, emit_map=True)
    w3, s3, _ = _fold_feat(p["feat3_w"], p["feat3_b"], p["feat3_bn_g"], p["feat3_bn_b"],
                           p["feat3_bn_m"], p["feat3_bn_v"], eps, (H3 // 2) * (W3 // 2))
    layer3branch = feat_head(wpool3, 2, w3, s3)[:, :F]

    # x = conv32(Upsample32(x)) + xlayer2; this map is never read again, so only the
    # 4x4 pool sums are materialised (emit_map=False).
    _, wpool2 = upconv_add_pool(x, p["conv32_w"], p["conv32_b"], x2, split=4, emit_map=False)
    w2, s2, _ = _fold_feat(p["feat2_w"], p["feat2_b"], p["feat2_bn_g"], p["feat2_bn_b"],
                           p["feat2_bn_m"], p["feat2_bn_v"], eps, (H2 // 4) * (W2 // 4))
    layer2branch = feat_head(wpool2, 4, w2, s2)[:, :F]

    return layer4branch, layer3branch, layer2branch


def _kaiming_fan_out(key, shape, fan_out):
    return jax.random.normal(key, shape, jnp.float32) * jnp.sqrt(2.0 / fan_out)


if __name__ == "__main__":
    # Small, lane-friendly stand-ins for a ResNet pyramid (channel widths are multiples
    # of 128 so every store is lane-dense; real ResNet-50 widths 512/1024/2048 satisfy
    # this automatically).  Spatial relations follow the module: H2 = 2*H3 = 4*H4.
    B = 2
    C2, H2, W2 = 128, 16, 16     # layer2 output (inplanes2)
    C3, H3, W3 = 256, 8, 8       # layer3 output (inplanes3)
    C4, H4, W4 = 512, 4, 4       # layer4 output (inplanes4)
    F = 128                      # num_features
    out2, out3, out4 = C2 * 16, C3 * 4, C4   # outplanes2/3/4 (Linear in_features)

    keys = jax.random.split(jax.random.PRNGKey(0), 8)

    # Backbone feature maps (see TODO(synk) above) -- NHWC.
    x4 = jax.random.normal(keys[0], (B, H4, W4, C4), jnp.float32)
    x3 = jax.random.normal(keys[1], (B, H3, W3, C3), jnp.float32)
    x2 = jax.random.normal(keys[2], (B, H2, W2, C2), jnp.float32)

    # Deterministic parameter init matching the module's init scheme / shapes.
    # Conv2d 1x1: kaiming fan_out = Cout, bias = 0; stored here as (Cin, Cout) for the
    # channel matmul (distributionally identical to transposing the torch layout).
    # Linear: torch layout (F, in_features), kaiming fan_out = F, bias = 0.
    params = {
        "conv43_w": _kaiming_fan_out(keys[3], (C4, C3), C3),
        "conv43_b": jnp.zeros((C3,), jnp.float32),
        "conv32_w": _kaiming_fan_out(keys[4], (C3, C2), C2),
        "conv32_b": jnp.zeros((C2,), jnp.float32),
        "feat4_w": _kaiming_fan_out(keys[5], (F, out4), F),
        "feat4_b": jnp.zeros((F,), jnp.float32),
        "feat3_w": _kaiming_fan_out(keys[6], (F, out3), F),
        "feat3_b": jnp.zeros((F,), jnp.float32),
        "feat2_w": _kaiming_fan_out(keys[7], (F, out2), F),
        "feat2_b": jnp.zeros((F,), jnp.float32),
    }
    # Per-branch eval-mode BatchNorm1d params (freshly initialised: gamma=1, beta=0,
    # running_mean=0, running_var=1); kept separate per branch for checkpoint fidelity.
    for name in ("feat4", "feat3", "feat2"):
        params[name + "_bn_g"] = jnp.ones((F,), jnp.float32)
        params[name + "_bn_b"] = jnp.zeros((F,), jnp.float32)
        params[name + "_bn_m"] = jnp.zeros((F,), jnp.float32)
        params[name + "_bn_v"] = jnp.ones((F,), jnp.float32)

    fwd = jax.jit(resfpn_forward)
    l4, l3, l2 = fwd(x4, x3, x2, params)
    jax.block_until_ready((l4, l3, l2))
    assert l4.shape == (B, F) and l3.shape == (B, F) and l2.shape == (B, F)
    assert bool(jnp.all(jnp.isfinite(l4))) and bool(jnp.all(jnp.isfinite(l3))) \
        and bool(jnp.all(jnp.isfinite(l2)))
    print("KERNEL_OK")
</pallas_src>

<mosaic_0001>
module attributes {stable_mosaic.version = 11 : i64} {
  func.func @kernel(%arg0: i32, %arg1: i32, %arg2: memref<8x512xf32, #tpu.memory_space<vmem>>, %arg3: memref<512x256xbf16, #tpu.memory_space<vmem>>, %arg4: memref<1x256xf32, #tpu.memory_space<vmem>>, %arg5: memref<2x2x4x512xf32, #tpu.memory_space<vmem>>, %arg6: memref<2x2x4x512xbf16, #tpu.memory_space<vmem>>, %arg7: memref<2x2x256xf32, #tpu.memory_space<vmem>>) attributes {dimension_semantics = [#tpu.dimension_semantics<parallel>, #tpu.dimension_semantics<parallel>], iteration_bounds = array<i64: 2, 2>, scalar_prefetch = 0 : i64, scratch_operands = 0 : i64, tpu.core_type = #tpu.core_type<tc>, window_params = [{transform_indices = @transform_0, window_bounds = array<i64: 8, 512>}, {pipeline_mode = #tpu.pipeline_mode<synchronous>, transform_indices = @transform_1, window_bounds = array<i64: 512, 256>}, {pipeline_mode = #tpu.pipeline_mode<synchronous>, transform_indices = @transform_2, window_bounds = array<i64: 1, 256>}, {transform_indices = @transform_3, window_bounds = array<i64: 2, 2, 4, 512>}, {transform_indices = @transform_4, window_bounds = array<i64: 2, 2, 4, 512>}, {transform_indices = @transform_5, window_bounds = array<i64: 2, 2, 256>}]} {
    %c0 = arith.constant 0 : index
    %c0_0 = arith.constant 0 : index
    %0 = vector.load %arg2[%c0, %c0_0] : memref<8x512xf32, #tpu.memory_space<vmem>>, vector<8x512xf32>
    %1 = arith.truncf %0 : vector<8x512xf32> to vector<8x512xbf16>
    %c0_1 = arith.constant 0 : index
    %c0_2 = arith.constant 0 : index
    %2 = vector.load %arg3[%c0_1, %c0_2] : memref<512x256xbf16, #tpu.memory_space<vmem>>, vector<512x256xbf16>
    %cst = arith.constant dense<0.000000e+00> : vector<8x256xf32>
    %3 = tpu.matmul %1, %2, %cst {dimension_numbers = #tpu.dot_dimension_numbers<[1], [0], [0], [1], [0, 0, 1, 1], [], []>} : vector<8x512xbf16>, vector<512x256xbf16>, vector<8x256xf32> -> vector<8x256xf32>
    %c0_3 = arith.constant 0 : index
    %c0_4 = arith.constant 0 : index
    %4 = vector.load %arg4[%c0_3, %c0_4] : memref<1x256xf32, #tpu.memory_space<vmem>>, vector<1x256xf32>
    %5 = vector.broadcast %4 : vector<1x256xf32> to vector<8x256xf32>
    %6 = arith.addf %3, %5 : vector<8x256xf32>
    %c0_5 = arith.constant 0 : index
    %c0_6 = arith.constant 0 : index
    %c0_7 = arith.constant 0 : index
    %c0_8 = arith.constant 0 : index
    %7 = vector.load %arg5[%c0_5, %c0_6, %c0_7, %c0_8] : memref<2x2x4x512xf32, #tpu.memory_space<vmem>>, vector<2x2x4x512xf32>
    %8 = tpu.concatenate %6, %6 in 1 : vector<8x256xf32>, vector<8x256xf32> -> vector<8x512xf32>
    %9 = vector.shape_cast %8 : vector<8x512xf32> to vector<2x4x512xf32>
    %10 = vector.shape_cast %9 : vector<2x4x512xf32> to vector<2x1x4x512xf32>
    %11 = vector.broadcast %10 : vector<2x1x4x512xf32> to vector<2x2x4x512xf32>
    %12 = arith.addf %11, %7 : vector<2x2x4x512xf32>
    %13 = arith.truncf %12 : vector<2x2x4x512xf32> to vector<2x2x4x512xbf16>
    %c0_9 = arith.constant 0 : index
    %c0_10 = arith.constant 0 : index
    %c0_11 = arith.constant 0 : index
    %c0_12 = arith.constant 0 : index
    %14 = vector.load %arg6[%c0_9, %c0_10, %c0_11, %c0_12] : memref<2x2x4x512xbf16, #tpu.memory_space<vmem>>, vector<2x2x4x512xbf16>
    tpu.vector_store %arg6[%c0_9, %c0_10, %c0_11, %c0_12], %13 {strides = array<i32>} : memref<2x2x4x512xbf16, #tpu.memory_space<vmem>>, vector<2x2x4x512xbf16>,
    %15 = vector.extract_strided_slice %7 {offsets = [0, 0, 0, 0], sizes = [2, 1, 4, 512], strides = [1, 1, 1, 1]} : vector<2x2x4x512xf32> to vector<2x1x4x512xf32>
    %16 = vector.shape_cast %15 : vector<2x1x4x512xf32> to vector<2x4x512xf32>
    %17 = vector.extract_strided_slice %7 {offsets = [0, 1, 0, 0], sizes = [2, 1, 4, 512], strides = [1, 1, 1, 1]} : vector<2x2x4x512xf32> to vector<2x1x4x512xf32>
    %18 = vector.shape_cast %17 : vector<2x1x4x512xf32> to vector<2x4x512xf32>
    %19 = arith.addf %16, %18 : vector<2x4x512xf32>
    %20 = vector.shape_cast %6 : vector<8x256xf32> to vector<2x4x256xf32>
    %cst_13 = arith.constant 4.000000e+00 : f32
    %21 = vector.broadcast %cst_13 : f32 to vector<2x4x256xf32>
    %22 = arith.mulf %21, %20 : vector<2x4x256xf32>
    %23 = vector.extract_strided_slice %19 {offsets = [0, 0, 0], sizes = [2, 4, 256], strides = [1, 1, 1]} : vector<2x4x512xf32> to vector<2x4x256xf32>
    %24 = vector.extract_strided_slice %19 {offsets = [0, 0, 256], sizes = [2, 4, 256], strides = [1, 1, 1]} : vector<2x4x512xf32> to vector<2x4x256xf32>
    %25 = arith.addf %23, %24 : vector<2x4x256xf32>
    %26 = arith.addf %22, %25 : vector<2x4x256xf32>
    %27 = vector.shape_cast %26 : vector<2x4x256xf32> to vector<2x2x2x256xf32>
    %cst_14 = arith.constant dense<0.000000e+00> : vector<2x2x256xf32>
    %28 = vector.multi_reduction <add>, %27, %cst_14 [2] : vector<2x2x2x256xf32> to vector<2x2x256xf32>
    %c0_15 = arith.constant 0 : index
    %c0_16 = arith.constant 0 : index
    %c0_17 = arith.constant 0 : index
    %29 = vector.load %arg7[%c0_15, %c0_16, %c0_17] : memref<2x2x256xf32, #tpu.memory_space<vmem>>, vector<2x2x256xf32>
    tpu.vector_store %arg7[%c0_15, %c0_16, %c0_17], %28 {strides = array<i32>} : memref<2x2x256xf32, #tpu.memory_space<vmem>>, vector<2x2x256xf32>,
    return
  }
  func.func @transform_0(%arg0: i32, %arg1: i32) -> (i32, i32) {
    %c2_i32 = arith.constant 2 : i32
    %0 = arith.muli %arg0, %c2_i32 : i32
    %1 = arith.addi %0, %arg1 : i32
    %c0_i32 = arith.constant 0 : i32
    %c0_i32_0 = arith.constant 0 : i32
    return %1, %c0_i32 : i32, i32
  }
  func.func @transform_1(%arg0: i32, %arg1: i32) -> (i32, i32) {
    %c0_i32 = arith.constant 0 : i32
    %c0_i32_0 = arith.constant 0 : i32
    %c0_i32_1 = arith.constant 0 : i32
    return %c0_i32, %c0_i32_0 : i32, i32
  }
  func.func @transform_2(%arg0: i32, %arg1: i32) -> (i32, i32) {
    %c0_i32 = arith.constant 0 : i32
    %c0_i32_0 = arith.constant 0 : i32
    %c0_i32_1 = arith.constant 0 : i32
    return %c0_i32, %c0_i32_0 : i32, i32
  }
  func.func @transform_3(%arg0: i32, %arg1: i32) -> (i32, i32, i32, i32) {
    %c2_i32 = arith.constant 2 : i32
    %0 = arith.muli %arg0, %c2_i32 : i32
    %1 = arith.addi %0, %arg1 : i32
    %c0_i32 = arith.constant 0 : i32
    %c0_i32_0 = arith.constant 0 : i32
    %c0_i32_1 = arith.constant 0 : i32
    %c0_i32_2 = arith.constant 0 : i32
    return %1, %c0_i32, %c0_i32_0, %c0_i32_1 : i32, i32, i32, i32
  }
  func.func @transform_4(%arg0: i32, %arg1: i32) -> (i32, i32, i32, i32) {
    %c2_i32 = arith.constant 2 : i32
    %0 = arith.muli %arg0, %c2_i32 : i32
    %1 = arith.addi %0, %arg1 : i32
    %c0_i32 = arith.constant 0 : i32
    %c0_i32_0 = arith.constant 0 : i32
    %c0_i32_1 = arith.constant 0 : i32
    %c0_i32_2 = arith.constant 0 : i32
    return %1, %c0_i32, %c0_i32_0, %c0_i32_1 : i32, i32, i32, i32
  }
  func.func @transform_5(%arg0: i32, %arg1: i32) -> (i32, i32, i32) {
    %c2_i32 = arith.constant 2 : i32
    %0 = arith.muli %arg0, %c2_i32 : i32
    %1 = arith.addi %0, %arg1 : i32
    %c0_i32 = arith.constant 0 : i32
    %c0_i32_0 = arith.constant 0 : i32
    %c0_i32_1 = arith.constant 0 : i32
    return %1, %c0_i32, %c0_i32_0 : i32, i32, i32
  }
}

module attributes {stable_mosaic.version = 11 : i64} {
  func.func @kernel(%arg0: i32, %arg1: i32, %arg2: memref<32x256xbf16, #tpu.memory_space<vmem>>, %arg3: memref<256x128xbf16, #tpu.memory_space<vmem>>, %arg4: memref<1x128xf32, #tpu.memory_space<vmem>>, %arg5: memref<4x2x8x256xf32, #tpu.memory_space<vmem>>, %arg6: memref<4x4x128xf32, #tpu.memory_space<vmem>>) attributes {dimension_semantics = [#tpu.dimension_semantics<parallel>, #tpu.dimension_semantics<parallel>], iteration_bounds = array<i64: 2, 2>, scalar_prefetch = 0 : i64, scratch_operands = 0 : i64, tpu.core_type = #tpu.core_type<tc>, window_params = [{transform_indices = @transform_0, window_bounds = array<i64: 32, 256>}, {pipeline_mode = #tpu.pipeline_mode<synchronous>, transform_indices = @transform_1, window_bounds = array<i64: 256, 128>}, {pipeline_mode = #tpu.pipeline_mode<synchronous>, transform_indices = @transform_2, window_bounds = array<i64: 1, 128>}, {transform_indices = @transform_3, window_bounds = array<i64: 4, 2, 8, 256>}, {transform_indices = @transform_4, window_bounds = array<i64: 4, 4, 128>}]} {
    %c0 = arith.constant 0 : index
    %c0_0 = arith.constant 0 : index
    %0 = vector.load %arg2[%c0, %c0_0] : memref<32x256xbf16, #tpu.memory_space<vmem>>, vector<32x256xbf16>
    %c0_1 = arith.constant 0 : index
    %c0_2 = arith.constant 0 : index
    %1 = vector.load %arg3[%c0_1, %c0_2] : memref<256x128xbf16, #tpu.memory_space<vmem>>, vector<256x128xbf16>
    %cst = arith.constant dense<0.000000e+00> : vector<32x128xf32>
    %2 = tpu.matmul %0, %1, %cst {dimension_numbers = #tpu.dot_dimension_numbers<[1], [0], [0], [1], [0, 0, 1, 1], [], []>} : vector<32x256xbf16>, vector<256x128xbf16>, vector<32x128xf32> -> vector<32x128xf32>
    %c0_3 = arith.constant 0 : index
    %c0_4 = arith.constant 0 : index
    %3 = vector.load %arg4[%c0_3, %c0_4] : memref<1x128xf32, #tpu.memory_space<vmem>>, vector<1x128xf32>
    %4 = vector.broadcast %3 : vector<1x128xf32> to vector<32x128xf32>
    %5 = arith.addf %2, %4 : vector<32x128xf32>
    %c0_5 = arith.constant 0 : index
    %c0_6 = arith.constant 0 : index
    %c0_7 = arith.constant 0 : index
    %c0_8 = arith.constant 0 : index
    %6 = vector.load %arg5[%c0_5, %c0_6, %c0_7, %c0_8] : memref<4x2x8x256xf32, #tpu.memory_space<vmem>>, vector<4x2x8x256xf32>
    %7 = vector.extract_strided_slice %6 {offsets = [0, 0, 0, 0], sizes = [4, 1, 8, 256], strides = [1, 1, 1, 1]} : vector<4x2x8x256xf32> to vector<4x1x8x256xf32>
    %8 = vector.shape_cast %7 : vector<4x1x8x256xf32> to vector<4x8x256xf32>
    %9 = vector.extract_strided_slice %6 {offsets = [0, 1, 0, 0], sizes = [4, 1, 8, 256], strides = [1, 1, 1, 1]} : vector<4x2x8x256xf32> to vector<4x1x8x256xf32>
    %10 = vector.shape_cast %9 : vector<4x1x8x256xf32> to vector<4x8x256xf32>
    %11 = arith.addf %8, %10 : vector<4x8x256xf32>
    %12 = vector.shape_cast %5 : vector<32x128xf32> to vector<4x8x128xf32>
    %cst_9 = arith.constant 4.000000e+00 : f32
    %13 = vector.broadcast %cst_9 : f32 to vector<4x8x128xf32>
    %14 = arith.mulf %13, %12 : vector<4x8x128xf32>
    %15 = vector.extract_strided_slice %11 {offsets = [0, 0, 0], sizes = [4, 8, 128], strides = [1, 1, 1]} : vector<4x8x256xf32> to vector<4x8x128xf32>
    %16 = vector.extract_strided_slice %11 {offsets = [0, 0, 128], sizes = [4, 8, 128], strides = [1, 1, 1]} : vector<4x8x256xf32> to vector<4x8x128xf32>
    %17 = arith.addf %15, %16 : vector<4x8x128xf32>
    %18 = arith.addf %14, %17 : vector<4x8x128xf32>
    %19 = vector.shape_cast %18 : vector<4x8x128xf32> to vector<4x4x2x128xf32>
    %cst_10 = arith.constant dense<0.000000e+00> : vector<4x4x128xf32>
    %20 = vector.multi_reduction <add>, %19, %cst_10 [2] : vector<4x4x2x128xf32> to vector<4x4x128xf32>
    %c0_11 = arith.constant 0 : index
    %c0_12 = arith.constant 0 : index
    %c0_13 = arith.constant 0 : index
    %21 = vector.load %arg6[%c0_11, %c0_12, %c0_13] : memref<4x4x128xf32, #tpu.memory_space<vmem>>, vector<4x4x128xf32>
    tpu.vector_store %arg6[%c0_11, %c0_12, %c0_13], %20 {strides = array<i32>} : memref<4x4x128xf32, #tpu.memory_space<vmem>>, vector<4x4x128xf32>,
    return
  }
  func.func @transform_0(%arg0: i32, %arg1: i32) -> (i32, i32) {
    %c2_i32 = arith.constant 2 : i32
    %0 = arith.muli %arg0, %c2_i32 : i32
    %1 = arith.addi %0, %arg1 : i32
    %c0_i32 = arith.constant 0 : i32
    %c0_i32_0 = arith.constant 0 : i32
    return %1, %c0_i32 : i32, i32
  }
  func.func @transform_1(%arg0: i32, %arg1: i32) -> (i32, i32) {
    %c0_i32 = arith.constant 0 : i32
    %c0_i32_0 = arith.constant 0 : i32
    %c0_i32_1 = arith.constant 0 : i32
    return %c0_i32, %c0_i32_0 : i32, i32
  }
  func.func @transform_2(%arg0: i32, %arg1: i32) -> (i32, i32) {
    %c0_i32 = arith.constant 0 : i32
    %c0_i32_0 = arith.constant 0 : i32
    %c0_i32_1 = arith.constant 0 : i32
    return %c0_i32, %c0_i32_0 : i32, i32
  }
  func.func @transform_3(%arg0: i32, %arg1: i32) -> (i32, i32, i32, i32) {
    %c2_i32 = arith.constant 2 : i32
    %0 = arith.muli %arg0, %c2_i32 : i32
    %1 = arith.addi %0, %arg1 : i32
    %c0_i32 = arith.constant 0 : i32
    %c0_i32_0 = arith.constant 0 : i32
    %c0_i32_1 = arith.constant 0 : i32
    %c0_i32_2 = arith.constant 0 : i32
    return %1, %c0_i32, %c0_i32_0, %c0_i32_1 : i32, i32, i32, i32
  }
  func.func @transform_4(%arg0: i32, %arg1: i32) -> (i32, i32, i32) {
    %c2_i32 = arith.constant 2 : i32
    %0 = arith.muli %arg0, %c2_i32 : i32
    %1 = arith.addi %0, %arg1 : i32
    %c0_i32 = arith.constant 0 : i32
    %c0_i32_0 = arith.constant 0 : i32
    %c0_i32_1 = arith.constant 0 : i32
    return %1, %c0_i32, %c0_i32_0 : i32, i32, i32
  }
}

module attributes {stable_mosaic.version = 11 : i64} {
  func.func @kernel(%arg0: i32, %arg1: memref<2x8x4x128xf32, #tpu.memory_space<vmem>>, %arg2: memref<2048x128xbf16, #tpu.memory_space<vmem>>, %arg3: memref<1x128xf32, #tpu.memory_space<vmem>>, %arg4: memref<2x128xf32, #tpu.memory_space<vmem>>) attributes {dimension_semantics = [#tpu.dimension_semantics<parallel>], iteration_bounds = array<i64: 1>, scalar_prefetch = 0 : i64, scratch_operands = 0 : i64, tpu.core_type = #tpu.core_type<tc>, window_params = [{transform_indices = @transform_0, window_bounds = array<i64: 2, 8, 4, 128>}, {pipeline_mode = #tpu.pipeline_mode<synchronous>, transform_indices = @transform_1, window_bounds = array<i64: 2048, 128>}, {pipeline_mode = #tpu.pipeline_mode<synchronous>, transform_indices = @transform_2, window_bounds = array<i64: 1, 128>}, {transform_indices = @transform_3, window_bounds = array<i64: 2, 128>}]} {
    %c0 = arith.constant 0 : index
    %c0_0 = arith.constant 0 : index
    %c0_1 = arith.constant 0 : index
    %c0_2 = arith.constant 0 : index
    %0 = vector.load %arg1[%c0, %c0_0, %c0_1, %c0_2] : memref<2x8x4x128xf32, #tpu.memory_space<vmem>>, vector<2x8x4x128xf32>
    %1 = vector.extract_strided_slice %0 {offsets = [0, 0, 0, 0], sizes = [2, 2, 1, 128], strides = [1, 1, 1, 1]} : vector<2x8x4x128xf32> to vector<2x2x1x128xf32>
    %cst = arith.constant dense<0.000000e+00> : vector<2x1x128xf32>
    %2 = vector.multi_reduction <add>, %1, %cst [1] : vector<2x2x1x128xf32> to vector<2x1x128xf32>
    %cst_3 = arith.constant dense<0.000000e+00> : vector<2x128xf32>
    %3 = vector.multi_reduction <add>, %2, %cst_3 [1] : vector<2x1x128xf32> to vector<2x128xf32>
    %4 = vector.extract_strided_slice %0 {offsets = [0, 0, 1, 0], sizes = [2, 2, 1, 128], strides = [1, 1, 1, 1]} : vector<2x8x4x128xf32> to vector<2x2x1x128xf32>
    %cst_4 = arith.constant dense<0.000000e+00> : vector<2x1x128xf32>
    %5 = vector.multi_reduction <add>, %4, %cst_4 [1] : vector<2x2x1x128xf32> to vector<2x1x128xf32>
    %cst_5 = arith.constant dense<0.000000e+00> : vector<2x128xf32>
    %6 = vector.multi_reduction <add>, %5, %cst_5 [1] : vector<2x1x128xf32> to vector<2x128xf32>
    %7 = vector.extract_strided_slice %0 {offsets = [0, 0, 2, 0], sizes = [2, 2, 1, 128], strides = [1, 1, 1, 1]} : vector<2x8x4x128xf32> to vector<2x2x1x128xf32>
    %cst_6 = arith.constant dense<0.000000e+00> : vector<2x1x128xf32>
    %8 = vector.multi_reduction <add>, %7, %cst_6 [1] : vector<2x2x1x128xf32> to vector<2x1x128xf32>
    %cst_7 = arith.constant dense<0.000000e+00> : vector<2x128xf32>
    %9 = vector.multi_reduction <add>, %8, %cst_7 [1] : vector<2x1x128xf32> to vector<2x128xf32>
    %10 = vector.extract_strided_slice %0 {offsets = [0, 0, 3, 0], sizes = [2, 2, 1, 128], strides = [1, 1, 1, 1]} : vector<2x8x4x128xf32> to vector<2x2x1x128xf32>
    %cst_8 = arith.constant dense<0.000000e+00> : vector<2x1x128xf32>
    %11 = vector.multi_reduction <add>, %10, %cst_8 [1] : vector<2x2x1x128xf32> to vector<2x1x128xf32>
    %cst_9 = arith.constant dense<0.000000e+00> : vector<2x128xf32>
    %12 = vector.multi_reduction <add>, %11, %cst_9 [1] : vector<2x1x128xf32> to vector<2x128xf32>
    %13 = vector.extract_strided_slice %0 {offsets = [0, 2, 0, 0], sizes = [2, 2, 1, 128], strides = [1, 1, 1, 1]} : vector<2x8x4x128xf32> to vector<2x2x1x128xf32>
    %cst_10 = arith.constant dense<0.000000e+00> : vector<2x1x128xf32>
    %14 = vector.multi_reduction <add>, %13, %cst_10 [1] : vector<2x2x1x128xf32> to vector<2x1x128xf32>
    %cst_11 = arith.constant dense<0.000000e+00> : vector<2x128xf32>
    %15 = vector.multi_reduction <add>, %14, %cst_11 [1] : vector<2x1x128xf32> to vector<2x128xf32>
    %16 = vector.extract_strided_slice %0 {offsets = [0, 2, 1, 0], sizes = [2, 2, 1, 128], strides = [1, 1, 1, 1]} : vector<2x8x4x128xf32> to vector<2x2x1x128xf32>
    %cst_12 = arith.constant dense<0.000000e+00> : vector<2x1x128xf32>
    %17 = vector.multi_reduction <add>, %16, %cst_12 [1] : vector<2x2x1x128xf32> to vector<2x1x128xf32>
    %cst_13 = arith.constant dense<0.000000e+00> : vector<2x128xf32>
    %18 = vector.multi_reduction <add>, %17, %cst_13 [1] : vector<2x1x128xf32> to vector<2x128xf32>
    %19 = vector.extract_strided_slice %0 {offsets = [0, 2, 2, 0], sizes = [2, 2, 1, 128], strides = [1, 1, 1, 1]} : vector<2x8x4x128xf32> to vector<2x2x1x128xf32>
    %cst_14 = arith.constant dense<0.000000e+00> : vector<2x1x128xf32>
    %20 = vector.multi_reduction <add>, %19, %cst_14 [1] : vector<2x2x1x128xf32> to vector<2x1x128xf32>
    %cst_15 = arith.constant dense<0.000000e+00> : vector<2x128xf32>
    %21 = vector.multi_reduction <add>, %20, %cst_15 [1] : vector<2x1x128xf32> to vector<2x128xf32>
    %22 = vector.extract_strided_slice %0 {offsets = [0, 2, 3, 0], sizes = [2, 2, 1, 128], strides = [1, 1, 1, 1]} : vector<2x8x4x128xf32> to vector<2x2x1x128xf32>
    %cst_16 = arith.constant dense<0.000000e+00> : vector<2x1x128xf32>
    %23 = vector.multi_reduction <add>, %22, %cst_16 [1] : vector<2x2x1x128xf32> to vector<2x1x128xf32>
    %cst_17 = arith.constant dense<0.000000e+00> : vector<2x128xf32>
    %24 = vector.multi_reduction <add>, %23, %cst_17 [1] : vector<2x1x128xf32> to vector<2x128xf32>
    %25 = vector.extract_strided_slice %0 {offsets = [0, 4, 0, 0], sizes = [2, 2, 1, 128], strides = [1, 1, 1, 1]} : vector<2x8x4x128xf32> to vector<2x2x1x128xf32>
    %cst_18 = arith.constant dense<0.000000e+00> : vector<2x1x128xf32>
    %26 = vector.multi_reduction <add>, %25, %cst_18 [1] : vector<2x2x1x128xf32> to vector<2x1x128xf32>
    %cst_19 = arith.constant dense<0.000000e+00> : vector<2x128xf32>
    %27 = vector.multi_reduction <add>, %26, %cst_19 [1] : vector<2x1x128xf32> to vector<2x128xf32>
    %28 = vector.extract_strided_slice %0 {offsets = [0, 4, 1, 0], sizes = [2, 2, 1, 128], strides = [1, 1, 1, 1]} : vector<2x8x4x128xf32> to vector<2x2x1x128xf32>
    %cst_20 = arith.constant dense<0.000000e+00> : vector<2x1x128xf32>
    %29 = vector.multi_reduction <add>, %28, %cst_20 [1] : vector<2x2x1x128xf32> to vector<2x1x128xf32>
    %cst_21 = arith.constant dense<0.000000e+00> : vector<2x128xf32>
    %30 = vector.multi_reduction <add>, %29, %cst_21 [1] : vector<2x1x128xf32> to vector<2x128xf32>
    %31 = vector.extract_strided_slice %0 {offsets = [0, 4, 2, 0], sizes = [2, 2, 1, 128], strides = [1, 1, 1, 1]} : vector<2x8x4x128xf32> to vector<2x2x1x128xf32>
    %cst_22 = arith.constant dense<0.000000e+00> : vector<2x1x128xf32>
    %32 = vector.multi_reduction <add>, %31, %cst_22 [1] : vector<2x2x1x128xf32> to vector<2x1x128xf32>
    %cst_23 = arith.constant dense<0.000000e+00> : vector<2x128xf32>
    %33 = vector.multi_reduction <add>, %32, %cst_23 [1] : vector<2x1x128xf32> to vector<2x128xf32>
    %34 = vector.extract_strided_slice %0 {offsets = [0, 4, 3, 0], sizes = [2, 2, 1, 128], strides = [1, 1, 1, 1]} : vector<2x8x4x128xf32> to vector<2x2x1x128xf32>
    %cst_24 = arith.constant dense<0.000000e+00> : vector<2x1x128xf32>
    %35 = vector.multi_reduction <add>, %34, %cst_24 [1] : vector<2x2x1x128xf32> to vector<2x1x128xf32>
    %cst_25 = arith.constant dense<0.000000e+00> : vector<2x128xf32>
    %36 = vector.multi_reduction <add>, %35, %cst_25 [1] : vector<2x1x128xf32> to vector<2x128xf32>
    %37 = vector.extract_strided_slice %0 {offsets = [0, 6, 0, 0], sizes = [2, 2, 1, 128], strides = [1, 1, 1, 1]} : vector<2x8x4x128xf32> to vector<2x2x1x128xf32>
    %cst_26 = arith.constant dense<0.000000e+00> : vector<2x1x128xf32>
    %38 = vector.multi_reduction <add>, %37, %cst_26 [1] : vector<2x2x1x128xf32> to vector<2x1x128xf32>
    %cst_27 = arith.constant dense<0.000000e+00> : vector<2x128xf32>
    %39 = vector.multi_reduction <add>, %38, %cst_27 [1] : vector<2x1x128xf32> to vector<2x128xf32>
    %40 = vector.extract_strided_slice %0 {offsets = [0, 6, 1, 0], sizes = [2, 2, 1, 128], strides = [1, 1, 1, 1]} : vector<2x8x4x128xf32> to vector<2x2x1x128xf32>
    %cst_28 = arith.constant dense<0.000000e+00> : vector<2x1x128xf32>
    %41 = vector.multi_reduction <add>, %40, %cst_28 [1] : vector<2x2x1x128xf32> to vector<2x1x128xf32>
    %cst_29 = arith.constant dense<0.000000e+00> : vector<2x128xf32>
    %42 = vector.multi_reduction <add>, %41, %cst_29 [1] : vector<2x1x128xf32> to vector<2x128xf32>
    %43 = vector.extract_strided_slice %0 {offsets = [0, 6, 2, 0], sizes = [2, 2, 1, 128], strides = [1, 1, 1, 1]} : vector<2x8x4x128xf32> to vector<2x2x1x128xf32>
    %cst_30 = arith.constant dense<0.000000e+00> : vector<2x1x128xf32>
    %44 = vector.multi_reduction <add>, %43, %cst_30 [1] : vector<2x2x1x128xf32> to vector<2x1x128xf32>
    %cst_31 = arith.constant dense<0.000000e+00> : vector<2x128xf32>
    %45 = vector.multi_reduction <add>, %44, %cst_31 [1] : vector<2x1x128xf32> to vector<2x128xf32>
    %46 = vector.extract_strided_slice %0 {offsets = [0, 6, 3, 0], sizes = [2, 2, 1, 128], strides = [1, 1, 1, 1]} : vector<2x8x4x128xf32> to vector<2x2x1x128xf32>
    %cst_32 = arith.constant dense<0.000000e+00> : vector<2x1x128xf32>
    %47 = vector.multi_reduction <add>, %46, %cst_32 [1] : vector<2x2x1x128xf32> to vector<2x1x128xf32>
    %cst_33 = arith.constant dense<0.000000e+00> : vector<2x128xf32>
    %48 = vector.multi_reduction <add>, %47, %cst_33 [1] : vector<2x1x128xf32> to vector<2x128xf32>
    %49 = tpu.concatenate %3, %6, %9, %12, %15, %18, %21, %24, %27, %30, %33, %36, %39, %42, %45, %48 in 1 : vector<2x128xf32>, vector<2x128xf32>, vector<2x128xf32>, vector<2x128xf32>, vector<2x128xf32>, vector<2x128xf32>, vector<2x128xf32>, vector<2x128xf32>, vector<2x128xf32>, vector<2x128xf32>, vector<2x128xf32>, vector<2x128xf32>, vector<2x128xf32>, vector<2x128xf32>, vector<2x128xf32>, vector<2x128xf32> -> vector<2x2048xf32>
    %50 = arith.truncf %49 : vector<2x2048xf32> to vector<2x2048xbf16>
    %c0_34 = arith.constant 0 : index
    %c0_35 = arith.constant 0 : index
    %51 = vector.load %arg2[%c0_34, %c0_35] : memref<2048x128xbf16, #tpu.memory_space<vmem>>, vector<2048x128xbf16>
    %cst_36 = arith.constant dense<0.000000e+00> : vector<2x128xf32>
    %52 = tpu.matmul %50, %51, %cst_36 {dimension_numbers = #tpu.dot_dimension_numbers<[1], [0], [0], [1], [0, 0, 1, 1], [], []>} : vector<2x2048xbf16>, vector<2048x128xbf16>, vector<2x128xf32> -> vector<2x128xf32>
    %c0_37 = arith.constant 0 : index
    %c0_38 = arith.constant 0 : index
    %53 = vector.load %arg3[%c0_37, %c0_38] : memref<1x128xf32, #tpu.memory_space<vmem>>, vector<1x128xf32>
    %54 = vector.broadcast %53 : vector<1x128xf32> to vector<2x128xf32>
    %55 = arith.addf %52, %54 : vector<2x128xf32>
    %56 = arith.mulf %55, %55 : vector<2x128xf32>
    %cst_39 = arith.constant dense<0.000000e+00> : vector<2xf32>
    %57 = vector.multi_reduction <add>, %56, %cst_39 [1] : vector<2x128xf32> to vector<2xf32>
    %58 = vector.shape_cast %57 : vector<2xf32> to vector<2x1xf32>
    %59 = math.rsqrt %58 : vector<2x1xf32>
    %60 = vector.broadcast %59 : vector<2x1xf32> to vector<2x128xf32>
    %61 = arith.mulf %55, %60 : vector<2x128xf32>
    %c0_40 = arith.constant 0 : index
    %c0_41 = arith.constant 0 : index
    %62 = vector.load %arg4[%c0_40, %c0_41] : memref<2x128xf32, #tpu.memory_space<vmem>>, vector<2x128xf32>
    tpu.vector_store %arg4[%c0_40, %c0_41], %61 {strides = array<i32>} : memref<2x128xf32, #tpu.memory_space<vmem>>, vector<2x128xf32>,
    return
  }
  func.func @transform_0(%arg0: i32) -> (i32, i32, i32, i32) {
    %c0_i32 = arith.constant 0 : i32
    %c0_i32_0 = arith.constant 0 : i32
    %c0_i32_1 = arith.constant 0 : i32
    %c0_i32_2 = arith.constant 0 : i32
    return %arg0, %c0_i32, %c0_i32_0, %c0_i32_1 : i32, i32, i32, i32
  }
  func.func @transform_1(%arg0: i32) -> (i32, i32) {
    %c0_i32 = arith.constant 0 : i32
    %c0_i32_0 = arith.constant 0 : i32
    %c0_i32_1 = arith.constant 0 : i32
    return %c0_i32, %c0_i32_0 : i32, i32
  }
  func.func @transform_2(%arg0: i32) -> (i32, i32) {
    %c0_i32 = arith.constant 0 : i32
    %c0_i32_0 = arith.constant 0 : i32
    %c0_i32_1 = arith.constant 0 : i32
    return %c0_i32, %c0_i32_0 : i32, i32
  }
  func.func @transform_3(%arg0: i32) -> (i32, i32) {
    %c0_i32 = arith.constant 0 : i32
    %c0_i32_0 = arith.constant 0 : i32
    return %arg0, %c0_i32 : i32, i32
  }
}

module attributes {stable_mosaic.version = 11 : i64} {
  func.func @kernel(%arg0: i32, %arg1: memref<2x4x2x256xf32, #tpu.memory_space<vmem>>, %arg2: memref<1024x128xbf16, #tpu.memory_space<vmem>>, %arg3: memref<1x128xf32, #tpu.memory_space<vmem>>, %arg4: memref<2x128xf32, #tpu.memory_space<vmem>>) attributes {dimension_semantics = [#tpu.dimension_semantics<parallel>], iteration_bounds = array<i64: 1>, scalar_prefetch = 0 : i64, scratch_operands = 0 : i64, tpu.core_type = #tpu.core_type<tc>, window_params = [{transform_indices = @transform_0, window_bounds = array<i64: 2, 4, 2, 256>}, {pipeline_mode = #tpu.pipeline_mode<synchronous>, transform_indices = @transform_1, window_bounds = array<i64: 1024, 128>}, {pipeline_mode = #tpu.pipeline_mode<synchronous>, transform_indices = @transform_2, window_bounds = array<i64: 1, 128>}, {transform_indices = @transform_3, window_bounds = array<i64: 2, 128>}]} {
    %c0 = arith.constant 0 : index
    %c0_0 = arith.constant 0 : index
    %c0_1 = arith.constant 0 : index
    %c0_2 = arith.constant 0 : index
    %0 = vector.load %arg1[%c0, %c0_0, %c0_1, %c0_2] : memref<2x4x2x256xf32, #tpu.memory_space<vmem>>, vector<2x4x2x256xf32>
    %1 = vector.extract_strided_slice %0 {offsets = [0, 0, 0, 0], sizes = [2, 2, 1, 256], strides = [1, 1, 1, 1]} : vector<2x4x2x256xf32> to vector<2x2x1x256xf32>
    %cst = arith.constant dense<0.000000e+00> : vector<2x1x256xf32>
    %2 = vector.multi_reduction <add>, %1, %cst [1] : vector<2x2x1x256xf32> to vector<2x1x256xf32>
    %cst_3 = arith.constant dense<0.000000e+00> : vector<2x256xf32>
    %3 = vector.multi_reduction <add>, %2, %cst_3 [1] : vector<2x1x256xf32> to vector<2x256xf32>
    %4 = vector.extract_strided_slice %0 {offsets = [0, 0, 1, 0], sizes = [2, 2, 1, 256], strides = [1, 1, 1, 1]} : vector<2x4x2x256xf32> to vector<2x2x1x256xf32>
    %cst_4 = arith.constant dense<0.000000e+00> : vector<2x1x256xf32>
    %5 = vector.multi_reduction <add>, %4, %cst_4 [1] : vector<2x2x1x256xf32> to vector<2x1x256xf32>
    %cst_5 = arith.constant dense<0.000000e+00> : vector<2x256xf32>
    %6 = vector.multi_reduction <add>, %5, %cst_5 [1] : vector<2x1x256xf32> to vector<2x256xf32>
    %7 = vector.extract_strided_slice %0 {offsets = [0, 2, 0, 0], sizes = [2, 2, 1, 256], strides = [1, 1, 1, 1]} : vector<2x4x2x256xf32> to vector<2x2x1x256xf32>
    %cst_6 = arith.constant dense<0.000000e+00> : vector<2x1x256xf32>
    %8 = vector.multi_reduction <add>, %7, %cst_6 [1] : vector<2x2x1x256xf32> to vector<2x1x256xf32>
    %cst_7 = arith.constant dense<0.000000e+00> : vector<2x256xf32>
    %9 = vector.multi_reduction <add>, %8, %cst_7 [1] : vector<2x1x256xf32> to vector<2x256xf32>
    %10 = vector.extract_strided_slice %0 {offsets = [0, 2, 1, 0], sizes = [2, 2, 1, 256], strides = [1, 1, 1, 1]} : vector<2x4x2x256xf32> to vector<2x2x1x256xf32>
    %cst_8 = arith.constant dense<0.000000e+00> : vector<2x1x256xf32>
    %11 = vector.multi_reduction <add>, %10, %cst_8 [1] : vector<2x2x1x256xf32> to vector<2x1x256xf32>
    %cst_9 = arith.constant dense<0.000000e+00> : vector<2x256xf32>
    %12 = vector.multi_reduction <add>, %11, %cst_9 [1] : vector<2x1x256xf32> to vector<2x256xf32>
    %13 = tpu.concatenate %3, %6, %9, %12 in 1 : vector<2x256xf32>, vector<2x256xf32>, vector<2x256xf32>, vector<2x256xf32> -> vector<2x1024xf32>
    %14 = arith.truncf %13 : vector<2x1024xf32> to vector<2x1024xbf16>
    %c0_10 = arith.constant 0 : index
    %c0_11 = arith.constant 0 : index
    %15 = vector.load %arg2[%c0_10, %c0_11] : memref<1024x128xbf16, #tpu.memory_space<vmem>>, vector<1024x128xbf16>
    %cst_12 = arith.constant dense<0.000000e+00> : vector<2x128xf32>
    %16 = tpu.matmul %14, %15, %cst_12 {dimension_numbers = #tpu.dot_dimension_numbers<[1], [0], [0], [1], [0, 0, 1, 1], [], []>} : vector<2x1024xbf16>, vector<1024x128xbf16>, vector<2x128xf32> -> vector<2x128xf32>
    %c0_13 = arith.constant 0 : index
    %c0_14 = arith.constant 0 : index
    %17 = vector.load %arg3[%c0_13, %c0_14] : memref<1x128xf32, #tpu.memory_space<vmem>>, vector<1x128xf32>
    %18 = vector.broadcast %17 : vector<1x128xf32> to vector<2x128xf32>
    %19 = arith.addf %16, %18 : vector<2x128xf32>
    %20 = arith.mulf %19, %19 : vector<2x128xf32>
    %cst_15 = arith.constant dense<0.000000e+00> : vector<2xf32>
    %21 = vector.multi_reduction <add>, %20, %cst_15 [1] : vector<2x128xf32> to vector<2xf32>
    %22 = vector.shape_cast %21 : vector<2xf32> to vector<2x1xf32>
    %23 = math.rsqrt %22 : vector<2x1xf32>
    %24 = vector.broadcast %23 : vector<2x1xf32> to vector<2x128xf32>
    %25 = arith.mulf %19, %24 : vector<2x128xf32>
    %c0_16 = arith.constant 0 : index
    %c0_17 = arith.constant 0 : index
    %26 = vector.load %arg4[%c0_16, %c0_17] : memref<2x128xf32, #tpu.memory_space<vmem>>, vector<2x128xf32>
    tpu.vector_store %arg4[%c0_16, %c0_17], %25 {strides = array<i32>} : memref<2x128xf32, #tpu.memory_space<vmem>>, vector<2x128xf32>,
    return
  }
  func.func @transform_0(%arg0: i32) -> (i32, i32, i32, i32) {
    %c0_i32 = arith.constant 0 : i32
    %c0_i32_0 = arith.constant 0 : i32
    %c0_i32_1 = arith.constant 0 : i32
    %c0_i32_2 = arith.constant 0 : i32
    return %arg0, %c0_i32, %c0_i32_0, %c0_i32_1 : i32, i32, i32, i32
  }
  func.func @transform_1(%arg0: i32) -> (i32, i32) {
    %c0_i32 = arith.constant 0 : i32
    %c0_i32_0 = arith.constant 0 : i32
    %c0_i32_1 = arith.constant 0 : i32
    return %c0_i32, %c0_i32_0 : i32, i32
  }
  func.func @transform_2(%arg0: i32) -> (i32, i32) {
    %c0_i32 = arith.constant 0 : i32
    %c0_i32_0 = arith.constant 0 : i32
    %c0_i32_1 = arith.constant 0 : i32
    return %c0_i32, %c0_i32_0 : i32, i32
  }
  func.func @transform_3(%arg0: i32) -> (i32, i32) {
    %c0_i32 = arith.constant 0 : i32
    %c0_i32_0 = arith.constant 0 : i32
    return %arg0, %c0_i32 : i32, i32
  }
}

module attributes {stable_mosaic.version = 11 : i64} {
  func.func @kernel(%arg0: i32, %arg1: memref<2x4x4x512xf32, #tpu.memory_space<vmem>>, %arg2: memref<512x128xbf16, #tpu.memory_space<vmem>>, %arg3: memref<1x128xf32, #tpu.memory_space<vmem>>, %arg4: memref<2x128xf32, #tpu.memory_space<vmem>>) attributes {dimension_semantics = [#tpu.dimension_semantics<parallel>], iteration_bounds = array<i64: 1>, scalar_prefetch = 0 : i64, scratch_operands = 0 : i64, tpu.core_type = #tpu.core_type<tc>, window_params = [{transform_indices = @transform_0, window_bounds = array<i64: 2, 4, 4, 512>}, {pipeline_mode = #tpu.pipeline_mode<synchronous>, transform_indices = @transform_1, window_bounds = array<i64: 512, 128>}, {pipeline_mode = #tpu.pipeline_mode<synchronous>, transform_indices = @transform_2, window_bounds = array<i64: 1, 128>}, {transform_indices = @transform_3, window_bounds = array<i64: 2, 128>}]} {
    %c0 = arith.constant 0 : index
    %c0_0 = arith.constant 0 : index
    %c0_1 = arith.constant 0 : index
    %c0_2 = arith.constant 0 : index
    %0 = vector.load %arg1[%c0, %c0_0, %c0_1, %c0_2] : memref<2x4x4x512xf32, #tpu.memory_space<vmem>>, vector<2x4x4x512xf32>
    %cst = arith.constant dense<0.000000e+00> : vector<2x4x512xf32>
    %1 = vector.multi_reduction <add>, %0, %cst [1] : vector<2x4x4x512xf32> to vector<2x4x512xf32>
    %cst_3 = arith.constant dense<0.000000e+00> : vector<2x512xf32>
    %2 = vector.multi_reduction <add>, %1, %cst_3 [1] : vector<2x4x512xf32> to vector<2x512xf32>
    %3 = arith.truncf %2 : vector<2x512xf32> to vector<2x512xbf16>
    %c0_4 = arith.constant 0 : index
    %c0_5 = arith.constant 0 : index
    %4 = vector.load %arg2[%c0_4, %c0_5] : memref<512x128xbf16, #tpu.memory_space<vmem>>, vector<512x128xbf16>
    %cst_6 = arith.constant dense<0.000000e+00> : vector<2x128xf32>
    %5 = tpu.matmul %3, %4, %cst_6 {dimension_numbers = #tpu.dot_dimension_numbers<[1], [0], [0], [1], [0, 0, 1, 1], [], []>} : vector<2x512xbf16>, vector<512x128xbf16>, vector<2x128xf32> -> vector<2x128xf32>
    %c0_7 = arith.constant 0 : index
    %c0_8 = arith.constant 0 : index
    %6 = vector.load %arg3[%c0_7, %c0_8] : memref<1x128xf32, #tpu.memory_space<vmem>>, vector<1x128xf32>
    %7 = vector.broadcast %6 : vector<1x128xf32> to vector<2x128xf32>
    %8 = arith.addf %5, %7 : vector<2x128xf32>
    %9 = arith.mulf %8, %8 : vector<2x128xf32>
    %cst_9 = arith.constant dense<0.000000e+00> : vector<2xf32>
    %10 = vector.multi_reduction <add>, %9, %cst_9 [1] : vector<2x128xf32> to vector<2xf32>
    %11 = vector.shape_cast %10 : vector<2xf32> to vector<2x1xf32>
    %12 = math.rsqrt %11 : vector<2x1xf32>
    %13 = vector.broadcast %12 : vector<2x1xf32> to vector<2x128xf32>
    %14 = arith.mulf %8, %13 : vector<2x128xf32>
    %c0_10 = arith.constant 0 : index
    %c0_11 = arith.constant 0 : index
    %15 = vector.load %arg4[%c0_10, %c0_11] : memref<2x128xf32, #tpu.memory_space<vmem>>, vector<2x128xf32>
    tpu.vector_store %arg4[%c0_10, %c0_11], %14 {strides = array<i32>} : memref<2x128xf32, #tpu.memory_space<vmem>>, vector<2x128xf32>,
    return
  }
  func.func @transform_0(%arg0: i32) -> (i32, i32, i32, i32) {
    %c0_i32 = arith.constant 0 : i32
    %c0_i32_0 = arith.constant 0 : i32
    %c0_i32_1 = arith.constant 0 : i32
    %c0_i32_2 = arith.constant 0 : i32
    return %arg0, %c0_i32, %c0_i32_0, %c0_i32_1 : i32, i32, i32, i32
  }
  func.func @transform_1(%arg0: i32) -> (i32, i32) {
    %c0_i32 = arith.constant 0 : i32
    %c0_i32_0 = arith.constant 0 : i32
    %c0_i32_1 = arith.constant 0 : i32
    return %c0_i32, %c0_i32_0 : i32, i32
  }
  func.func @transform_2(%arg0: i32) -> (i32, i32) {
    %c0_i32 = arith.constant 0 : i32
    %c0_i32_0 = arith.constant 0 : i32
    %c0_i32_1 = arith.constant 0 : i32
    return %c0_i32, %c0_i32_0 : i32, i32
  }
  func.func @transform_3(%arg0: i32) -> (i32, i32) {
    %c0_i32 = arith.constant 0 : i32
    %c0_i32_0 = arith.constant 0 : i32
    return %arg0, %c0_i32 : i32, i32
  }
}

</mosaic_0001>

<bundles_post_ra>
// kernel: resfpn_forward.8
= control target key start
LH: loop header
LB: loop body
LE: loop exit
PB: predicated region body
PF: predicated region fallthrough
CT: control target
= control target key end

     0   :  { %s1023_s15 = smov 0   ;;  %s1025_s16 = smov 0   ;;  %s1191_s0 = inlined_call_operand.vmem [shape: bf16[128,256], index: 0, kind: input, shape index: {}]   ;;  %s1192_s1 = inlined_call_operand.vmem [shape: bf16[256,128], index: 1, kind: input, shape index: {}]   ;;  %s1193_s2 = inlined_call_operand.vmem [shape: f32[1,128], index: 2, kind: input, shape index: {}]   ;;  %s1194_s3 = inlined_call_operand.vmem [shape: f32[16,2,8,256], index: 3, kind: input, shape index: {}]   ;;  %s1195_s4 = inlined_call_operand.vmem [shape: f32[16,4,128], index: 4, kind: output, shape index: {}]  }
   0x1   :  { %s1027_s17 = smov 0   ;;  %s1029_s18 = smov 0  }
   0x2   :  { %s1031_s19 = smov 0  }
   0x3 LB: > { %s23_s20 = sadd.s32 1, %s988_s17  ;;  %s26_s21 = sadd.s32 1, %s992_s18  ;;  %s996_s19 = sphi %s1031_s19, %s14_s19   ;;  %s992_s18 = sphi %s1029_s18, %s1199_s18   ;;  %s988_s17 = sphi %s1027_s17, %s1198_s17   ;;  %s984_s16 = sphi %s1025_s16, %s1197_s16   ;;  %s980_s15 = sphi %s1023_s15, %s1196_s15  }
   0x4   : > { %p24_p0 = scmp.ge.s32.totalorder %s23_s20, 2  ;;  %p785_p1 = scmp.ge.s32.totalorder %s996_s19, 1 }
   0x5   : > { %p208_p2 = scmp.lt.s32.totalorder %s996_s19, 5 }
   0x6   : > { %s1201_s20 = smov (%p24_p0, %s23_s20), 0  ;;  %s1203_s21 = smov (!%p24_p0, %s26_s21), %s992_s18 }
   0x7   : > { %p209_p3 = pnand %p785_p1, %p208_p2  ;;  %p28_p4 = scmp.ge.s32.totalorder %s1203_s21, 2 }
   0x8   : > { %s786_s28 = sshll.u32 (!%p209_p3), %s984_s16, 1 }
   0x9   : > { %s1205_s21 = smov (%p28_p4, %s1203_s21), 0  ;;  %212 = sbr.rel (%p209_p3) target bundleno = 227 (0xe3), region = 36 }
   0xa   : > { %s248_s5 = sadd.s32 (!%p209_p3), %s980_s15, %s786_s28 }
   0xb   : > { %s787_s10 = sshll.u32 (!%p209_p3), %s248_s5, 2 }
   0xc   : > { %p250_p5 = scmp.lt.s32.totalorder (!%p209_p3), %s787_s10, 15 }
   0xe   : > { %v892_v0 = vld [vmem:[%s1192_s1 + $0x38] sm:$0xff]  ;;  %v891_v2 = vld [vmem:[%s1192_s1 + $0x30] sm:$0xff]  ;;  %v890_v4 = vld [vmem:[%s1192_s1 + $0x28] sm:$0xff]  ;;  %s1207_s10 = smov (!%p250_p5, %s787_s10), 15  ;;  %vm537_vm0 = vcmask 1041408   ;;  %vm666_vm1 = vcmask 1041409  }
   0xf   : > { %v900_v1 = vld [vmem:[%s1192_s1 + $0x78] sm:$0xff]  ;;  %435 = vmatpush.bf16.msra.mxu0 %v892_v0  ;;  %901 = vmatpush.bf16.msra.mxu2 %v892_v0  ;;  %v899_v3 = vld [vmem:[%s1192_s1 + $0x70] sm:$0xff]  ;;  %v898_v5 = vld [vmem:[%s1192_s1 + $0x68] sm:$0xff]  ;;  %s879_s28 = sshll.u32 %s1207_s10, 3  ;;  %s880_s15 = sshll.u32 %s1207_s10, 5  ;;  %vm668_vm2 = vcmask 1042434  }
  0x10   : > { %454 = vmatpush.bf16.msra.mxu1 %v900_v1  ;;  %909 = vmatpush.bf16.msra.mxu3 %v900_v1  ;;  %v889_v6 = vld [vmem:[%s1192_s1 + $0x20] sm:$0xff]  ;;  %v888_v8 = vld [vmem:[%s1192_s1 + $0x18] sm:$0xff]  ;;  %v887_v10 = vld [vmem:[%s1192_s1 + $0x10] sm:$0xff]  ;;  %s254_s7 = scalar_lea.vmem %s1191_s0, %s879_s28  ;;  %s1111_s23 = scalar_lea.vmem %s1194_s3, %s880_s15  ;;  %vm670_vm3 = vcmask 1043459  }
  0x11   : > { %v897_v7 = vld [vmem:[%s1192_s1 + $0x60] sm:$0xff]  ;;  %v896_v9 = vld [vmem:[%s1192_s1 + $0x58] sm:$0xff]  ;;  %v895_v11 = vld [vmem:[%s1192_s1 + $0x50] sm:$0xff]  ;;  %s796_s26 = sshll.u32 %s1207_s10, 2 }
  0x12   : > { %v886_v12 = vld [vmem:[%s1192_s1 + $0x8] sm:$0xff]  ;;  %v885_v14 = vld [vmem:[%s1192_s1] sm:$0xff]  ;;  %v807_v18 = vld [vmem:[%s254_s7 + $0x10] sm:$0xf]  ;;  %s1148_s29 = scalar_lea.vmem %s1195_s4, %s796_s26 }
  0x13   : > { %436 = vmatpush.bf16.msra.mxu0 %v891_v2  ;;  %902 = vmatpush.bf16.msra.mxu2 %v891_v2  ;;  %v894_v13 = vld [vmem:[%s1192_s1 + $0x48] sm:$0xff]  ;;  %v893_v15 = vld [vmem:[%s1192_s1 + $0x40] sm:$0xff]  ;;  %v884_v19 = vld [vmem:[%s254_s7 + $0x14] sm:$0xf0] }
  0x14   : > { %455 = vmatpush.bf16.msra.mxu1 %v899_v3  ;;  %910 = vmatpush.bf16.msra.mxu3 %v899_v3  ;;  %v799_v16 = vld [vmem:[%s254_s7] sm:$0xf]  ;;  %v882_v17 = vld [vmem:[%s254_s7 + $0x4] sm:$0xf0]  ;;  %v881_v20 = vld [vmem:[%s254_s7 + $0x4] sm:$0xf]  ;;  %v808_v25 = vor.u32 %v884_v19, %v807_v18 }
  0x15   : > { %v801_v21 = vld [vmem:[%s254_s7 + $0x8] sm:$0xf0]  ;;  %v883_v22 = vld [vmem:[%s254_s7 + $0x14] sm:$0xf]  ;;  %v809_v23 = vld [vmem:[%s254_s7 + $0x18] sm:$0xf0]  ;;  %v800_v24 = vor.u32 %v882_v17, %v799_v16 }
  0x16   : > { %v804_v26 = vor.u32 %v881_v20, %v801_v21  ;;  %v812_v27 = vor.u32 %v883_v22, %v809_v23  ;;  %v473_v28 = vld [vmem:[%s1111_s23] sm:$0xff]  ;;  %v474_v29 = vld [vmem:[%s1111_s23 + $0x8] sm:$0xff]  ;;  %v475_v30 = vld [vmem:[%s1111_s23 + $0x10] sm:$0xff] }
  0x17   : > { %437 = vmatpush.bf16.msra.mxu0 %v890_v4  ;;  %903 = vmatpush.bf16.msra.mxu2 %v890_v4  ;;  %v476_v31 = vld [vmem:[%s1111_s23 + $0x18] sm:$0xff]  ;;  %v957_v32 = vld [vmem:[%s1193_s2] ss:$0 sm:$0xff]  ;;  %v489_v33 = vadd.f32 %v475_v30, %v473_v28  ;;  %v482_v38 = vld [vmem:[%s1111_s23 + $0x48] sm:$0xff] }
  0x18   : > { %456 = vmatpush.bf16.msra.mxu1 %v898_v5  ;;  %911 = vmatpush.bf16.msra.mxu3 %v898_v5  ;;  %v490_v34 = vadd.f32 %v476_v31, %v474_v29  ;;  %v481_v36 = vld [vmem:[%s1111_s23 + $0x40] sm:$0xff]  ;;  %v483_v39 = vld [vmem:[%s1111_s23 + $0x50] sm:$0xff]  ;;  %v484_v40 = vld [vmem:[%s1111_s23 + $0x58] sm:$0xff] }
  0x19   : > { %v493_v44 = vadd.f32 %v483_v39, %v481_v36  ;;  %v494_v45 = vadd.f32 %v484_v40, %v482_v38  ;;  %v477_v46 = vld [vmem:[%s1111_s23 + $0x20] sm:$0xff]  ;;  %v478_v48 = vld [vmem:[%s1111_s23 + $0x28] sm:$0xff]  ;;  %v479_v49 = vld [vmem:[%s1111_s23 + $0x30] sm:$0xff] }
  0x1a   : > { %v501_v43 = vadd.f32 %v490_v34, %v489_v33  ;;  %v480_v50 = vld [vmem:[%s1111_s23 + $0x38] sm:$0xff]  ;;  %v485_v54 = vld [vmem:[%s1111_s23 + $0x60] sm:$0xff]  ;;  %v487_v55 = vld [vmem:[%s1111_s23 + $0x70] sm:$0xff]  ;;  %v491_v58 = vadd.f32 %v479_v49, %v477_v46 }
  0x1b   : > { %438 = vmatpush.bf16.msra.mxu0 %v889_v6  ;;  %904 = vmatpush.bf16.msra.mxu2 %v889_v6  ;;  %v503_v56 = vadd.f32 %v494_v45, %v493_v44  ;;  %v492_v59 = vadd.f32 %v480_v50, %v478_v48  ;;  %v486_v60 = vld [vmem:[%s1111_s23 + $0x68] sm:$0xff]  ;;  %v488_v61 = vld [vmem:[%s1111_s23 + $0x78] sm:$0xff]  ;;  %v495_v6 = vadd.f32 %v487_v55, %v485_v54 }
  0x1c   : > { %457 = vmatpush.bf16.msra.mxu1 %v897_v7  ;;  %912 = vmatpush.bf16.msra.mxu3 %v897_v7 }
  0x1d   : > { %v502_v18 = vadd.f32 %v492_v59, %v491_v58 }
  0x1f   : > { %439 = vmatpush.bf16.msra.mxu0 %v888_v8  ;;  %905 = vmatpush.bf16.msra.mxu2 %v888_v8 }
  0x20   : > { %458 = vmatpush.bf16.msra.mxu1 %v896_v9  ;;  %913 = vmatpush.bf16.msra.mxu3 %v896_v9 }
  0x23   : > { %440 = vmatpush.bf16.msra.mxu0 %v887_v10  ;;  %906 = vmatpush.bf16.msra.mxu2 %v887_v10  ;;  %v496_v10 = vadd.f32 %v488_v61, %v486_v60 }
  0x24   : > { %459 = vmatpush.bf16.msra.mxu1 %v895_v11  ;;  %914 = vmatpush.bf16.msra.mxu3 %v895_v11 }
  0x27   : > { %441 = vmatpush.bf16.msra.mxu0 %v886_v12  ;;  %907 = vmatpush.bf16.msra.mxu2 %v886_v12 }
  0x28   : > { %460 = vmatpush.bf16.msra.mxu1 %v894_v13  ;;  %915 = vmatpush.bf16.msra.mxu3 %v894_v13 }
  0x2b   : > { %442 = vmatpush.bf16.msra.mxu0 %v885_v14  ;;  %908 = vmatpush.bf16.msra.mxu2 %v885_v14 }
  0x2c   : > { %461 = vmatpush.bf16.msra.mxu1 %v893_v15  ;;  %916 = vmatpush.bf16.msra.mxu3 %v893_v15 }
  0x2e   : > { %443 = vmatmul.bf16.vlgmr.msra.gmra.mxu0 %v800_v24  ;;  %448 = vmatmul.bf16.vlgmr.msra.gmra.mxu2 %v808_v25 }
  0x2f   : > { %462 = vmatmul.bf16.vlgmr.msra.gmra.mxu1 %v804_v26  ;;  %467 = vmatmul.bf16.vlgmr.msra.gmra.mxu3 %v812_v27  ;;  %v1138_v27 = vadd.f32 %v496_v10, %v495_v6 }
  0xab   : > { %v444_v35 = vpop.f32.mrf.mxu0 }
  0xac   : > { %v445_v37 = vadd.f32 %v957_v32, %v444_v35  ;;  %v463_v41 = vpop.f32.mrf.mxu1 }
  0xae   : > { %v464_v42 = vadd.f32 %v463_v41, %v445_v37 }
  0xb0   : > { %v497_v47 = vmul.f32 4.0, %v464_v42 }
  0xb1   : > { %v449_v51 = vpop.f32.mrf.mxu2 }
  0xb2   : > { %v505_v52 = vadd.f32 %v501_v43, %v497_v47  ;;  %v450_v53 = vadd.f32 %v957_v32, %v449_v51  ;;  %v468_v2 = vpop.f32.mrf.mxu3 }
  0xb3   : > { %v446_v57 = vpop.f32.mrf.mxu0 }
  0xb4   : > { %v513_v62 = vrot.slane %v505_v52, 2  ;;  %v514_v63 = vrot.slane %v505_v52, 4  ;;  %v515_v0 = vrot.slane %v505_v52, 6  ;;  %v538_v1 = vsel %vm537_vm0, %v505_v52, 0.0  ;;  %v465_v15 = vpop.f32.mrf.mxu1 }
  0xb5   : > { %v539_v3 = vrot.slane %v538_v1, 4  ;;  %v469_v4 = vadd.f32 %v468_v2, %v450_v53  ;;  %v447_v5 = vadd.f32 %v957_v32, %v446_v57 }
  0xb6   : > { %v545_v7 = vsel %vm537_vm0, %v513_v62, 0.0  ;;  %v552_v8 = vsel %vm537_vm0, %v514_v63, 0.0  ;;  %v559_v9 = vsel %vm537_vm0, %v515_v0, 0.0 }
  0xb7   : > { %v540_v11 = vadd.f32 %v539_v3, %v538_v1  ;;  %v546_v12 = vrot.slane %v545_v7, 4  ;;  %v553_v13 = vrot.slane %v552_v8, 4  ;;  %v560_v14 = vrot.slane %v559_v9, 4 }
  0xb8   : > { %v499_v16 = vmul.f32 4.0, %v469_v4  ;;  %v466_v17 = vadd.f32 %v465_v15, %v447_v5 }
  0xb9   : > { %v541_v19 = vrot.slane %v540_v11, 2  ;;  %v547_v20 = vadd.f32 %v546_v12, %v545_v7  ;;  %v554_v21 = vadd.f32 %v553_v13, %v552_v8  ;;  %v561_v22 = vadd.f32 %v560_v14, %v559_v9  ;;  %v451_v23 = vpop.f32.mrf.mxu2 }
  0xba   : > { %v507_v24 = vadd.f32 %v503_v56, %v499_v16  ;;  %v498_v25 = vmul.f32 4.0, %v466_v17  ;;  %v1136_v26 = vadd.f32 %v957_v32, %v451_v23 }
  0xbb   : > { %v542_v28 = vadd.f32 %v541_v19, %v540_v11  ;;  %v548_v29 = vrot.slane %v547_v20, 2  ;;  %v555_v30 = vrot.slane %v554_v21, 2  ;;  %v562_v31 = vrot.slane %v561_v22, 2 }
  0xbc   : > { %v519_v33 = vrot.slane %v507_v24, 2  ;;  %v520_v34 = vrot.slane %v507_v24, 4  ;;  %v521_v35 = vrot.slane %v507_v24, 6  ;;  %v594_v36 = vsel %vm537_vm0, %v507_v24, 0.0  ;;  %v470_v24 = vpop.f32.mrf.mxu3 }
  0xbd   : > { %v543_v37 = vrot.slane %v542_v28, 1  ;;  %v549_v38 = vadd.f32 %v548_v29, %v547_v20  ;;  %v556_v39 = vadd.f32 %v555_v30, %v554_v21  ;;  %v563_v40 = vadd.f32 %v562_v31, %v561_v22 }
  0xbe   : > { %v595_v41 = vrot.slane %v594_v36, 4  ;;  %v601_v32 = vsel %vm537_vm0, %v519_v33, 0.0  ;;  %v608_v42 = vsel %vm537_vm0, %v520_v34, 0.0  ;;  %v615_v43 = vsel %vm537_vm0, %v521_v35, 0.0 }
  0xbf   : > { %v544_v44 = vadd.f32 %v543_v37, %v542_v28  ;;  %v550_v45 = vrot.slane %v549_v38, 1  ;;  %v557_v46 = vrot.slane %v556_v39, 1  ;;  %v564_v47 = vrot.slane %v563_v40, 1 }
  0xc0   : > { %v596_v48 = vadd.f32 %v595_v41, %v594_v36  ;;  %v602_v49 = vrot.slane %v601_v32, 4  ;;  %v609_v50 = vrot.slane %v608_v42, 4  ;;  %v616_v51 = vrot.slane %v615_v43, 4 }
  0xc1   : > { %v551_v52 = vadd.f32 %v550_v45, %v549_v38  ;;  %v558_v53 = vadd.f32 %v557_v46, %v556_v39  ;;  %v565_v54 = vadd.f32 %v564_v47, %v563_v40  ;;  %v506_v55 = vadd.f32 %v502_v18, %v498_v25 }
  0xc2   : > { %v597_v56 = vrot.slane %v596_v48, 2  ;;  %v603_v57 = vadd.f32 %v602_v49, %v601_v32  ;;  %v610_v58 = vadd.f32 %v609_v50, %v608_v42  ;;  %v617_v59 = vadd.f32 %v616_v51, %v615_v43 }
  0xc3   : > { %v667_v60 = vsel %vm666_vm1, %v551_v52, %v544_v44  ;;  %v516_v61 = vrot.slane %v506_v55, 2  ;;  %v517_v62 = vrot.slane %v506_v55, 4  ;;  %v518_v63 = vrot.slane %v506_v55, 6 }
  0xc4   : > { %v669_v0 = vsel %vm668_vm2, %v558_v53, %v667_v60  ;;  %v598_v1 = vadd.f32 %v597_v56, %v596_v48  ;;  %v604_v2 = vrot.slane %v603_v57, 2  ;;  %v611_v3 = vrot.slane %v610_v58, 2 }
  0xc5   : > { %v671_v4 = vsel %vm670_vm3, %v565_v54, %v669_v0  ;;  %v618_v5 = vrot.slane %v617_v59, 2  ;;  %v566_v6 = vsel %vm537_vm0, %v506_v55, 0.0  ;;  %v573_v7 = vsel %vm537_vm0, %v516_v61, 0.0 }
  0xc6   : > { %685 = vst [vmem:[%s1148_s29] sm:$0xf] %v671_v4  ;;  %v599_v8 = vrot.slane %v598_v1, 1  ;;  %v605_v9 = vadd.f32 %v604_v2, %v603_v57  ;;  %v612_v10 = vadd.f32 %v611_v3, %v610_v58  ;;  %v567_v11 = vrot.slane %v566_v6, 4 }
  0xc7   : > { %v619_v12 = vadd.f32 %v618_v5, %v617_v59  ;;  %v574_v13 = vrot.slane %v573_v7, 4  ;;  %v580_v14 = vsel %vm537_vm0, %v517_v62, 0.0  ;;  %v587_v15 = vsel %vm537_vm0, %v518_v63, 0.0 }
  0xc8   : > { %v600_v16 = vadd.f32 %v599_v8, %v598_v1  ;;  %v606_v17 = vrot.slane %v605_v9, 1  ;;  %v613_v18 = vrot.slane %v612_v10, 1  ;;  %v568_v19 = vadd.f32 %v567_v11, %v566_v6 }
  0xc9   : > { %v620_v20 = vrot.slane %v619_v12, 1  ;;  %v575_v21 = vadd.f32 %v574_v13, %v573_v7  ;;  %v581_v22 = vrot.slane %v580_v14, 4  ;;  %v588_v23 = vrot.slane %v587_v15, 4 }
  0xca   : > { %v607_v25 = vadd.f32 %v606_v17, %v605_v9  ;;  %v614_v28 = vadd.f32 %v613_v18, %v612_v10  ;;  %v569_v29 = vrot.slane %v568_v19, 2  ;;  %v471_v30 = vadd.f32 %v470_v24, %v1136_v26 }
  0xcb   : > { %v576_v31 = vrot.slane %v575_v21, 2  ;;  %v582_v33 = vadd.f32 %v581_v22, %v580_v14  ;;  %v589_v34 = vadd.f32 %v588_v23, %v587_v15  ;;  %v621_v35 = vadd.f32 %v620_v20, %v619_v12 }
  0xcc   : > { %v675_v36 = vsel %vm666_vm1, %v607_v25, %v600_v16  ;;  %v570_v37 = vadd.f32 %v569_v29, %v568_v19  ;;  %v500_v38 = vmul.f32 4.0, %v471_v30 }
  0xcd   : > { %v676_v39 = vsel %vm668_vm2, %v614_v28, %v675_v36  ;;  %v577_v40 = vadd.f32 %v576_v31, %v575_v21  ;;  %v583_v41 = vrot.slane %v582_v33, 2  ;;  %v590_v32 = vrot.slane %v589_v34, 2 }
  0xce   : > { %v677_v42 = vsel %vm670_vm3, %v621_v35, %v676_v39  ;;  %v571_v43 = vrot.slane %v570_v37, 1  ;;  %v508_v44 = vadd.f32 %v1138_v27, %v500_v38 }
  0xcf   : > { %687 = vst [vmem:[%s1148_s29 + $0x8] sm:$0xf] %v677_v42  ;;  %v578_v26 = vrot.slane %v577_v40, 1  ;;  %v584_v45 = vadd.f32 %v583_v41, %v582_v33  ;;  %v591_v46 = vadd.f32 %v590_v32, %v589_v34 }
  0xd0   : > { %v572_v47 = vadd.f32 %v571_v43, %v570_v37  ;;  %v522_v48 = vrot.slane %v508_v44, 2  ;;  %v523_v49 = vrot.slane %v508_v44, 4  ;;  %v524_v50 = vrot.slane %v508_v44, 6 }
  0xd1   : > { %v579_v51 = vadd.f32 %v578_v26, %v577_v40  ;;  %v585_v52 = vrot.slane %v584_v45, 1  ;;  %v592_v53 = vrot.slane %v591_v46, 1  ;;  %v622_v54 = vsel %vm537_vm0, %v508_v44, 0.0 }
  0xd2   : > { %v623_v55 = vrot.slane %v622_v54, 4  ;;  %v629_v56 = vsel %vm537_vm0, %v522_v48, 0.0  ;;  %v636_v57 = vsel %vm537_vm0, %v523_v49, 0.0  ;;  %v643_v27 = vsel %vm537_vm0, %v524_v50, 0.0 }
  0xd3   : > { %v586_v58 = vadd.f32 %v585_v52, %v584_v45  ;;  %v672_v59 = vsel %vm666_vm1, %v579_v51, %v572_v47  ;;  %v630_v60 = vrot.slane %v629_v56, 4  ;;  %v593_v61 = vadd.f32 %v592_v53, %v591_v46 }
  0xd4   : > { %v624_v62 = vadd.f32 %v623_v55, %v622_v54  ;;  %v637_v63 = vrot.slane %v636_v57, 4  ;;  %v644_v0 = vrot.slane %v643_v27, 4 }
  0xd5   : > { %v673_v1 = vsel %vm668_vm2, %v586_v58, %v672_v59  ;;  %v631_v2 = vadd.f32 %v630_v60, %v629_v56 }
  0xd6   : > { %v674_v3 = vsel %vm670_vm3, %v593_v61, %v673_v1  ;;  %v625_v4 = vrot.slane %v624_v62, 2  ;;  %v638_v5 = vadd.f32 %v637_v63, %v636_v57  ;;  %v645_v6 = vadd.f32 %v644_v0, %v643_v27 }
  0xd7   : > { %686 = vst [vmem:[%s1148_s29 + $0x4] sm:$0xf] %v674_v3  ;;  %v632_v7 = vrot.slane %v631_v2, 2 }
  0xd8   : > { %v626_v8 = vadd.f32 %v625_v4, %v624_v62  ;;  %v639_v9 = vrot.slane %v638_v5, 2  ;;  %v646_v10 = vrot.slane %v645_v6, 2 }
  0xd9   : > { %v633_v11 = vadd.f32 %v632_v7, %v631_v2 }
  0xda   : > { %v627_v12 = vrot.slane %v626_v8, 1  ;;  %v640_v13 = vadd.f32 %v639_v9, %v638_v5  ;;  %v647_v14 = vadd.f32 %v646_v10, %v645_v6 }
  0xdb   : > { %v634_v15 = vrot.slane %v633_v11, 1 }
  0xdc   : > { %v641_v16 = vrot.slane %v640_v13, 1  ;;  %v648_v17 = vrot.slane %v647_v14, 1  ;;  %v628_v18 = vadd.f32 %v627_v12, %v626_v8 }
  0xdd   : > { %v635_v19 = vadd.f32 %v634_v15, %v633_v11 }
  0xde   : > { %v642_v20 = vadd.f32 %v641_v16, %v640_v13  ;;  %v649_v21 = vadd.f32 %v648_v17, %v647_v14 }
  0xdf   : > { %v678_v22 = vsel %vm666_vm1, %v635_v19, %v628_v18 }
  0xe0   : > { %v679_v23 = vsel %vm668_vm2, %v642_v20, %v678_v22 }
  0xe1   : > { %v680_v24 = vsel %vm670_vm3, %v649_v21, %v679_v23 }
  0xe2   : > { %688 = vst [vmem:[%s1148_s29 + $0xc] sm:$0xf] %v680_v24 }
  0xe3 PF: > { %s14_s19 = sadd.s32 1, %s996_s19   ;;  %s1196_s15 = smov %s988_s17 }
  0xe4   : > { %p11_p6 = scmp.ge.s32.totalorder %s14_s19, 6   ;;  %s1197_s16 = smov %s992_s18 }
  0xe5   : > { %s1198_s17 = smov %s1201_s20  ;;  %s1199_s18 = smov %s1205_s21 }
  0xe6   :  { %13 = sbr.rel (!%p11_p6) target bundleno = 3 (0x3), region = 69 }

// kernel: resfpn_forward.6
= control target key start
LH: loop header
LB: loop body
LE: loop exit
PB: predicated region body
PF: predicated region fallthrough
CT: control target
= control target key end

     0   :  { %s1705_s18 = smov 0   ;;  %s1707_s19 = smov 0   ;;  %s2235_s0 = inlined_call_operand.vmem [shape: f32[32,512], index: 0, kind: input, shape index: {}]   ;;  %s2236_s1 = inlined_call_operand.vmem [shape: bf16[512,256], index: 1, kind: input, shape index: {}]   ;;  %s2237_s2 = inlined_call_operand.vmem [shape: f32[1,256], index: 2, kind: input, shape index: {}]   ;;  %s2238_s3 = inlined_call_operand.vmem [shape: f32[8,2,4,512], index: 3, kind: input, shape index: {}]   ;;  %s2239_s4 = inlined_call_operand.vmem [shape: bf16[8,2,4,512], index: 4, kind: output, shape index: {0}]   ;;  %s2240_s5 = inlined_call_operand.vmem [shape: f32[8,2,256], index: 5, kind: output, shape index: {1}]  }
   0x1   :  { %s1709_s20 = smov 0   ;;  %s1711_s21 = smov 0  }
   0x2   :  { %s1713_s22 = smov 0  }
   0x3 LB: > { %s25_s23 = sadd.s32 1, %s1665_s20  ;;  %s28_s24 = sadd.s32 1, %s1669_s21  ;;  %s1673_s22 = sphi %s1713_s22, %s16_s22   ;;  %s1669_s21 = sphi %s1711_s21, %s2244_s21   ;;  %s1665_s20 = sphi %s1709_s20, %s2243_s20   ;;  %s1661_s19 = sphi %s1707_s19, %s2242_s19   ;;  %s1657_s18 = sphi %s1705_s18, %s2241_s18  }
   0x4   : > { %p26_p0 = scmp.ge.s32.totalorder %s25_s23, 2  ;;  %p1253_p1 = scmp.ge.s32.totalorder %s1673_s22, 1 }
   0x5   : > { %p238_p2 = scmp.lt.s32.totalorder %s1673_s22, 5 }
   0x6   : > { %s2246_s23 = smov (%p26_p0, %s25_s23), 0  ;;  %s2248_s24 = smov (!%p26_p0, %s28_s24), %s1669_s21 }
   0x7   : > { %p239_p3 = pnand %p1253_p1, %p238_p2  ;;  %p30_p4 = scmp.ge.s32.totalorder %s2248_s24, 2 }
   0x8   : > { %s1254_s8 = sshll.u32 (!%p239_p3), %s1661_s19, 1 }
   0x9   : > { %s2250_s24 = smov (%p30_p4, %s2248_s24), 0  ;;  %242 = sbr.rel (%p239_p3) target bundleno = 288 (0x120), region = 36 }
   0xa   : > { %s1951_s15 = sadd.s32 (!%p239_p3), %s1657_s18, %s1254_s8 }
   0xb   : > { %p289_p5 = scmp.lt.s32.totalorder (!%p239_p3), %s1951_s15, 3 }
   0xe   : > { %v1327_v0 = vld [vmem:[%s2236_s1 + $0x70] sm:$0xf]  ;;  %v1546_v1 = vld [vmem:[%s2236_s1 + $0x74] sm:$0xf0]  ;;  %v1319_v11 = vld [vmem:[%s2236_s1 + $0x60] sm:$0xf] }
   0xf   : > { %v1391_v2 = vld [vmem:[%s2236_s1 + $0xf0] sm:$0xf]  ;;  %v1328_v3 = vor.u32 %v1546_v1, %v1327_v0  ;;  %v1562_v4 = vld [vmem:[%s2236_s1 + $0xf4] sm:$0xf0]  ;;  %v1544_v13 = vld [vmem:[%s2236_s1 + $0x64] sm:$0xf0] }
  0x10   : > { %v1455_v5 = vld [vmem:[%s2236_s1 + $0x170] sm:$0xf]  ;;  %v1578_v6 = vld [vmem:[%s2236_s1 + $0x174] sm:$0xf0]  ;;  %v1392_v7 = vor.u32 %v1562_v4, %v1391_v2  ;;  %v1383_v14 = vld [vmem:[%s2236_s1 + $0xe0] sm:$0xf]  ;;  %v1320_v16 = vor.u32 %v1544_v13, %v1319_v11 }
  0x11   : > { %v1456_v8 = vor.u32 %v1578_v6, %v1455_v5  ;;  %v1519_v9 = vld [vmem:[%s2236_s1 + $0x1f0] sm:$0xf]  ;;  %v1594_v10 = vld [vmem:[%s2236_s1 + $0x1f4] sm:$0xf0]  ;;  %727 = vmatpush.bf16.msra.mxu0 %v1328_v3  ;;  %v1560_v15 = vld [vmem:[%s2236_s1 + $0xe4] sm:$0xf0] }
  0x12   : > { %v1520_v12 = vor.u32 %v1594_v10, %v1519_v9  ;;  %740 = vmatpush.bf16.msra.mxu1 %v1392_v7  ;;  %v1384_v17 = vor.u32 %v1560_v15, %v1383_v14  ;;  %v1447_v18 = vld [vmem:[%s2236_s1 + $0x160] sm:$0xf]  ;;  %v1576_v19 = vld [vmem:[%s2236_s1 + $0x164] sm:$0xf0]  ;;  %v1311_v23 = vld [vmem:[%s2236_s1 + $0x50] sm:$0xf] }
  0x13   : > { %753 = vmatpush.bf16.msra.mxu2 %v1456_v8  ;;  %v1511_v20 = vld [vmem:[%s2236_s1 + $0x1e0] sm:$0xf]  ;;  %v1448_v21 = vor.u32 %v1576_v19, %v1447_v18  ;;  %v1592_v22 = vld [vmem:[%s2236_s1 + $0x1e4] sm:$0xf0]  ;;  %v1542_v24 = vld [vmem:[%s2236_s1 + $0x54] sm:$0xf0] }
  0x14   : > { %766 = vmatpush.bf16.msra.mxu3 %v1520_v12  ;;  %v1512_v25 = vor.u32 %v1592_v22, %v1511_v20  ;;  %v1375_v26 = vld [vmem:[%s2236_s1 + $0xd0] sm:$0xf]  ;;  %v1558_v27 = vld [vmem:[%s2236_s1 + $0xd4] sm:$0xf0]  ;;  %v1312_v29 = vor.u32 %v1542_v24, %v1311_v23  ;;  %v1303_v35 = vld [vmem:[%s2236_s1 + $0x40] sm:$0xf] }
  0x15   : > { %v1439_v28 = vld [vmem:[%s2236_s1 + $0x150] sm:$0xf]  ;;  %728 = vmatpush.bf16.msra.mxu0 %v1320_v16  ;;  %v1574_v30 = vld [vmem:[%s2236_s1 + $0x154] sm:$0xf0]  ;;  %v1376_v33 = vor.u32 %v1558_v27, %v1375_v26  ;;  %v1540_v36 = vld [vmem:[%s2236_s1 + $0x44] sm:$0xf0] }
  0x16   : > { %v1503_v31 = vld [vmem:[%s2236_s1 + $0x1d0] sm:$0xf]  ;;  %v1590_v32 = vld [vmem:[%s2236_s1 + $0x1d4] sm:$0xf0]  ;;  %741 = vmatpush.bf16.msra.mxu1 %v1384_v17  ;;  %v1440_v34 = vor.u32 %v1574_v30, %v1439_v28  ;;  %v1367_v37 = vld [vmem:[%s2236_s1 + $0xc0] sm:$0xf]  ;;  %v1304_v44 = vor.u32 %v1540_v36, %v1303_v35 }
  0x17   : > { %754 = vmatpush.bf16.msra.mxu2 %v1448_v21  ;;  %v1504_v38 = vor.u32 %v1590_v32, %v1503_v31  ;;  %v1556_v39 = vld [vmem:[%s2236_s1 + $0xc4] sm:$0xf0]  ;;  %v1431_v40 = vld [vmem:[%s2236_s1 + $0x140] sm:$0xf]  ;;  %v1295_v47 = vld [vmem:[%s2236_s1 + $0x30] sm:$0xf] }
  0x18   : > { %767 = vmatpush.bf16.msra.mxu3 %v1512_v25  ;;  %v1572_v41 = vld [vmem:[%s2236_s1 + $0x144] sm:$0xf0]  ;;  %v1495_v42 = vld [vmem:[%s2236_s1 + $0x1c0] sm:$0xf]  ;;  %v1368_v45 = vor.u32 %v1556_v39, %v1367_v37  ;;  %v1538_v48 = vld [vmem:[%s2236_s1 + $0x34] sm:$0xf0] }
  0x19   : > { %v1588_v43 = vld [vmem:[%s2236_s1 + $0x1c4] sm:$0xf0]  ;;  %729 = vmatpush.bf16.msra.mxu0 %v1312_v29  ;;  %v1432_v46 = vor.u32 %v1572_v41, %v1431_v40  ;;  %v1359_v49 = vld [vmem:[%s2236_s1 + $0xb0] sm:$0xf]  ;;  %v1554_v51 = vld [vmem:[%s2236_s1 + $0xb4] sm:$0xf0]  ;;  %v1296_v56 = vor.u32 %v1538_v48, %v1295_v47 }
  0x1a   : > { %742 = vmatpush.bf16.msra.mxu1 %v1376_v33  ;;  %v1496_v50 = vor.u32 %v1588_v43, %v1495_v42  ;;  %v1423_v52 = vld [vmem:[%s2236_s1 + $0x130] sm:$0xf]  ;;  %v1570_v53 = vld [vmem:[%s2236_s1 + $0x134] sm:$0xf0]  ;;  %v1360_v57 = vor.u32 %v1554_v51, %v1359_v49  ;;  %v1287_v59 = vld [vmem:[%s2236_s1 + $0x20] sm:$0xf] }
  0x1b   : > { %755 = vmatpush.bf16.msra.mxu2 %v1440_v34  ;;  %v1487_v54 = vld [vmem:[%s2236_s1 + $0x1b0] sm:$0xf]  ;;  %v1586_v55 = vld [vmem:[%s2236_s1 + $0x1b4] sm:$0xf0]  ;;  %v1424_v58 = vor.u32 %v1570_v53, %v1423_v52  ;;  %v1536_v60 = vld [vmem:[%s2236_s1 + $0x24] sm:$0xf0] }
  0x1c   : > { %768 = vmatpush.bf16.msra.mxu3 %v1504_v38  ;;  %v1351_v61 = vld [vmem:[%s2236_s1 + $0xa0] sm:$0xf]  ;;  %v1488_v62 = vor.u32 %v1586_v55, %v1487_v54  ;;  %v1552_v63 = vld [vmem:[%s2236_s1 + $0xa4] sm:$0xf0]  ;;  %v1288_v4 = vor.u32 %v1536_v60, %v1287_v59  ;;  %v1279_v7 = vld [vmem:[%s2236_s1 + $0x10] sm:$0xf] }
  0x1d   : > { %730 = vmatpush.bf16.msra.mxu0 %v1304_v44  ;;  %v1415_v0 = vld [vmem:[%s2236_s1 + $0x120] sm:$0xf]  ;;  %v1568_v1 = vld [vmem:[%s2236_s1 + $0x124] sm:$0xf0]  ;;  %v1352_v5 = vor.u32 %v1552_v63, %v1351_v61  ;;  %v1534_v8 = vld [vmem:[%s2236_s1 + $0x14] sm:$0xf0] }
  0x1e   : > { %743 = vmatpush.bf16.msra.mxu1 %v1368_v45  ;;  %v1479_v2 = vld [vmem:[%s2236_s1 + $0x1a0] sm:$0xf]  ;;  %v1584_v3 = vld [vmem:[%s2236_s1 + $0x1a4] sm:$0xf0]  ;;  %v1416_v6 = vor.u32 %v1568_v1, %v1415_v0  ;;  %v1343_v9 = vld [vmem:[%s2236_s1 + $0x90] sm:$0xf]  ;;  %v1280_v16 = vor.u32 %v1534_v8, %v1279_v7 }
  0x1f   : > { %756 = vmatpush.bf16.msra.mxu2 %v1432_v46  ;;  %v1480_v10 = vor.u32 %v1584_v3, %v1479_v2  ;;  %v1550_v11 = vld [vmem:[%s2236_s1 + $0x94] sm:$0xf0]  ;;  %v1407_v12 = vld [vmem:[%s2236_s1 + $0x110] sm:$0xf]  ;;  %v1271_v17 = vld [vmem:[%s2236_s1] sm:$0xf] }
  0x20   : > { %769 = vmatpush.bf16.msra.mxu3 %v1496_v50  ;;  %v1566_v13 = vld [vmem:[%s2236_s1 + $0x114] sm:$0xf0]  ;;  %v1471_v14 = vld [vmem:[%s2236_s1 + $0x190] sm:$0xf]  ;;  %v1532_v18 = vld [vmem:[%s2236_s1 + $0x4] sm:$0xf0]  ;;  %v1344_v20 = vor.u32 %v1550_v11, %v1343_v9 }
  0x21   : > { %731 = vmatpush.bf16.msra.mxu0 %v1296_v56  ;;  %v1582_v15 = vld [vmem:[%s2236_s1 + $0x194] sm:$0xf0]  ;;  %v1335_v19 = vld [vmem:[%s2236_s1 + $0x80] sm:$0xf]  ;;  %v1408_v21 = vor.u32 %v1566_v13, %v1407_v12  ;;  %v1548_v22 = vld [vmem:[%s2236_s1 + $0x84] sm:$0xf0]  ;;  %v1272_v31 = vor.u32 %v1532_v18, %v1271_v17 }
  0x22   : > { %744 = vmatpush.bf16.msra.mxu1 %v1360_v57  ;;  %v1399_v23 = vld [vmem:[%s2236_s1 + $0x100] sm:$0xf]  ;;  %v1564_v24 = vld [vmem:[%s2236_s1 + $0x104] sm:$0xf0]  ;;  %v1472_v25 = vor.u32 %v1582_v15, %v1471_v14  ;;  %v1545_v28 = vld [vmem:[%s2236_s1 + $0x74] sm:$0xf]  ;;  %v1336_v35 = vor.u32 %v1548_v22, %v1335_v19 }
  0x23   : > { %757 = vmatpush.bf16.msra.mxu2 %v1424_v58  ;;  %v1463_v26 = vld [vmem:[%s2236_s1 + $0x180] sm:$0xf]  ;;  %v1580_v27 = vld [vmem:[%s2236_s1 + $0x184] sm:$0xf0]  ;;  %v1329_v29 = vld [vmem:[%s2236_s1 + $0x78] sm:$0xf0]  ;;  %v1400_v36 = vor.u32 %v1564_v24, %v1399_v23 }
  0x24   : > { %770 = vmatpush.bf16.msra.mxu3 %v1488_v62  ;;  %v1561_v30 = vld [vmem:[%s2236_s1 + $0xf4] sm:$0xf]  ;;  %v1393_v32 = vld [vmem:[%s2236_s1 + $0xf8] sm:$0xf0]  ;;  %v1464_v39 = vor.u32 %v1580_v27, %v1463_v26  ;;  %v1332_v40 = vor.u32 %v1545_v28, %v1329_v29  ;;  %v1543_v41 = vld [vmem:[%s2236_s1 + $0x64] sm:$0xf] }
  0x25   : > { %732 = vmatpush.bf16.msra.mxu0 %v1288_v4  ;;  %v1577_v33 = vld [vmem:[%s2236_s1 + $0x174] sm:$0xf]  ;;  %v1457_v34 = vld [vmem:[%s2236_s1 + $0x178] sm:$0xf0]  ;;  %v1321_v42 = vld [vmem:[%s2236_s1 + $0x68] sm:$0xf0]  ;;  %v1396_v43 = vor.u32 %v1561_v30, %v1393_v32 }
  0x26   : > { %745 = vmatpush.bf16.msra.mxu1 %v1352_v5  ;;  %v1593_v37 = vld [vmem:[%s2236_s1 + $0x1f4] sm:$0xf]  ;;  %v1521_v38 = vld [vmem:[%s2236_s1 + $0x1f8] sm:$0xf0]  ;;  %v1460_v44 = vor.u32 %v1577_v33, %v1457_v34  ;;  %v1559_v45 = vld [vmem:[%s2236_s1 + $0xe4] sm:$0xf]  ;;  %v1324_v53 = vor.u32 %v1543_v41, %v1321_v42 }
  0x27   : > { %758 = vmatpush.bf16.msra.mxu2 %v1416_v6  ;;  %v1385_v46 = vld [vmem:[%s2236_s1 + $0xe8] sm:$0xf0]  ;;  %s290_s8 = scalar_select %p289_p5, %s1951_s15, 3  ;;  %v1524_v47 = vor.u32 %v1593_v37, %v1521_v38  ;;  %v1575_v48 = vld [vmem:[%s2236_s1 + $0x164] sm:$0xf]  ;;  %vm842_vm0 = vcmask 1043456  }
  0x28   : > { %771 = vmatpush.bf16.msra.mxu3 %v1480_v10  ;;  %v1449_v49 = vld [vmem:[%s2236_s1 + $0x168] sm:$0xf0]  ;;  %v1591_v50 = vld [vmem:[%s2236_s1 + $0x1e4] sm:$0xf]  ;;  %v1541_v52 = vld [vmem:[%s2236_s1 + $0x54] sm:$0xf]  ;;  %v1388_v57 = vor.u32 %v1559_v45, %v1385_v46 }
  0x29   : > { %733 = vmatpush.bf16.msra.mxu0 %v1280_v16  ;;  %v1513_v51 = vld [vmem:[%s2236_s1 + $0x1e8] sm:$0xf0]  ;;  %s1527_s17 = sshll.u32 %s290_s8, 5  ;;  %v1313_v54 = vld [vmem:[%s2236_s1 + $0x58] sm:$0xf0]  ;;  %v1452_v58 = vor.u32 %v1575_v48, %v1449_v49  ;;  %vm939_vm1 = vcmask 1045508  }
  0x2a   : > { %746 = vmatpush.bf16.msra.mxu1 %v1344_v20  ;;  %s293_s28 = scalar_lea.vmem %s2235_s0, %s1527_s17  ;;  %v1557_v55 = vld [vmem:[%s2236_s1 + $0xd4] sm:$0xf]  ;;  %v1377_v56 = vld [vmem:[%s2236_s1 + $0xd8] sm:$0xf0]  ;;  %v1516_v62 = vor.u32 %v1591_v50, %v1513_v51  ;;  %v1316_v8 = vor.u32 %v1541_v52, %v1313_v54  ;;  %v1539_v11 = vld [vmem:[%s2236_s1 + $0x44] sm:$0xf] }
  0x2b   : > { %759 = vmatpush.bf16.msra.mxu2 %v1408_v21  ;;  %v331_v59 = vld [vmem:[%s293_s28 + $0x10] sm:$0xff]  ;;  %v329_v60 = vld [vmem:[%s293_s28] sm:$0xff]  ;;  %v332_v61 = vld [vmem:[%s293_s28 + $0x18] sm:$0xff]  ;;  %v1380_v9 = vor.u32 %v1557_v55, %v1377_v56  ;;  %vm988_vm2 = vcmask 1043458   ;;  %vm935_vm3 = vcmask 1041408   ;;  %vm1092_vm4 = vcmask 1041409  }
  0x2c   : > { %772 = vmatpush.bf16.msra.mxu3 %v1472_v25  ;;  %v2000_v63 = vpack.c.bf16 %v331_v59, %v331_v59  ;;  %v1573_v0 = vld [vmem:[%s2236_s1 + $0x154] sm:$0xf]  ;;  %v1441_v1 = vld [vmem:[%s2236_s1 + $0x158] sm:$0xf0]  ;;  %v2008_v2 = vpack.c.bf16 %v329_v60, %v329_v60  ;;  %v330_v3 = vld [vmem:[%s293_s28 + $0x8] sm:$0xff]  ;;  %v2016_v6 = vpack.c.bf16 %v332_v61, %v332_v61  ;;  %s1258_s28 = sshll.u32 %s1951_s15, 1 }
  0x2d   : > { %734 = vmatpush.bf16.msra.mxu0 %v1272_v31  ;;  %v1589_v4 = vld [vmem:[%s2236_s1 + $0x1d4] sm:$0xf]  ;;  %v1505_v5 = vld [vmem:[%s2236_s1 + $0x1d8] sm:$0xf0]  ;;  %v2018_v7 = vpack.c.bf16 %v330_v3, %v330_v3  ;;  %v1444_v10 = vor.u32 %v1573_v0, %v1441_v1  ;;  %v1305_v12 = vld [vmem:[%s2236_s1 + $0x48] sm:$0xf0] }
  0x2e   : > { %747 = vmatpush.bf16.msra.mxu1 %v1336_v35  ;;  %v1555_v13 = vld [vmem:[%s2236_s1 + $0xc4] sm:$0xf]  ;;  %v1508_v14 = vor.u32 %v1589_v4, %v1505_v5  ;;  %v1369_v15 = vld [vmem:[%s2236_s1 + $0xc8] sm:$0xf0]  ;;  %v1308_v20 = vor.u32 %v1539_v11, %v1305_v12  ;;  %v1537_v23 = vld [vmem:[%s2236_s1 + $0x34] sm:$0xf] }
  0x2f   : > { %760 = vmatpush.bf16.msra.mxu2 %v1400_v36  ;;  %v1571_v16 = vld [vmem:[%s2236_s1 + $0x144] sm:$0xf]  ;;  %v1433_v17 = vld [vmem:[%s2236_s1 + $0x148] sm:$0xf0]  ;;  %v1372_v21 = vor.u32 %v1555_v13, %v1369_v15  ;;  %v1297_v24 = vld [vmem:[%s2236_s1 + $0x38] sm:$0xf0] }
  0x30   : > { %773 = vmatpush.bf16.msra.mxu3 %v1464_v39  ;;  %735 = vmatmul.bf16.vlgmr.msra.gmra.mxu0 %v2008_v2  ;;  %v1587_v18 = vld [vmem:[%s2236_s1 + $0x1c4] sm:$0xf]  ;;  %v1497_v19 = vld [vmem:[%s2236_s1 + $0x1c8] sm:$0xf0]  ;;  %v1436_v22 = vor.u32 %v1571_v16, %v1433_v17  ;;  %v1553_v25 = vld [vmem:[%s2236_s1 + $0xb4] sm:$0xf]  ;;  %v1300_v32 = vor.u32 %v1537_v23, %v1297_v24 }
  0x31   : > { %779 = vmatpush.bf16.msrb.mxu0 %v1332_v40  ;;  %748 = vmatmul.bf16.vlgmr.msra.gmra.mxu1 %v2018_v7  ;;  %v1500_v26 = vor.u32 %v1587_v18, %v1497_v19  ;;  %v1361_v27 = vld [vmem:[%s2236_s1 + $0xb8] sm:$0xf0]  ;;  %v1569_v28 = vld [vmem:[%s2236_s1 + $0x134] sm:$0xf]  ;;  %v1535_v35 = vld [vmem:[%s2236_s1 + $0x24] sm:$0xf] }
  0x32   : > { %792 = vmatpush.bf16.msrb.mxu1 %v1396_v43  ;;  %761 = vmatmul.bf16.vlgmr.msra.gmra.mxu2 %v2000_v63  ;;  %v1425_v29 = vld [vmem:[%s2236_s1 + $0x138] sm:$0xf0]  ;;  %v1585_v30 = vld [vmem:[%s2236_s1 + $0x1b4] sm:$0xf]  ;;  %v1364_v33 = vor.u32 %v1553_v25, %v1361_v27  ;;  %v1289_v36 = vld [vmem:[%s2236_s1 + $0x28] sm:$0xf0] }
  0x33   : > { %805 = vmatpush.bf16.msrb.mxu2 %v1460_v44  ;;  %774 = vmatmul.bf16.vlgmr.msra.gmra.mxu3 %v2016_v6  ;;  %v1489_v31 = vld [vmem:[%s2236_s1 + $0x1b8] sm:$0xf0]  ;;  %v1428_v34 = vor.u32 %v1569_v28, %v1425_v29  ;;  %v1551_v37 = vld [vmem:[%s2236_s1 + $0xa4] sm:$0xf]  ;;  %v1353_v39 = vld [vmem:[%s2236_s1 + $0xa8] sm:$0xf0]  ;;  %v1292_v44 = vor.u32 %v1535_v35, %v1289_v36 }
  0x34   : > { %818 = vmatpush.bf16.msrb.mxu3 %v1524_v47  ;;  %v1492_v38 = vor.u32 %v1585_v30, %v1489_v31  ;;  %v1567_v40 = vld [vmem:[%s2236_s1 + $0x124] sm:$0xf]  ;;  %v1417_v41 = vld [vmem:[%s2236_s1 + $0x128] sm:$0xf0]  ;;  %v1356_v45 = vor.u32 %v1551_v37, %v1353_v39  ;;  %v1533_v47 = vld [vmem:[%s2236_s1 + $0x14] sm:$0xf] }
  0x35   : > { %780 = vmatpush.bf16.msrb.mxu0 %v1324_v53  ;;  %v1583_v42 = vld [vmem:[%s2236_s1 + $0x1a4] sm:$0xf]  ;;  %v1481_v43 = vld [vmem:[%s2236_s1 + $0x1a8] sm:$0xf0]  ;;  %v1420_v46 = vor.u32 %v1567_v40, %v1417_v41  ;;  %v1281_v48 = vld [vmem:[%s2236_s1 + $0x18] sm:$0xf0] }
  0x36   : > { %793 = vmatpush.bf16.msrb.mxu1 %v1388_v57  ;;  %v1549_v49 = vld [vmem:[%s2236_s1 + $0x94] sm:$0xf]  ;;  %v1484_v50 = vor.u32 %v1583_v42, %v1481_v43  ;;  %v1345_v51 = vld [vmem:[%s2236_s1 + $0x98] sm:$0xf0]  ;;  %v1284_v56 = vor.u32 %v1533_v47, %v1281_v48  ;;  %v1531_v59 = vld [vmem:[%s2236_s1 + $0x4] sm:$0xf] }
  0x37   : > { %806 = vmatpush.bf16.msrb.mxu2 %v1452_v58  ;;  %v1565_v52 = vld [vmem:[%s2236_s1 + $0x114] sm:$0xf]  ;;  %v1409_v53 = vld [vmem:[%s2236_s1 + $0x118] sm:$0xf0]  ;;  %v1348_v57 = vor.u32 %v1549_v49, %v1345_v51  ;;  %v1273_v60 = vld [vmem:[%s2236_s1 + $0x8] sm:$0xf0] }
  0x38   : > { %819 = vmatpush.bf16.msrb.mxu3 %v1516_v62  ;;  %v1581_v54 = vld [vmem:[%s2236_s1 + $0x194] sm:$0xf]  ;;  %v1473_v55 = vld [vmem:[%s2236_s1 + $0x198] sm:$0xf0]  ;;  %v1412_v58 = vor.u32 %v1565_v52, %v1409_v53  ;;  %v1547_v61 = vld [vmem:[%s2236_s1 + $0x84] sm:$0xf] }
  0x39   : > { %781 = vmatpush.bf16.msrb.mxu0 %v1316_v8  ;;  %v1476_v62 = vor.u32 %v1581_v54, %v1473_v55  ;;  %v1337_v0 = vld [vmem:[%s2236_s1 + $0x88] sm:$0xf0]  ;;  %v1563_v1 = vld [vmem:[%s2236_s1 + $0x104] sm:$0xf]  ;;  %v1276_v8 = vor.u32 %v1531_v59, %v1273_v60  ;;  %p299_p6 = scmp.lt.s32.totalorder %s1258_s28, 7  ;;  %vm1094_vm5 = vcmask 1043459  }
  0x3a   : > { %794 = vmatpush.bf16.msrb.mxu1 %v1380_v9  ;;  %v1401_v3 = vld [vmem:[%s2236_s1 + $0x108] sm:$0xf0]  ;;  %v1579_v4 = vld [vmem:[%s2236_s1 + $0x184] sm:$0xf]  ;;  %v1340_v9 = vor.u32 %v1547_v61, %v1337_v0  ;;  %vm1096_vm6 = vcmask 1045509   ;;  %vm1098_vm7 = vcmask 1047559  }
  0x3b   : > { %807 = vmatpush.bf16.msrb.mxu2 %v1444_v10  ;;  %v1465_v5 = vld [vmem:[%s2236_s1 + $0x188] sm:$0xf0]  ;;  %v1404_v10 = vor.u32 %v1563_v1, %v1401_v3  ;;  %s2252_s28 = smov (!%p299_p6, %s1258_s28), 7 }
  0x3c   : > { %820 = vmatpush.bf16.msrb.mxu3 %v1508_v14  ;;  %v1468_v11 = vor.u32 %v1579_v4, %v1465_v5  ;;  %s1528_s6 = sshll.u32 %s2252_s28, 5  ;;  %s1529_s9 = sshll.u32 %s2252_s28, 4 }
  0x3d   : > { %782 = vmatpush.bf16.msrb.mxu0 %v1308_v20  ;;  %s2158_s15 = scalar_lea.vmem %s2238_s3, %s1528_s6  ;;  %s2174_s12 = scalar_lea.vmem %s2239_s4, %s1529_s9 }
  0x3e   : > { %795 = vmatpush.bf16.msrb.mxu1 %v1372_v21  ;;  %v832_v30 = vld [vmem:[%s2158_s15 + $0x8] sm:$0xff]  ;;  %v833_v31 = vld [vmem:[%s2158_s15 + $0x10] sm:$0xff]  ;;  %v838_v53 = vld [vmem:[%s2158_s15 + $0x38] sm:$0xff]  ;;  %s1530_s13 = sshll.u32 %s2252_s28, 2 }
  0x3f   : > { %808 = vmatpush.bf16.msrb.mxu2 %v1436_v22  ;;  %v836_v51 = vld [vmem:[%s2158_s15 + $0x28] sm:$0xff]  ;;  %v837_v52 = vld [vmem:[%s2158_s15 + $0x30] sm:$0xff]  ;;  %s325_s16 = scalar_lea.vmem %s2240_s5, %s1530_s13 }
  0x40   : > { %821 = vmatpush.bf16.msrb.mxu3 %v1500_v26  ;;  %v831_v26 = vld [vmem:[%s2158_s15] sm:$0xff] }
  0x41   : > { %783 = vmatpush.bf16.msrb.mxu0 %v1300_v32  ;;  %v834_v32 = vld [vmem:[%s2158_s15 + $0x18] sm:$0xff]  ;;  %v973_v36 = vadd.f32 %v833_v31, %v831_v26 }
  0x42   : > { %796 = vmatpush.bf16.msrb.mxu1 %v1364_v33  ;;  %v974_v37 = vadd.f32 %v834_v32, %v832_v30 }
  0x43   : > { %809 = vmatpush.bf16.msrb.mxu2 %v1428_v34 }
  0x44   : > { %822 = vmatpush.bf16.msrb.mxu3 %v1492_v38 }
  0x45   : > { %784 = vmatpush.bf16.msrb.mxu0 %v1292_v44  ;;  %v979_v44 = vadd.f32 %v974_v37, %v973_v36 }
  0x46   : > { %797 = vmatpush.bf16.msrb.mxu1 %v1356_v45 }
  0x47   : > { %810 = vmatpush.bf16.msrb.mxu2 %v1420_v46 }
  0x48   : > { %823 = vmatpush.bf16.msrb.mxu3 %v1484_v50  ;;  %v835_v50 = vld [vmem:[%s2158_s15 + $0x20] sm:$0xff] }
  0x49   : > { %785 = vmatpush.bf16.msrb.mxu0 %v1284_v56  ;;  %v975_v56 = vadd.f32 %v837_v52, %v835_v50 }
  0x4a   : > { %798 = vmatpush.bf16.msrb.mxu1 %v1348_v57  ;;  %v976_v57 = vadd.f32 %v838_v53, %v836_v51 }
  0x4b   : > { %811 = vmatpush.bf16.msrb.mxu2 %v1412_v58 }
  0x4c   : > { %824 = vmatpush.bf16.msrb.mxu3 %v1476_v62  ;;  %v980_v3 = vadd.f32 %v976_v57, %v975_v56 }
  0x4d   : > { %786 = vmatpush.bf16.msrb.mxu0 %v1276_v8 }
  0x4e   : > { %799 = vmatpush.bf16.msrb.mxu1 %v1340_v9 }
  0x4f   : > { %812 = vmatpush.bf16.msrb.mxu2 %v1404_v10 }
  0x50   : > { %825 = vmatpush.bf16.msrb.mxu3 %v1468_v11  ;;  %787 = vmatmul.bf16.vlgmr.msrb.gmra.mxu0 %v2008_v2  ;;  %v401_v2 = vld [vmem:[%s2237_s2] sm:$0x3] }
  0x51   : > { %800 = vmatmul.bf16.vlgmr.msrb.gmra.mxu1 %v2018_v7  ;;  %v403_v20 = vperm.slane %v401_v2, 0 }
  0x52   : > { %813 = vmatmul.bf16.vlgmr.msrb.gmra.mxu2 %v2000_v63  ;;  %v404_v63 = vperm.slane %v401_v2, 1 }
  0x53   : > { %826 = vmatmul.bf16.vlgmr.msrb.gmra.mxu3 %v2016_v6 }
  0xad   : > { %v736_v12 = vpop.f32.mrf.mxu0 }
  0xae   : > { %v749_v13 = vpop.f32.mrf.mxu1  ;;  %v737_v6 = vadd.f32 %v736_v12, %v403_v20 }
  0xb0   : > { %v750_v23 = vadd.f32 %v749_v13, %v737_v6 }
  0xb5   : > { %v762_v14 = vpop.f32.mrf.mxu2  ;;  %v738_v16 = vpop.f32.mrf.mxu0 }
  0xb6   : > { %v775_v15 = vpop.f32.mrf.mxu3  ;;  %v751_v17 = vpop.f32.mrf.mxu1  ;;  %v763_v27 = vadd.f32 %v762_v14, %v750_v23 }
  0xb8   : > { %v776_v38 = vadd.f32 %v775_v15, %v763_v27 }
  0xbd   : > { %v764_v18 = vpop.f32.mrf.mxu2 }
  0xbe   : > { %v777_v19 = vpop.f32.mrf.mxu3 }
  0xcd   : > { %v788_v7 = vpop.f32.mrf.mxu0 }
  0xce   : > { %v789_v21 = vadd.f32 %v788_v7, %v404_v63  ;;  %v801_v22 = vpop.f32.mrf.mxu1 }
  0xd0   : > { %v802_v24 = vadd.f32 %v801_v22, %v789_v21 }
  0xd5   : > { %v814_v25 = vpop.f32.mrf.mxu2  ;;  %v790_v33 = vpop.f32.mrf.mxu0 }
  0xd6   : > { %v815_v28 = vadd.f32 %v814_v25, %v802_v24  ;;  %v827_v29 = vpop.f32.mrf.mxu3  ;;  %v803_v34 = vpop.f32.mrf.mxu1 }
  0xd8   : > { %v828_v35 = vadd.f32 %v827_v29, %v815_v28 }
  0xda   : > { %v841_v39 = vrot.slane %v828_v35, 4 }
  0xdc   : > { %v843_v40 = vsel %vm842_vm0, %v776_v38, %v841_v39  ;;  %v844_v46 = vsel %vm842_vm0, %v841_v39, %v776_v38 }
  0xdd   : > { %v848_v41 = vadd.f32 %v843_v40, %v831_v26  ;;  %v849_v42 = vadd.f32 %v843_v40, %v832_v30  ;;  %v850_v43 = vadd.f32 %v843_v40, %v833_v31  ;;  %v816_v45 = vpop.f32.mrf.mxu2  ;;  %v851_v47 = vadd.f32 %v843_v40, %v834_v32 }
  0xde   : > { %v977_v48 = vmul.f32 4.0, %v843_v40  ;;  %v829_v49 = vpop.f32.mrf.mxu3  ;;  %v845_v54 = vrot.slane %v844_v46, 4 }
  0xdf   : > { %864 = vst [vmem:[#allocation1] ss:$2 sm:$0xff] %v848_v41 }
  0xe0   : > { %866 = vst [vmem:[#allocation1 + $0x10] ss:$2 sm:$0xff] %v849_v42  ;;  %v981_v55 = vadd.f32 %v979_v44, %v977_v48  ;;  %v978_v58 = vmul.f32 4.0, %v845_v54  ;;  %v852_v4 = vadd.f32 %v845_v54, %v835_v50  ;;  %v853_v10 = vadd.f32 %v845_v54, %v836_v51 }
  0xe1   : > { %872 = vst [vmem:[#allocation1 + $0x20] ss:$2 sm:$0xff] %v850_v43  ;;  %v854_v11 = vadd.f32 %v845_v54, %v837_v52  ;;  %v855_v19 = vadd.f32 %v845_v54, %v838_v53 }
  0xe2   : > { %874 = vst [vmem:[#allocation1 + $0x30] ss:$2 sm:$0xff] %v851_v47  ;;  %v985_v59 = vrot.slane %v981_v55, 2  ;;  %v982_v20 = vadd.f32 %v980_v3, %v978_v58 }
  0xe4   : > { %v989_v24 = vsel %vm988_vm2, %v981_v55, %v985_v59  ;;  %v986_v27 = vrot.slane %v982_v20, 2  ;;  %v987_v40 = vsel %vm935_vm3, %v981_v55, %v985_v59 }
  0xe5   : > { %v990_v28 = vrot.slane %v989_v24, 2 }
  0xe6   : > { %v867_v60 = vld.sshfl [vmem:[#allocation1] sm:$0xff pattern:$0x75316420]  ;;  %v868_v61 = vld.sshfl [vmem:[#allocation1 + $0x8] sm:$0xff pattern:$0x75316420]  ;;  %v992_v52 = vsel %vm988_vm2, %v982_v20, %v986_v27  ;;  %v991_v58 = vsel %vm935_vm3, %v982_v20, %v986_v27 }
  0xe7   : > { %v869_v62 = vld.sshfl [vmem:[#allocation1 + $0x10] sm:$0xff pattern:$0x75316420]  ;;  %v870_v0 = vld.sshfl [vmem:[#allocation1 + $0x18] sm:$0xff pattern:$0x75316420]  ;;  %v907_v1 = vpack.c.bf16 %v868_v61, %v867_v60 }
  0xe8   : > { %v875_v5 = vld.sshfl [vmem:[#allocation1 + $0x20] sm:$0xff pattern:$0x75316420]  ;;  %v876_v8 = vld.sshfl [vmem:[#allocation1 + $0x28] sm:$0xff pattern:$0x75316420]  ;;  %v908_v9 = vpack.c.bf16 %v870_v0, %v869_v62 }
  0xe9   : > { %v877_v12 = vld.sshfl [vmem:[#allocation1 + $0x30] sm:$0xff pattern:$0x75316420]  ;;  %v878_v13 = vld.sshfl [vmem:[#allocation1 + $0x38] sm:$0xff pattern:$0x75316420]  ;;  %v909_v14 = vpack.c.bf16 %v876_v8, %v875_v5 }
  0xea   : > { %879 = vst [vmem:[#allocation1] ss:$2 sm:$0xff] %v852_v4  ;;  %v910_v15 = vpack.c.bf16 %v878_v13, %v877_v12  ;;  %v923_v16 = vrot.slane %v907_v1, 2  ;;  %v924_v17 = vrot.slane %v908_v9, 4  ;;  %v925_v18 = vrot.slane %v908_v9, 6 }
  0xeb   : > { %880 = vst [vmem:[#allocation1 + $0x10] ss:$2 sm:$0xff] %v853_v10  ;;  %v926_v2 = vrot.slane %v909_v14, 2  ;;  %v993_v55 = vrot.slane %v992_v52, 2 }
  0xec   : > { %885 = vst [vmem:[#allocation1 + $0x20] ss:$2 sm:$0xff] %v854_v11  ;;  %v927_v63 = vrot.slane %v910_v15, 4  ;;  %v928_v6 = vrot.slane %v910_v15, 6  ;;  %v938_v7 = vsel %vm935_vm3, %v907_v1, %v923_v16  ;;  %v942_v21 = vsel %vm939_vm1, %v924_v17, %v925_v18 }
  0xed   : > { %886 = vst [vmem:[#allocation1 + $0x30] ss:$2 sm:$0xff] %v855_v19  ;;  %v943_v22 = vsel %vm842_vm0, %v938_v7, %v942_v21  ;;  %v946_v23 = vsel %vm935_vm3, %v909_v14, %v926_v2 }
  0xee   : > { %v949_v25 = vsel %vm939_vm1, %v927_v63, %v928_v6  ;;  %969 = vst [vmem:[%s2174_s12] sm:$0xff] %v943_v22 }
  0xef   : > { %v950_v26 = vsel %vm842_vm0, %v946_v23, %v949_v25 }
  0xf0   : > { %970 = vst [vmem:[%s2174_s12 + $0x8] sm:$0xff] %v950_v26 }
  0xf1   : > { %v881_v29 = vld.sshfl [vmem:[#allocation1] sm:$0xff pattern:$0x75316420]  ;;  %v882_v30 = vld.sshfl [vmem:[#allocation1 + $0x8] sm:$0xff pattern:$0x75316420] }
  0xf2   : > { %v883_v31 = vld.sshfl [vmem:[#allocation1 + $0x10] sm:$0xff pattern:$0x75316420]  ;;  %v884_v32 = vld.sshfl [vmem:[#allocation1 + $0x18] sm:$0xff pattern:$0x75316420]  ;;  %v911_v33 = vpack.c.bf16 %v882_v30, %v881_v29 }
  0xf3   : > { %v887_v34 = vld.sshfl [vmem:[#allocation1 + $0x20] sm:$0xff pattern:$0x75316420]  ;;  %v888_v35 = vld.sshfl [vmem:[#allocation1 + $0x28] sm:$0xff pattern:$0x75316420]  ;;  %v912_v36 = vpack.c.bf16 %v884_v32, %v883_v31 }
  0xf4   : > { %v889_v37 = vld.sshfl [vmem:[#allocation1 + $0x30] sm:$0xff pattern:$0x75316420]  ;;  %v890_v38 = vld.sshfl [vmem:[#allocation1 + $0x38] sm:$0xff pattern:$0x75316420]  ;;  %v913_v39 = vpack.c.bf16 %v888_v35, %v887_v34 }
  0xf5   : > { %v914_v41 = vpack.c.bf16 %v890_v38, %v889_v37  ;;  %v929_v42 = vrot.slane %v911_v33, 2  ;;  %v930_v43 = vrot.slane %v912_v36, 4  ;;  %v931_v44 = vrot.slane %v912_v36, 6  ;;  %994 = vst [vmem:[#allocation1] ss:$4 sm:$0xff] %v987_v40 }
  0xf6   : > { %v932_v45 = vrot.slane %v913_v39, 2  ;;  %998 = vst [vmem:[#allocation1 + $0x20] ss:$4 sm:$0xff] %v990_v28 }
  0xf7   : > { %v933_v46 = vrot.slane %v914_v41, 4  ;;  %v934_v47 = vrot.slane %v914_v41, 6  ;;  %v953_v48 = vsel %vm935_vm3, %v911_v33, %v929_v42  ;;  %v956_v49 = vsel %vm939_vm1, %v930_v43, %v931_v44 }
  0xf8   : > { %v957_v50 = vsel %vm842_vm0, %v953_v48, %v956_v49  ;;  %v960_v51 = vsel %vm935_vm3, %v913_v39, %v932_v45 }
  0xf9   : > { %v963_v53 = vsel %vm939_vm1, %v933_v46, %v934_v47  ;;  %971 = vst [vmem:[%s2174_s12 + $0x10] sm:$0xff] %v957_v50 }
  0xfa   : > { %v964_v54 = vsel %vm842_vm0, %v960_v51, %v963_v53 }
  0xfb   : > { %972 = vst [vmem:[%s2174_s12 + $0x18] sm:$0xff] %v964_v54 }
  0xfc   : > { %v995_v56 = vld.sshfl [vmem:[#allocation1] sm:$0xff pattern:$0x73625140]  ;;  %v996_v57 = vld.sshfl [vmem:[#allocation1 + $0x8] sm:$0xff pattern:$0x73625140] }
  0xfd   : > { %v999_v59 = vld.sshfl [vmem:[#allocation1 + $0x20] sm:$0xff pattern:$0x73625140]  ;;  %v1000_v60 = vld.sshfl [vmem:[#allocation1 + $0x28] sm:$0xff pattern:$0x73625140] }
  0xfe   : > { %1001 = vst [vmem:[#allocation1] ss:$4 sm:$0xff] %v991_v58  ;;  %v1015_v61 = vsel %vm935_vm3, %v995_v56, 0.0  ;;  %v1022_v62 = vsel %vm935_vm3, %v996_v57, 0.0  ;;  %v1029_v0 = vsel %vm935_vm3, %v999_v59, 0.0  ;;  %v1036_v1 = vsel %vm935_vm3, %v1000_v60, 0.0 }
  0xff   : > { %1004 = vst [vmem:[#allocation1 + $0x20] ss:$4 sm:$0xff] %v993_v55  ;;  %v1016_v3 = vrot.slane %v1015_v61, 4  ;;  %v1023_v4 = vrot.slane %v1022_v62, 4  ;;  %v1030_v5 = vrot.slane %v1029_v0, 4  ;;  %v1037_v8 = vrot.slane %v1036_v1, 4 }
 0x101   : > { %v1017_v9 = vadd.f32 %v1016_v3, %v1015_v61  ;;  %v1024_v10 = vadd.f32 %v1023_v4, %v1022_v62  ;;  %v1031_v11 = vadd.f32 %v1030_v5, %v1029_v0  ;;  %v1038_v12 = vadd.f32 %v1037_v8, %v1036_v1 }
 0x103   : > { %v1018_v13 = vrot.slane %v1017_v9, 2  ;;  %v1025_v14 = vrot.slane %v1024_v10, 2  ;;  %v1032_v15 = vrot.slane %v1031_v11, 2  ;;  %v1039_v16 = vrot.slane %v1038_v12, 2 }
 0x105   : > { %v1002_v17 = vld.sshfl [vmem:[#allocation1] sm:$0xff pattern:$0x73625140]  ;;  %v1003_v18 = vld.sshfl [vmem:[#allocation1 + $0x8] sm:$0xff pattern:$0x73625140]  ;;  %v1019_v19 = vadd.f32 %v1018_v13, %v1017_v9  ;;  %v1026_v2 = vadd.f32 %v1025_v14, %v1024_v10  ;;  %v1033_v20 = vadd.f32 %v1032_v15, %v1031_v11  ;;  %v1040_v63 = vadd.f32 %v1039_v16, %v1038_v12 }
 0x106   : > { %v1005_v6 = vld.sshfl [vmem:[#allocation1 + $0x20] sm:$0xff pattern:$0x73625140]  ;;  %v1006_v7 = vld.sshfl [vmem:[#allocation1 + $0x28] sm:$0xff pattern:$0x73625140] }
 0x107   : > { %v1027_v21 = vrot.slane %v1026_v2, 1  ;;  %v1034_v22 = vrot.slane %v1033_v20, 1  ;;  %v1041_v23 = vrot.slane %v1040_v63, 1  ;;  %v1043_v24 = vsel %vm935_vm3, %v1002_v17, 0.0 }
 0x108   : > { %v1050_v25 = vsel %vm935_vm3, %v1003_v18, 0.0  ;;  %v1057_v26 = vsel %vm935_vm3, %v1005_v6, 0.0  ;;  %v1064_v27 = vsel %vm935_vm3, %v1006_v7, 0.0  ;;  %v1020_v28 = vrot.slane %v1019_v19, 1 }
 0x109   : > { %v1028_v29 = vadd.f32 %v1027_v21, %v1026_v2  ;;  %v1042_v30 = vadd.f32 %v1041_v23, %v1040_v63  ;;  %v1044_v31 = vrot.slane %v1043_v24, 4  ;;  %v1051_v32 = vrot.slane %v1050_v25, 4 }
 0x10a   : > { %v1058_v33 = vrot.slane %v1057_v26, 4  ;;  %v1065_v34 = vrot.slane %v1064_v27, 4  ;;  %v1035_v35 = vadd.f32 %v1034_v22, %v1033_v20  ;;  %v1021_v42 = vadd.f32 %v1020_v28, %v1019_v19 }
 0x10b   : > { %v1079_v36 = vrot.slane %v1028_v29, 6  ;;  %v1080_v37 = vrot.slane %v1042_v30, 6  ;;  %v1045_v38 = vadd.f32 %v1044_v31, %v1043_v24  ;;  %v1052_v39 = vadd.f32 %v1051_v32, %v1050_v25 }
 0x10c   : > { %v1059_v40 = vadd.f32 %v1058_v33, %v1057_v26  ;;  %v1066_v41 = vadd.f32 %v1065_v34, %v1064_v27 }
 0x10d   : > { %v1084_v43 = vsel %vm935_vm3, %v1035_v35, %v1080_v37  ;;  %v1046_v44 = vrot.slane %v1045_v38, 2  ;;  %v1053_v45 = vrot.slane %v1052_v39, 2  ;;  %v1083_v48 = vsel %vm935_vm3, %v1021_v42, %v1079_v36 }
 0x10e   : > { %v1060_v46 = vrot.slane %v1059_v40, 2  ;;  %v1067_v47 = vrot.slane %v1066_v41, 2  ;;  %v1091_v49 = vrot.slane %v1084_v43, 7 }
 0x10f   : > { %v1047_v50 = vadd.f32 %v1046_v44, %v1045_v38  ;;  %v1054_v51 = vadd.f32 %v1053_v45, %v1052_v39 }
 0x110   : > { %v1061_v52 = vadd.f32 %v1060_v46, %v1059_v40  ;;  %v1068_v53 = vadd.f32 %v1067_v47, %v1066_v41  ;;  %v1093_v54 = vsel %vm1092_vm4, %v1091_v49, %v1083_v48 }
 0x111   : > { %v1055_v55 = vrot.slane %v1054_v51, 1  ;;  %v1095_v58 = vsel %vm1094_vm5, %v1091_v49, %v1093_v54  ;;  %v1048_v59 = vrot.slane %v1047_v50, 1 }
 0x112   : > { %v1062_v56 = vrot.slane %v1061_v52, 1  ;;  %v1069_v57 = vrot.slane %v1068_v53, 1  ;;  %v1097_v62 = vsel %vm1096_vm6, %v1091_v49, %v1095_v58 }
 0x113   : > { %v1056_v60 = vadd.f32 %v1055_v55, %v1054_v51  ;;  %v1099_v4 = vsel %vm1098_vm7, %v1091_v49, %v1097_v62  ;;  %v1049_v5 = vadd.f32 %v1048_v59, %v1047_v50 }
 0x114   : > { %v1070_v61 = vadd.f32 %v1069_v57, %v1068_v53  ;;  %v1063_v0 = vadd.f32 %v1062_v56, %v1061_v52  ;;  %1109 = vst [vmem:[%s325_s16] sm:$0xf] %v1099_v4 }
 0x115   : > { %v1081_v1 = vrot.slane %v1056_v60, 6 }
 0x116   : > { %v1082_v3 = vrot.slane %v1070_v61, 6 }
 0x117   : > { %v1085_v10 = vsel %vm935_vm3, %v1049_v5, %v1081_v1 }
 0x118   : > { %v1086_v8 = vsel %vm935_vm3, %v1063_v0, %v1082_v3 }
 0x119   : > { %v1102_v9 = vrot.slane %v1086_v8, 7 }
 0x11b   : > { %v1103_v11 = vsel %vm1092_vm4, %v1102_v9, %v1085_v10 }
 0x11c   : > { %v1104_v12 = vsel %vm1094_vm5, %v1102_v9, %v1103_v11 }
 0x11d   : > { %v1105_v13 = vsel %vm1096_vm6, %v1102_v9, %v1104_v12 }
 0x11e   : > { %v1106_v14 = vsel %vm1098_vm7, %v1102_v9, %v1105_v13 }
 0x11f   : > { %1110 = vst [vmem:[%s325_s16 + $0x4] sm:$0xf] %v1106_v14 }
 0x120 PF: > { %s16_s22 = sadd.s32 1, %s1673_s22   ;;  %s2241_s18 = smov %s1665_s20 }
 0x121   : > { %p13_p7 = scmp.ge.s32.totalorder %s16_s22, 6   ;;  %s2242_s19 = smov %s1669_s21 }
 0x122   : > { %s2243_s20 = smov %s2246_s23  ;;  %s2244_s21 = smov %s2250_s24 }
 0x123   :  { %15 = sbr.rel (!%p13_p7) target bundleno = 3 (0x3), region = 85 }

// kernel: resfpn_forward.9
= control target key start
LH: loop header
LB: loop body
LE: loop exit
PB: predicated region body
PF: predicated region fallthrough
CT: control target
= control target key end

     0   :  { %vm49_vm0 = vcmask 1042434   ;;  %vm31_vm1 = vcmask 1040384   ;;  %vm58_vm2 = vcmask 1043459   ;;  %vm40_vm3 = vcmask 1041409   ;;  %s2745_s0 = inlined_call_operand.vmem [shape: f32[2,8,4,128], index: 0, kind: input, shape index: {}]   ;;  %s2746_s1 = inlined_call_operand.vmem [shape: bf16[2048,128], index: 1, kind: input, shape index: {}]   ;;  %s2747_s2 = inlined_call_operand.vmem [shape: f32[1,128], index: 2, kind: input, shape index: {}]   ;;  %s2748_s3 = inlined_call_operand.hbm [shape: f32[2,128], index: 3, kind: output, shape index: {}]  }
   0x1   :  { %v2055_v0 = vld [vmem:[%s2746_s1 + $0x38] sm:$0xff]  ;;  %v2054_v4 = vld [vmem:[%s2746_s1 + $0x30] sm:$0xff]  ;;  %v2053_v8 = vld [vmem:[%s2746_s1 + $0x28] sm:$0xff] }
   0x2   :  { %v2063_v1 = vld [vmem:[%s2746_s1 + $0x78] sm:$0xff]  ;;  %1295 = vmatpush.bf16.msra.mxu0 %v2055_v0  ;;  %v2062_v5 = vld [vmem:[%s2746_s1 + $0x70] sm:$0xff]  ;;  %v2061_v9 = vld [vmem:[%s2746_s1 + $0x68] sm:$0xff] }
   0x3   :  { %v2071_v2 = vld [vmem:[%s2746_s1 + $0xb8] sm:$0xff]  ;;  %1308 = vmatpush.bf16.msra.mxu1 %v2063_v1  ;;  %v2070_v6 = vld [vmem:[%s2746_s1 + $0xb0] sm:$0xff]  ;;  %v2069_v10 = vld [vmem:[%s2746_s1 + $0xa8] sm:$0xff] }
   0x4   :  { %v2079_v3 = vld [vmem:[%s2746_s1 + $0xf8] sm:$0xff]  ;;  %1321 = vmatpush.bf16.msra.mxu2 %v2071_v2  ;;  %v2078_v7 = vld [vmem:[%s2746_s1 + $0xf0] sm:$0xff]  ;;  %v2077_v11 = vld [vmem:[%s2746_s1 + $0xe8] sm:$0xff] }
   0x5   :  { %1334 = vmatpush.bf16.msra.mxu3 %v2079_v3  ;;  %v2052_v12 = vld [vmem:[%s2746_s1 + $0x20] sm:$0xff]  ;;  %v2051_v16 = vld [vmem:[%s2746_s1 + $0x18] sm:$0xff]  ;;  %v2050_v20 = vld [vmem:[%s2746_s1 + $0x10] sm:$0xff] }
   0x6   :  { %1296 = vmatpush.bf16.msra.mxu0 %v2054_v4  ;;  %v2060_v13 = vld [vmem:[%s2746_s1 + $0x60] sm:$0xff]  ;;  %v2059_v17 = vld [vmem:[%s2746_s1 + $0x58] sm:$0xff]  ;;  %v2058_v21 = vld [vmem:[%s2746_s1 + $0x50] sm:$0xff] }
   0x7   :  { %1309 = vmatpush.bf16.msra.mxu1 %v2062_v5  ;;  %v2068_v14 = vld [vmem:[%s2746_s1 + $0xa0] sm:$0xff]  ;;  %v2067_v18 = vld [vmem:[%s2746_s1 + $0x98] sm:$0xff]  ;;  %v2066_v26 = vld [vmem:[%s2746_s1 + $0x90] sm:$0xff] }
   0x8   :  { %1322 = vmatpush.bf16.msra.mxu2 %v2070_v6  ;;  %v2076_v15 = vld [vmem:[%s2746_s1 + $0xe0] sm:$0xff]  ;;  %v2075_v19 = vld [vmem:[%s2746_s1 + $0xd8] sm:$0xff]  ;;  %v2074_v27 = vld [vmem:[%s2746_s1 + $0xd0] sm:$0xff] }
   0x9   :  { %1335 = vmatpush.bf16.msra.mxu3 %v2078_v7  ;;  %v15_v22 = vld [vmem:[%s2745_s0] sm:$0xf]  ;;  %v16_v23 = vld [vmem:[%s2745_s0 + $0x4] sm:$0xf] }
   0xa   :  { %1297 = vmatpush.bf16.msra.mxu0 %v2053_v8  ;;  %v23_v24 = vld [vmem:[%s2745_s0 + $0x20] sm:$0xf]  ;;  %v24_v25 = vld [vmem:[%s2745_s0 + $0x24] sm:$0xf]  ;;  %v50_v28 = vsel %vm49_vm0, %v15_v22, 0.0  ;;  %v51_v29 = vsel %vm49_vm0, %v16_v23, 0.0 }
   0xb   :  { %1310 = vmatpush.bf16.msra.mxu1 %v2061_v9  ;;  %v53_v30 = vsel %vm49_vm0, %v23_v24, 0.0  ;;  %v52_v31 = vadd.f32 %v51_v29, %v50_v28  ;;  %v54_v32 = vsel %vm49_vm0, %v24_v25, 0.0  ;;  %v32_v33 = vsel %vm31_vm1, %v15_v22, 0.0 }
   0xc   :  { %1323 = vmatpush.bf16.msra.mxu2 %v2069_v10  ;;  %v33_v34 = vsel %vm31_vm1, %v16_v23, 0.0  ;;  %v55_v35 = vadd.f32 %v54_v32, %v53_v30  ;;  %v35_v37 = vsel %vm31_vm1, %v23_v24, 0.0  ;;  %v36_v38 = vsel %vm31_vm1, %v24_v25, 0.0 }
   0xd   :  { %1336 = vmatpush.bf16.msra.mxu3 %v2077_v11  ;;  %v34_v36 = vadd.f32 %v33_v34, %v32_v33 }
   0xe   :  { %1298 = vmatpush.bf16.msra.mxu0 %v2052_v12 }
   0xf   :  { %1311 = vmatpush.bf16.msra.mxu1 %v2060_v13 }
  0x10   :  { %1324 = vmatpush.bf16.msra.mxu2 %v2068_v14 }
  0x11   :  { %1337 = vmatpush.bf16.msra.mxu3 %v2076_v15 }
  0x12   :  { %1299 = vmatpush.bf16.msra.mxu0 %v2051_v16 }
  0x13   :  { %1312 = vmatpush.bf16.msra.mxu1 %v2059_v17 }
  0x14   :  { %1325 = vmatpush.bf16.msra.mxu2 %v2067_v18 }
  0x15   :  { %1338 = vmatpush.bf16.msra.mxu3 %v2075_v19 }
  0x16   :  { %8 = vsyncpa [#allocation3], 0  ;;  %1300 = vmatpush.bf16.msra.mxu0 %v2050_v20  ;;  %v2049_v39 = vld [vmem:[%s2746_s1 + $0x8] sm:$0xff]  ;;  %v175_v41 = vrot.slane %v52_v31, 2  ;;  %v37_v42 = vadd.f32 %v36_v38, %v35_v37  ;;  %v59_v43 = vsel %vm58_vm2, %v15_v22, 0.0  ;;  %v60_v44 = vsel %vm58_vm2, %v16_v23, 0.0 }
  0x17   :  { %1313 = vmatpush.bf16.msra.mxu1 %v2058_v21  ;;  %v2057_v40 = vld [vmem:[%s2746_s1 + $0x48] sm:$0xff]  ;;  %v176_v47 = vrot.slane %v55_v35, 1  ;;  %v61_v48 = vadd.f32 %v60_v44, %v59_v43  ;;  %v62_v49 = vsel %vm58_vm2, %v23_v24, 0.0  ;;  %v63_v50 = vsel %vm58_vm2, %v24_v25, 0.0  ;;  %v2048_v58 = vld [vmem:[%s2746_s1] sm:$0xff]  ;;  %v2087_v4 = vld [vmem:[%s2746_s1 + $0x138] sm:$0xff] }
  0x18   :  { %1326 = vmatpush.bf16.msra.mxu2 %v2066_v26  ;;  %v2065_v45 = vld [vmem:[%s2746_s1 + $0x88] sm:$0xff]  ;;  %v165_v51 = vrot.slane %v37_v42, 7  ;;  %v64_v52 = vadd.f32 %v63_v50, %v62_v49  ;;  %v41_v53 = vsel %vm40_vm3, %v15_v22, 0.0  ;;  %v42_v54 = vsel %vm40_vm3, %v16_v23, 0.0  ;;  %v2056_v59 = vld [vmem:[%s2746_s1 + $0x40] sm:$0xff]  ;;  %v2095_v5 = vld [vmem:[%s2746_s1 + $0x178] sm:$0xff] }
  0x19   :  { %1339 = vmatpush.bf16.msra.mxu3 %v2074_v27  ;;  %v2073_v46 = vld [vmem:[%s2746_s1 + $0xc8] sm:$0xff]  ;;  %v181_v55 = vrot.slane %v61_v48, 3  ;;  %v43_v56 = vadd.f32 %v42_v54, %v41_v53  ;;  %v44_v57 = vsel %vm40_vm3, %v23_v24, 0.0  ;;  %v45_v61 = vsel %vm40_vm3, %v24_v25, 0.0  ;;  %v2064_v62 = vld [vmem:[%s2746_s1 + $0x80] sm:$0xff]  ;;  %v2103_v7 = vld [vmem:[%s2746_s1 + $0x1b8] sm:$0xff] }
  0x1a   :  { %1301 = vmatpush.bf16.msra.mxu0 %v2049_v39  ;;  %v182_v60 = vrot.slane %v64_v52, 2  ;;  %v2072_v63 = vld [vmem:[%s2746_s1 + $0xc0] sm:$0xff]  ;;  %v177_v0 = vsel %vm40_vm3, %v176_v47, %v175_v41  ;;  %v166_v1 = vsel %vm40_vm3, %v165_v51, %v34_v36  ;;  %v46_v2 = vadd.f32 %v45_v61, %v44_v57  ;;  %v2111_v8 = vld [vmem:[%s2746_s1 + $0x1f8] sm:$0xff]  ;;  %v2086_v14 = vld [vmem:[%s2746_s1 + $0x130] sm:$0xff]  ;;  %s1527_s5 = sshll.u32 %s2748_s3, 4  ;;  %s1528_s5 = int_to_ptr.hbm [resolvable:$true] %s1527_s5 }
  0x1b   :  { %1314 = vmatpush.bf16.msra.mxu1 %v2057_v40  ;;  %v170_v3 = vrot.slane %v43_v56, 1  ;;  %v253_v10 = vpack.c.bf16 %v177_v0, %v177_v0  ;;  %v251_v11 = vpack.c.bf16 %v166_v1, %v166_v1  ;;  %v2094_v15 = vld [vmem:[%s2746_s1 + $0x170] sm:$0xff]  ;;  %v2085_v18 = vld [vmem:[%s2746_s1 + $0x128] sm:$0xff]  ;;  %v2084_v22 = vld [vmem:[%s2746_s1 + $0x120] sm:$0xff]  ;;  %vm1504_vm4 = vcmask 1041408  }
  0x1c   :  { %1327 = vmatpush.bf16.msra.mxu2 %v2065_v45  ;;  %v183_v6 = vsel %vm40_vm3, %v182_v60, %v181_v55  ;;  %v2102_v16 = vld [vmem:[%s2746_s1 + $0x1b0] sm:$0xff]  ;;  %v2093_v19 = vld [vmem:[%s2746_s1 + $0x168] sm:$0xff]  ;;  %v2092_v23 = vld [vmem:[%s2746_s1 + $0x160] sm:$0xff] }
  0x1d   :  { %1340 = vmatpush.bf16.msra.mxu3 %v2073_v46  ;;  %v171_v9 = vsel %vm40_vm3, %v46_v2, %v170_v3  ;;  %v254_v12 = vpack.c.bf16 %v183_v6, %v183_v6  ;;  %v2110_v17 = vld [vmem:[%s2746_s1 + $0x1f0] sm:$0xff]  ;;  %v2101_v20 = vld [vmem:[%s2746_s1 + $0x1a8] sm:$0xff]  ;;  %v2100_v24 = vld [vmem:[%s2746_s1 + $0x1a0] sm:$0xff] }
  0x1e   :  { %1302 = vmatpush.bf16.msra.mxu0 %v2048_v58  ;;  %v252_v13 = vpack.c.bf16 %v171_v9, %v171_v9  ;;  %v2109_v21 = vld [vmem:[%s2746_s1 + $0x1e8] sm:$0xff]  ;;  %v2108_v25 = vld [vmem:[%s2746_s1 + $0x1e0] sm:$0xff]  ;;  %v2083_v30 = vld [vmem:[%s2746_s1 + $0x118] sm:$0xff] }
  0x1f   :  { %1315 = vmatpush.bf16.msra.mxu1 %v2056_v59  ;;  %v17_v26 = vld [vmem:[%s2745_s0 + $0x8] sm:$0xf]  ;;  %v18_v27 = vld [vmem:[%s2745_s0 + $0xc] sm:$0xf]  ;;  %v2091_v31 = vld [vmem:[%s2746_s1 + $0x158] sm:$0xff] }
  0x20   :  { %1328 = vmatpush.bf16.msra.mxu2 %v2064_v62  ;;  %v25_v28 = vld [vmem:[%s2745_s0 + $0x28] sm:$0xf]  ;;  %v26_v29 = vld [vmem:[%s2745_s0 + $0x2c] sm:$0xf]  ;;  %v2099_v32 = vld [vmem:[%s2746_s1 + $0x198] sm:$0xff]  ;;  %v83_v34 = vsel %vm49_vm0, %v17_v26, 0.0 }
  0x21   :  { %1341 = vmatpush.bf16.msra.mxu3 %v2072_v63  ;;  %1303 = vmatmul.bf16.vlgmr.msra.gmra.mxu0 %v251_v11  ;;  %v2107_v33 = vld [vmem:[%s2746_s1 + $0x1d8] sm:$0xff]  ;;  %v84_v35 = vsel %vm49_vm0, %v18_v27, 0.0  ;;  %v86_v36 = vsel %vm49_vm0, %v25_v28, 0.0  ;;  %v87_v37 = vsel %vm49_vm0, %v26_v29, 0.0  ;;  %v70_v38 = vsel %vm31_vm1, %v25_v28, 0.0  ;;  %v2082_v46 = vld [vmem:[%s2746_s1 + $0x110] sm:$0xff] }
  0x22   :  { %1347 = vmatpush.bf16.msrb.mxu0 %v2087_v4  ;;  %1316 = vmatmul.bf16.vlgmr.msra.gmra.mxu1 %v252_v13  ;;  %v71_v39 = vsel %vm31_vm1, %v26_v29, 0.0  ;;  %v91_v40 = vsel %vm58_vm2, %v17_v26, 0.0  ;;  %v92_v41 = vsel %vm58_vm2, %v18_v27, 0.0  ;;  %v94_v42 = vsel %vm58_vm2, %v25_v28, 0.0  ;;  %v2090_v47 = vld [vmem:[%s2746_s1 + $0x150] sm:$0xff]  ;;  %v2081_v60 = vld [vmem:[%s2746_s1 + $0x108] sm:$0xff] }
  0x23   :  { %1360 = vmatpush.bf16.msrb.mxu1 %v2095_v5  ;;  %1329 = vmatmul.bf16.vlgmr.msra.gmra.mxu2 %v253_v10  ;;  %v95_v43 = vsel %vm58_vm2, %v26_v29, 0.0  ;;  %v75_v44 = vsel %vm40_vm3, %v17_v26, 0.0  ;;  %v76_v45 = vsel %vm40_vm3, %v18_v27, 0.0  ;;  %v2098_v48 = vld [vmem:[%s2746_s1 + $0x190] sm:$0xff]  ;;  %v85_v50 = vadd.f32 %v84_v35, %v83_v34  ;;  %v2089_v61 = vld [vmem:[%s2746_s1 + $0x148] sm:$0xff]  ;;  %v2088_v9 = vld [vmem:[%s2746_s1 + $0x140] sm:$0xff] }
  0x24   :  { %1373 = vmatpush.bf16.msrb.mxu2 %v2103_v7  ;;  %1342 = vmatmul.bf16.vlgmr.msra.gmra.mxu3 %v254_v12  ;;  %v2106_v49 = vld [vmem:[%s2746_s1 + $0x1d0] sm:$0xff]  ;;  %v88_v51 = vadd.f32 %v87_v37, %v86_v36  ;;  %v67_v52 = vsel %vm31_vm1, %v17_v26, 0.0  ;;  %v72_v53 = vadd.f32 %v71_v39, %v70_v38  ;;  %v68_v54 = vsel %vm31_vm1, %v18_v27, 0.0  ;;  %v2097_v62 = vld [vmem:[%s2746_s1 + $0x188] sm:$0xff]  ;;  %v2096_v10 = vld [vmem:[%s2746_s1 + $0x180] sm:$0xff] }
  0x25   :  { %1386 = vmatpush.bf16.msrb.mxu3 %v2111_v8  ;;  %v93_v55 = vadd.f32 %v92_v41, %v91_v40  ;;  %v96_v56 = vadd.f32 %v95_v43, %v94_v42  ;;  %v77_v57 = vadd.f32 %v76_v45, %v75_v44  ;;  %v78_v58 = vsel %vm40_vm3, %v25_v28, 0.0  ;;  %v2105_v63 = vld [vmem:[%s2746_s1 + $0x1c8] sm:$0xff]  ;;  %v2080_v8 = vld [vmem:[%s2746_s1 + $0x100] sm:$0xff]  ;;  %v2134_v26 = vld [vmem:[%s2746_s1 + $0x2b0] sm:$0xff] }
  0x26   :  { %1348 = vmatpush.bf16.msrb.mxu0 %v2086_v14  ;;  %v79_v59 = vsel %vm40_vm3, %v26_v29, 0.0  ;;  %v197_v0 = vrot.slane %v85_v50, 2  ;;  %v198_v1 = vrot.slane %v88_v51, 1  ;;  %v69_v2 = vadd.f32 %v68_v54, %v67_v52  ;;  %v2104_v11 = vld [vmem:[%s2746_s1 + $0x1c0] sm:$0xff]  ;;  %v2119_v14 = vld [vmem:[%s2746_s1 + $0x238] sm:$0xff]  ;;  %v2142_v27 = vld [vmem:[%s2746_s1 + $0x2f0] sm:$0xff] }
  0x27   :  { %1361 = vmatpush.bf16.msrb.mxu1 %v2094_v15  ;;  %v187_v3 = vrot.slane %v72_v53, 7  ;;  %v203_v4 = vrot.slane %v93_v55, 3  ;;  %v204_v5 = vrot.slane %v96_v56, 2  ;;  %v80_v6 = vadd.f32 %v79_v59, %v78_v58  ;;  %v2127_v15 = vld [vmem:[%s2746_s1 + $0x278] sm:$0xff]  ;;  %v2117_v28 = vld [vmem:[%s2746_s1 + $0x228] sm:$0xff]  ;;  %v2132_v34 = vld [vmem:[%s2746_s1 + $0x2a0] sm:$0xff] }
  0x28   :  { %1374 = vmatpush.bf16.msrb.mxu2 %v2102_v16  ;;  %v192_v7 = vrot.slane %v77_v57, 1  ;;  %v199_v12 = vsel %vm40_vm3, %v198_v1, %v197_v0  ;;  %v2125_v29 = vld [vmem:[%s2746_s1 + $0x268] sm:$0xff]  ;;  %v2140_v35 = vld [vmem:[%s2746_s1 + $0x2e0] sm:$0xff]  ;;  %v19_v36 = vld [vmem:[%s2745_s0 + $0x10] sm:$0xf] }
  0x29   :  { %1387 = vmatpush.bf16.msrb.mxu3 %v2110_v17  ;;  %v188_v13 = vsel %vm40_vm3, %v187_v3, %v69_v2  ;;  %v205_v16 = vsel %vm40_vm3, %v204_v5, %v203_v4  ;;  %v20_v37 = vld [vmem:[%s2745_s0 + $0x14] sm:$0xf]  ;;  %v27_v38 = vld [vmem:[%s2745_s0 + $0x30] sm:$0xf]  ;;  %v2115_v40 = vld [vmem:[%s2746_s1 + $0x218] sm:$0xff]  ;;  %v107_v50 = vsel %vm40_vm3, %v19_v36, 0.0 }
  0x2a   :  { %1349 = vmatpush.bf16.msrb.mxu0 %v2085_v18  ;;  %v193_v17 = vsel %vm40_vm3, %v80_v6, %v192_v7  ;;  %v2135_v18 = vld [vmem:[%s2746_s1 + $0x2b8] sm:$0xff]  ;;  %v28_v39 = vld [vmem:[%s2745_s0 + $0x34] sm:$0xf]  ;;  %v102_v44 = vsel %vm31_vm1, %v27_v38, 0.0  ;;  %v108_v51 = vsel %vm40_vm3, %v20_v37, 0.0  ;;  %v123_v52 = vsel %vm58_vm2, %v19_v36, 0.0 }
  0x2b   :  { %1362 = vmatpush.bf16.msrb.mxu1 %v2093_v19  ;;  %v2143_v19 = vld [vmem:[%s2746_s1 + $0x2f8] sm:$0xff]  ;;  %v103_v45 = vsel %vm31_vm1, %v28_v39, 0.0  ;;  %v124_v53 = vsel %vm58_vm2, %v20_v37, 0.0  ;;  %v126_v54 = vsel %vm58_vm2, %v27_v38, 0.0  ;;  %v127_v55 = vsel %vm58_vm2, %v28_v39, 0.0  ;;  %v2114_v56 = vld [vmem:[%s2746_s1 + $0x210] sm:$0xff] }
  0x2c   :  { %1375 = vmatpush.bf16.msrb.mxu2 %v2101_v20  ;;  %v257_v20 = vpack.c.bf16 %v199_v12, %v199_v12  ;;  %v2123_v41 = vld [vmem:[%s2746_s1 + $0x258] sm:$0xff]  ;;  %v2122_v57 = vld [vmem:[%s2746_s1 + $0x250] sm:$0xff]  ;;  %v100_v0 = vsel %vm31_vm1, %v20_v37, 0.0  ;;  %v109_v1 = vadd.f32 %v108_v51, %v107_v50  ;;  %v125_v2 = vadd.f32 %v124_v53, %v123_v52  ;;  %v2113_v6 = vld [vmem:[%s2746_s1 + $0x208] sm:$0xff] }
  0x2d   :  { %1388 = vmatpush.bf16.msrb.mxu3 %v2109_v21  ;;  %v255_v21 = vpack.c.bf16 %v188_v13, %v188_v13  ;;  %v2131_v42 = vld [vmem:[%s2746_s1 + $0x298] sm:$0xff]  ;;  %v2130_v58 = vld [vmem:[%s2746_s1 + $0x290] sm:$0xff]  ;;  %v128_v3 = vadd.f32 %v127_v55, %v126_v54  ;;  %v110_v4 = vsel %vm40_vm3, %v27_v38, 0.0  ;;  %v111_v5 = vsel %vm40_vm3, %v28_v39, 0.0  ;;  %v2121_v7 = vld [vmem:[%s2746_s1 + $0x248] sm:$0xff] }
  0x2e   :  { %1350 = vmatpush.bf16.msrb.mxu0 %v2084_v22  ;;  %v258_v22 = vpack.c.bf16 %v205_v16, %v205_v16  ;;  %v2139_v43 = vld [vmem:[%s2746_s1 + $0x2d8] sm:$0xff]  ;;  %v2138_v59 = vld [vmem:[%s2746_s1 + $0x2d0] sm:$0xff]  ;;  %v225_v16 = vrot.slane %v125_v2, 3 }
  0x2f   :  { %1363 = vmatpush.bf16.msrb.mxu1 %v2092_v23  ;;  %v256_v23 = vpack.c.bf16 %v193_v17, %v193_v17  ;;  %v226_v17 = vrot.slane %v128_v3, 2  ;;  %v2147_v50 = vld [vmem:[%s2746_s1 + $0x318] sm:$0xff] }
  0x30   :  { %1376 = vmatpush.bf16.msrb.mxu2 %v2100_v24  ;;  %v2118_v24 = vld [vmem:[%s2746_s1 + $0x230] sm:$0xff]  ;;  %v2155_v51 = vld [vmem:[%s2746_s1 + $0x358] sm:$0xff] }
  0x31   :  { %1389 = vmatpush.bf16.msrb.mxu3 %v2108_v25  ;;  %v2126_v25 = vld [vmem:[%s2746_s1 + $0x270] sm:$0xff] }
  0x32   :  { %1351 = vmatpush.bf16.msrb.mxu0 %v2083_v30  ;;  %v2133_v30 = vld [vmem:[%s2746_s1 + $0x2a8] sm:$0xff] }
  0x33   :  { %1364 = vmatpush.bf16.msrb.mxu1 %v2091_v31  ;;  %v2141_v31 = vld [vmem:[%s2746_s1 + $0x2e8] sm:$0xff] }
  0x34   :  { %1377 = vmatpush.bf16.msrb.mxu2 %v2099_v32  ;;  %v2116_v32 = vld [vmem:[%s2746_s1 + $0x220] sm:$0xff] }
  0x35   :  { %1390 = vmatpush.bf16.msrb.mxu3 %v2107_v33  ;;  %v2124_v33 = vld [vmem:[%s2746_s1 + $0x260] sm:$0xff] }
  0x36   :  { %1352 = vmatpush.bf16.msrb.mxu0 %v2082_v46  ;;  %v115_v46 = vsel %vm49_vm0, %v19_v36, 0.0 }
  0x37   :  { %1365 = vmatpush.bf16.msrb.mxu1 %v2090_v47  ;;  %v116_v47 = vsel %vm49_vm0, %v20_v37, 0.0  ;;  %v2174_v37 = vld [vmem:[%s2746_s1 + $0x3f0] sm:$0xff] }
  0x38   :  { %1378 = vmatpush.bf16.msrb.mxu2 %v2098_v48  ;;  %v118_v48 = vsel %vm49_vm0, %v27_v38, 0.0  ;;  %v2149_v38 = vld [vmem:[%s2746_s1 + $0x328] sm:$0xff] }
  0x39   :  { %1391 = vmatpush.bf16.msrb.mxu3 %v2106_v49  ;;  %v119_v49 = vsel %vm49_vm0, %v28_v39, 0.0  ;;  %v2157_v39 = vld [vmem:[%s2746_s1 + $0x368] sm:$0xff] }
  0x3a   :  { %1353 = vmatpush.bf16.msrb.mxu0 %v2081_v60  ;;  %v99_v60 = vsel %vm31_vm1, %v19_v36, 0.0  ;;  %v2166_v36 = vld [vmem:[%s2746_s1 + $0x3b0] sm:$0xff] }
  0x3b   :  { %1366 = vmatpush.bf16.msrb.mxu1 %v2089_v61  ;;  %v104_v61 = vadd.f32 %v103_v45, %v102_v44  ;;  %v2164_v44 = vld [vmem:[%s2746_s1 + $0x3a0] sm:$0xff] }
  0x3c   :  { %1379 = vmatpush.bf16.msrb.mxu2 %v2097_v62  ;;  %v117_v62 = vadd.f32 %v116_v47, %v115_v46  ;;  %v2172_v45 = vld [vmem:[%s2746_s1 + $0x3e0] sm:$0xff]  ;;  %v21_v46 = vld [vmem:[%s2745_s0 + $0x18] sm:$0xf]  ;;  %v22_v47 = vld [vmem:[%s2745_s0 + $0x1c] sm:$0xf] }
  0x3d   :  { %1392 = vmatpush.bf16.msrb.mxu3 %v2105_v63  ;;  %v120_v63 = vadd.f32 %v119_v49, %v118_v48  ;;  %v29_v48 = vld [vmem:[%s2745_s0 + $0x38] sm:$0xf]  ;;  %v30_v49 = vld [vmem:[%s2745_s0 + $0x3c] sm:$0xf]  ;;  %v139_v54 = vsel %vm40_vm3, %v21_v46, 0.0  ;;  %v140_v55 = vsel %vm40_vm3, %v22_v47, 0.0 }
  0x3e   :  { %1354 = vmatpush.bf16.msrb.mxu0 %v2080_v8  ;;  %v2129_v8 = vld [vmem:[%s2746_s1 + $0x288] sm:$0xff]  ;;  %v219_v12 = vrot.slane %v117_v62, 2  ;;  %v134_v52 = vsel %vm31_vm1, %v29_v48, 0.0  ;;  %v135_v53 = vsel %vm31_vm1, %v30_v49, 0.0  ;;  %v155_v62 = vsel %vm58_vm2, %v21_v46, 0.0 }
  0x3f   :  { %1367 = vmatpush.bf16.msrb.mxu1 %v2088_v9  ;;  %v2137_v9 = vld [vmem:[%s2746_s1 + $0x2c8] sm:$0xff]  ;;  %v220_v13 = vrot.slane %v120_v63, 1  ;;  %v156_v63 = vsel %vm58_vm2, %v22_v47, 0.0  ;;  %v131_v2 = vsel %vm31_vm1, %v21_v46, 0.0  ;;  %v132_v3 = vsel %vm31_vm1, %v22_v47, 0.0 }
  0x40   :  { %1380 = vmatpush.bf16.msrb.mxu2 %v2096_v10  ;;  %v101_v10 = vadd.f32 %v100_v0, %v99_v60  ;;  %v150_v60 = vsel %vm49_vm0, %v29_v48, 0.0  ;;  %v158_v0 = vsel %vm58_vm2, %v29_v48, 0.0 }
  0x41   :  { %1393 = vmatpush.bf16.msrb.mxu3 %v2104_v11  ;;  %1355 = vmatmul.bf16.vlgmr.msrb.gmra.mxu0 %v255_v21  ;;  %v209_v11 = vrot.slane %v104_v61, 7  ;;  %v2136_v21 = vld [vmem:[%s2746_s1 + $0x2c0] sm:$0xff]  ;;  %v151_v61 = vsel %vm49_vm0, %v30_v49, 0.0 }
  0x42   :  { %1399 = vmatpush.bf16.msra.mxu0 %v2119_v14  ;;  %1368 = vmatmul.bf16.vlgmr.msrb.gmra.mxu1 %v256_v23  ;;  %v112_v14 = vadd.f32 %v111_v5, %v110_v4  ;;  %v221_v23 = vsel %vm40_vm3, %v220_v13, %v219_v12  ;;  %v2146_v4 = vld [vmem:[%s2746_s1 + $0x310] sm:$0xff]  ;;  %v143_v12 = vsel %vm40_vm3, %v30_v49, 0.0  ;;  %v152_v13 = vadd.f32 %v151_v61, %v150_v60 }
  0x43   :  { %1412 = vmatpush.bf16.msra.mxu1 %v2127_v15  ;;  %1381 = vmatmul.bf16.vlgmr.msrb.gmra.mxu2 %v257_v20  ;;  %v214_v15 = vrot.slane %v109_v1, 1  ;;  %v2128_v20 = vld [vmem:[%s2746_s1 + $0x280] sm:$0xff]  ;;  %v159_v1 = vsel %vm58_vm2, %v30_v49, 0.0  ;;  %v2154_v5 = vld [vmem:[%s2746_s1 + $0x350] sm:$0xff] }
  0x44   :  { %1425 = vmatpush.bf16.msra.mxu2 %v2135_v18  ;;  %1394 = vmatmul.bf16.vlgmr.msrb.gmra.mxu3 %v258_v22  ;;  %v2112_v18 = vld [vmem:[%s2746_s1 + $0x200] sm:$0xff]  ;;  %v210_v22 = vsel %vm40_vm3, %v209_v11, %v101_v10  ;;  %v2162_v10 = vld [vmem:[%s2746_s1 + $0x390] sm:$0xff] }
  0x45   :  { %1438 = vmatpush.bf16.msra.mxu3 %v2143_v19  ;;  %v2120_v19 = vld [vmem:[%s2746_s1 + $0x240] sm:$0xff]  ;;  %v2170_v11 = vld [vmem:[%s2746_s1 + $0x3d0] sm:$0xff] }
  0x46   :  { %1400 = vmatpush.bf16.msra.mxu0 %v2118_v24  ;;  %v2151_v24 = vld [vmem:[%s2746_s1 + $0x338] sm:$0xff] }
  0x47   :  { %1413 = vmatpush.bf16.msra.mxu1 %v2126_v25  ;;  %v2159_v25 = vld [vmem:[%s2746_s1 + $0x378] sm:$0xff] }
  0x48   :  { %1426 = vmatpush.bf16.msra.mxu2 %v2134_v26  ;;  %v215_v26 = vsel %vm40_vm3, %v112_v14, %v214_v15  ;;  %v157_v14 = vadd.f32 %v156_v63, %v155_v62  ;;  %v160_v15 = vadd.f32 %v159_v1, %v158_v0 }
  0x49   :  { %1439 = vmatpush.bf16.msra.mxu3 %v2142_v27  ;;  %v227_v27 = vsel %vm40_vm3, %v226_v17, %v225_v16  ;;  %v2145_v16 = vld [vmem:[%s2746_s1 + $0x308] sm:$0xff] }
  0x4a   :  { %1401 = vmatpush.bf16.msra.mxu0 %v2117_v28  ;;  %v2167_v28 = vld [vmem:[%s2746_s1 + $0x3b8] sm:$0xff]  ;;  %v2153_v17 = vld [vmem:[%s2746_s1 + $0x348] sm:$0xff] }
  0x4b   :  { %1414 = vmatpush.bf16.msra.mxu1 %v2125_v29  ;;  %v2175_v29 = vld [vmem:[%s2746_s1 + $0x3f8] sm:$0xff] }
  0x4c   :  { %1427 = vmatpush.bf16.msra.mxu2 %v2133_v30  ;;  %v259_v30 = vpack.c.bf16 %v210_v22, %v210_v22  ;;  %v2161_v22 = vld [vmem:[%s2746_s1 + $0x388] sm:$0xff] }
  0x4d   :  { %1440 = vmatpush.bf16.msra.mxu3 %v2141_v31  ;;  %v261_v31 = vpack.c.bf16 %v221_v23, %v221_v23  ;;  %v2169_v23 = vld [vmem:[%s2746_s1 + $0x3c8] sm:$0xff] }
  0x4e   :  { %1402 = vmatpush.bf16.msra.mxu0 %v2116_v32  ;;  %v260_v32 = vpack.c.bf16 %v215_v26, %v215_v26  ;;  %v247_v26 = vrot.slane %v157_v14, 3 }
  0x4f   :  { %1415 = vmatpush.bf16.msra.mxu1 %v2124_v33  ;;  %v262_v33 = vpack.c.bf16 %v227_v27, %v227_v27  ;;  %v248_v27 = vrot.slane %v160_v15, 2 }
  0x50   :  { %1428 = vmatpush.bf16.msra.mxu2 %v2132_v34  ;;  %v2150_v34 = vld [vmem:[%s2746_s1 + $0x330] sm:$0xff] }
  0x51   :  { %1441 = vmatpush.bf16.msra.mxu3 %v2140_v35  ;;  %v2158_v35 = vld [vmem:[%s2746_s1 + $0x370] sm:$0xff] }
  0x52   :  { %1403 = vmatpush.bf16.msra.mxu0 %v2115_v40  ;;  %v2165_v40 = vld [vmem:[%s2746_s1 + $0x3a8] sm:$0xff] }
  0x53   :  { %1416 = vmatpush.bf16.msra.mxu1 %v2123_v41  ;;  %v2173_v41 = vld [vmem:[%s2746_s1 + $0x3e8] sm:$0xff] }
  0x54   :  { %1429 = vmatpush.bf16.msra.mxu2 %v2131_v42  ;;  %v2148_v42 = vld [vmem:[%s2746_s1 + $0x320] sm:$0xff] }
  0x55   :  { %1442 = vmatpush.bf16.msra.mxu3 %v2139_v43  ;;  %v2156_v43 = vld [vmem:[%s2746_s1 + $0x360] sm:$0xff] }
  0x56   :  { %1404 = vmatpush.bf16.msra.mxu0 %v2114_v56  ;;  %v2163_v56 = vld [vmem:[%s2746_s1 + $0x398] sm:$0xff] }
  0x57   :  { %1417 = vmatpush.bf16.msra.mxu1 %v2122_v57  ;;  %v2171_v57 = vld [vmem:[%s2746_s1 + $0x3d8] sm:$0xff] }
  0x58   :  { %1430 = vmatpush.bf16.msra.mxu2 %v2130_v58  ;;  %v147_v58 = vsel %vm49_vm0, %v21_v46, 0.0 }
  0x59   :  { %1443 = vmatpush.bf16.msra.mxu3 %v2138_v59  ;;  %v148_v59 = vsel %vm49_vm0, %v22_v47, 0.0 }
  0x5a   :  { %1405 = vmatpush.bf16.msra.mxu0 %v2113_v6  ;;  %v136_v6 = vadd.f32 %v135_v53, %v134_v52 }
  0x5b   :  { %1418 = vmatpush.bf16.msra.mxu1 %v2121_v7  ;;  %v141_v7 = vadd.f32 %v140_v55, %v139_v54 }
  0x5c   :  { %1431 = vmatpush.bf16.msra.mxu2 %v2129_v8  ;;  %v142_v8 = vsel %vm40_vm3, %v29_v48, 0.0 }
  0x5d   :  { %1444 = vmatpush.bf16.msra.mxu3 %v2137_v9  ;;  %v149_v9 = vadd.f32 %v148_v59, %v147_v58 }
  0x5e   :  { %1406 = vmatpush.bf16.msra.mxu0 %v2112_v18  ;;  %v133_v18 = vadd.f32 %v132_v3, %v131_v2 }
  0x5f   :  { %1419 = vmatpush.bf16.msra.mxu1 %v2120_v19  ;;  %v231_v19 = vrot.slane %v136_v6, 7 }
  0x60   :  { %1432 = vmatpush.bf16.msra.mxu2 %v2128_v20  ;;  %v144_v20 = vadd.f32 %v143_v12, %v142_v8 }
  0x61   :  { %1445 = vmatpush.bf16.msra.mxu3 %v2136_v21  ;;  %1407 = vmatmul.bf16.vlgmr.msra.gmra.mxu0 %v259_v30  ;;  %v236_v21 = vrot.slane %v141_v7, 1  ;;  %v232_v30 = vsel %vm40_vm3, %v231_v19, %v133_v18 }
  0x62   :  { %1451 = vmatpush.bf16.msrb.mxu0 %v2151_v24  ;;  %1420 = vmatmul.bf16.vlgmr.msra.gmra.mxu1 %v260_v32  ;;  %v241_v24 = vrot.slane %v149_v9, 2  ;;  %v2160_v32 = vld [vmem:[%s2746_s1 + $0x380] sm:$0xff] }
  0x63   :  { %1464 = vmatpush.bf16.msrb.mxu1 %v2159_v25  ;;  %1433 = vmatmul.bf16.vlgmr.msra.gmra.mxu2 %v261_v31  ;;  %v242_v25 = vrot.slane %v152_v13, 1  ;;  %v237_v31 = vsel %vm40_vm3, %v144_v20, %v236_v21 }
  0x64   :  { %1477 = vmatpush.bf16.msrb.mxu2 %v2167_v28  ;;  %1446 = vmatmul.bf16.vlgmr.msra.gmra.mxu3 %v262_v33  ;;  %v2144_v28 = vld [vmem:[%s2746_s1 + $0x300] sm:$0xff] }
  0x65   :  { %1490 = vmatpush.bf16.msrb.mxu3 %v2175_v29  ;;  %v2152_v29 = vld [vmem:[%s2746_s1 + $0x340] sm:$0xff] }
  0x66   :  { %1452 = vmatpush.bf16.msrb.mxu0 %v2150_v34  ;;  %v2168_v33 = vld [vmem:[%s2746_s1 + $0x3c0] sm:$0xff]  ;;  %v243_v34 = vsel %vm40_vm3, %v242_v25, %v241_v24  ;;  %s2206_s1 = smov [#allocation2]  }
  0x67   :  { %1465 = vmatpush.bf16.msrb.mxu1 %v2158_v35  ;;  %v249_v35 = vsel %vm40_vm3, %v248_v27, %v247_v26 }
  0x68   :  { %1478 = vmatpush.bf16.msrb.mxu2 %v2166_v36  ;;  %v263_v36 = vpack.c.bf16 %v232_v30, %v232_v30 }
  0x69   :  { %1491 = vmatpush.bf16.msrb.mxu3 %v2174_v37  ;;  %v264_v37 = vpack.c.bf16 %v237_v31, %v237_v31 }
  0x6a   :  { %1453 = vmatpush.bf16.msrb.mxu0 %v2149_v38  ;;  %v265_v38 = vpack.c.bf16 %v243_v34, %v243_v34 }
  0x6b   :  { %1466 = vmatpush.bf16.msrb.mxu1 %v2157_v39  ;;  %v266_v39 = vpack.c.bf16 %v249_v35, %v249_v35 }
  0x6c   :  { %1479 = vmatpush.bf16.msrb.mxu2 %v2165_v40  ;;  %v2177_v40 = vld [vmem:[%s2747_s2] ss:$0 sm:$0xff]  ;;  %s1525_s2 = sshll.u32 %s2206_s1, 4  ;;  %s1526_s2 = int_to_ptr.vmem [resolvable:$true] %s1525_s2 }
  0x6d   :  { %1492 = vmatpush.bf16.msrb.mxu3 %v2173_v41 }
  0x6e   :  { %1454 = vmatpush.bf16.msrb.mxu0 %v2148_v42 }
  0x6f   :  { %1467 = vmatpush.bf16.msrb.mxu1 %v2156_v43 }
  0x70   :  { %1480 = vmatpush.bf16.msrb.mxu2 %v2164_v44 }
  0x71   :  { %1493 = vmatpush.bf16.msrb.mxu3 %v2172_v45 }
  0x72   :  { %1455 = vmatpush.bf16.msrb.mxu0 %v2147_v50 }
  0x73   :  { %1468 = vmatpush.bf16.msrb.mxu1 %v2155_v51 }
  0x74   :  { %1481 = vmatpush.bf16.msrb.mxu2 %v2163_v56 }
  0x75   :  { %1494 = vmatpush.bf16.msrb.mxu3 %v2171_v57 }
  0x76   :  { %1456 = vmatpush.bf16.msrb.mxu0 %v2146_v4 }
  0x77   :  { %1469 = vmatpush.bf16.msrb.mxu1 %v2154_v5 }
  0x78   :  { %1482 = vmatpush.bf16.msrb.mxu2 %v2162_v10 }
  0x79   :  { %1495 = vmatpush.bf16.msrb.mxu3 %v2170_v11 }
  0x7a   :  { %1457 = vmatpush.bf16.msrb.mxu0 %v2145_v16 }
  0x7b   :  { %1470 = vmatpush.bf16.msrb.mxu1 %v2153_v17 }
  0x7c   :  { %1483 = vmatpush.bf16.msrb.mxu2 %v2161_v22 }
  0x7d   :  { %1496 = vmatpush.bf16.msrb.mxu3 %v2169_v23 }
  0x7e   :  { %1458 = vmatpush.bf16.msrb.mxu0 %v2144_v28 }
  0x7f   :  { %1471 = vmatpush.bf16.msrb.mxu1 %v2152_v29 }
  0x80   :  { %1484 = vmatpush.bf16.msrb.mxu2 %v2160_v32 }
  0x81   :  { %1497 = vmatpush.bf16.msrb.mxu3 %v2168_v33  ;;  %1459 = vmatmul.bf16.vlgmr.msrb.gmra.mxu0 %v263_v36 }
  0x82   :  { %1472 = vmatmul.bf16.vlgmr.msrb.gmra.mxu1 %v264_v37 }
  0x83   :  { %1485 = vmatmul.bf16.vlgmr.msrb.gmra.mxu2 %v265_v38 }
  0x84   :  { %1498 = vmatmul.bf16.vlgmr.msrb.gmra.mxu3 %v266_v39 }
  0x9e   :  { %v1304_v41 = vpop.f32.mrf.mxu0 }
  0x9f   :  { %v1305_v42 = vadd.f32 %v2177_v40, %v1304_v41  ;;  %v1317_v43 = vpop.f32.mrf.mxu1 }
  0xa1   :  { %v1318_v44 = vadd.f32 %v1317_v43, %v1305_v42 }
  0xa6   :  { %v1330_v45 = vpop.f32.mrf.mxu2  ;;  %v1306_v48 = vpop.f32.mrf.mxu0 }
  0xa7   :  { %v1331_v46 = vadd.f32 %v1330_v45, %v1318_v44  ;;  %v1343_v47 = vpop.f32.mrf.mxu3  ;;  %v1319_v50 = vpop.f32.mrf.mxu1 }
  0xa9   :  { %v1344_v49 = vadd.f32 %v1343_v47, %v1331_v46 }
  0xae   :  { %v1332_v51 = vpop.f32.mrf.mxu2 }
  0xaf   :  { %v1345_v52 = vpop.f32.mrf.mxu3 }
  0xbe   :  { %v1356_v53 = vpop.f32.mrf.mxu0 }
  0xbf   :  { %v1369_v54 = vpop.f32.mrf.mxu1  ;;  %v1357_v63 = vadd.f32 %v1356_v53, %v1344_v49 }
  0xc1   :  { %v1370_v3 = vadd.f32 %v1369_v54, %v1357_v63 }
  0xc6   :  { %v1382_v55 = vpop.f32.mrf.mxu2  ;;  %v1358_v57 = vpop.f32.mrf.mxu0 }
  0xc7   :  { %v1395_v56 = vpop.f32.mrf.mxu3  ;;  %v1371_v58 = vpop.f32.mrf.mxu1  ;;  %v1383_v5 = vadd.f32 %v1382_v55, %v1370_v3 }
  0xc9   :  { %v1396_v8 = vadd.f32 %v1395_v56, %v1383_v5 }
  0xce   :  { %v1384_v59 = vpop.f32.mrf.mxu2 }
  0xcf   :  { %v1397_v60 = vpop.f32.mrf.mxu3 }
  0xde   :  { %v1408_v61 = vpop.f32.mrf.mxu0 }
  0xdf   :  { %v1421_v62 = vpop.f32.mrf.mxu1  ;;  %v1409_v9 = vadd.f32 %v1408_v61, %v1396_v8 }
  0xe1   :  { %v1422_v10 = vadd.f32 %v1421_v62, %v1409_v9 }
  0xe6   :  { %v1434_v0 = vpop.f32.mrf.mxu2  ;;  %v1410_v2 = vpop.f32.mrf.mxu0 }
  0xe7   :  { %v1447_v1 = vpop.f32.mrf.mxu3  ;;  %v1423_v4 = vpop.f32.mrf.mxu1  ;;  %v1435_v11 = vadd.f32 %v1434_v0, %v1422_v10 }
  0xe9   :  { %v1448_v12 = vadd.f32 %v1447_v1, %v1435_v11 }
  0xee   :  { %v1436_v6 = vpop.f32.mrf.mxu2 }
  0xef   :  { %v1449_v7 = vpop.f32.mrf.mxu3 }
  0xfe   :  { %v1460_v13 = vpop.f32.mrf.mxu0 }
  0xff   :  { %v1473_v14 = vpop.f32.mrf.mxu1  ;;  %v1461_v15 = vadd.f32 %v1460_v13, %v1448_v12 }
 0x101   :  { %v1474_v16 = vadd.f32 %v1473_v14, %v1461_v15 }
 0x106   :  { %v1486_v17 = vpop.f32.mrf.mxu2  ;;  %v1462_v20 = vpop.f32.mrf.mxu0 }
 0x107   :  { %v1499_v18 = vpop.f32.mrf.mxu3  ;;  %v1487_v19 = vadd.f32 %v1486_v17, %v1474_v16  ;;  %v1475_v21 = vpop.f32.mrf.mxu1 }
 0x109   :  { %v1500_v22 = vadd.f32 %v1499_v18, %v1487_v19 }
 0x10b   :  { %v1503_v23 = vmul.f32 %v1500_v22, %v1500_v22 }
 0x10d   :  { %v1505_v24 = vsel %vm1504_vm4, %v1503_v23, 0.0 }
 0x10e   :  { %v1488_v25 = vpop.f32.mrf.mxu2  ;;  %1506 = vadd.xlane.f32.xlu0 %v1505_v24 }
 0x10f   :  { %v1501_v26 = vpop.f32.mrf.mxu3 }
 0x181   :  { %v1507_v27 = vpop.xlane.xlu0 %1506 }
 0x182   :  { %2178 = vrsqrt.f32 %v1507_v27  ;;  %vm1514_vm6 = vweird.f32 %v1507_v27 }
 0x188   :  { %v2179_v28 = vpop.eup %2178 }
 0x189   :  { %v1509_v29 = vmul.f32 %v2179_v28, %v1507_v27  ;;  %vm1515_vm5 = vweird.f32 %v2179_v28 }
 0x18a   :  { %vm1516_vm7 = vmor %vm1514_vm6, %vm1515_vm5 }
 0x18b   :  { %v1510_v30 = vmul.f32 %v2179_v28, %v1509_v29 }
 0x18d   :  { %v1511_v31 = vmul.f32 0.5, %v1510_v30 }
 0x18f   :  { %v1512_v32 = vsub.f32 1.5, %v1511_v31 }
 0x191   :  { %v1513_v33 = vmul.f32 %v2179_v28, %v1512_v32 }
 0x193   :  { %v1517_v34 = vsel %vm1516_vm7, %v2179_v28, %v1513_v33 }
 0x194   :  { %v1518_v35 = vmul.f32 %v1517_v34, %v1500_v22 }
 0x196   :  { %1519 = vst [vmem:[#allocation2] sm:$0x3] %v1518_v35 }
 0x197   :  { %1530 = dma.vmem_to_hbm [thread:$0]  %s1526_s2, 32, %s1528_s5, [#allocation3]  }
 0x198   :  { %2204 = dma.done.wait [#allocation3], 32  }
 0x199   :  { %2205 = vsyncadd [#allocation3], 4294967264 }
 0x19a   :  { %1535 = vsyncpa [#allocation3], 1 }

// kernel: resfpn_forward.7
= control target key start
LH: loop header
LB: loop body
LE: loop exit
PB: predicated region body
PF: predicated region fallthrough
CT: control target
= control target key end

     0   :  { %vm76_vm0 = vcmask 1041409   ;;  %vm43_vm1 = vcmask 1040384   ;;  %s1531_s0 = inlined_call_operand.vmem [shape: f32[2,4,2,256], index: 0, kind: input, shape index: {}]   ;;  %s1532_s1 = inlined_call_operand.vmem [shape: bf16[1024,128], index: 1, kind: input, shape index: {}]   ;;  %s1533_s2 = inlined_call_operand.vmem [shape: f32[1,128], index: 2, kind: input, shape index: {}]   ;;  %s1534_s3 = inlined_call_operand.hbm [shape: f32[2,128], index: 3, kind: output, shape index: {}]  }
   0x1   :  { %v1125_v0 = vld [vmem:[%s1532_s1 + $0x38] sm:$0xff]  ;;  %v1124_v4 = vld [vmem:[%s1532_s1 + $0x30] sm:$0xff]  ;;  %v1123_v8 = vld [vmem:[%s1532_s1 + $0x28] sm:$0xff] }
   0x2   :  { %v1133_v1 = vld [vmem:[%s1532_s1 + $0x78] sm:$0xff]  ;;  %725 = vmatpush.bf16.msra.mxu0 %v1125_v0  ;;  %v1132_v5 = vld [vmem:[%s1532_s1 + $0x70] sm:$0xff]  ;;  %v1131_v9 = vld [vmem:[%s1532_s1 + $0x68] sm:$0xff] }
   0x3   :  { %v1141_v2 = vld [vmem:[%s1532_s1 + $0xb8] sm:$0xff]  ;;  %738 = vmatpush.bf16.msra.mxu1 %v1133_v1  ;;  %v1140_v6 = vld [vmem:[%s1532_s1 + $0xb0] sm:$0xff]  ;;  %v1139_v10 = vld [vmem:[%s1532_s1 + $0xa8] sm:$0xff] }
   0x4   :  { %v1149_v3 = vld [vmem:[%s1532_s1 + $0xf8] sm:$0xff]  ;;  %751 = vmatpush.bf16.msra.mxu2 %v1141_v2  ;;  %v1148_v7 = vld [vmem:[%s1532_s1 + $0xf0] sm:$0xff]  ;;  %v1147_v11 = vld [vmem:[%s1532_s1 + $0xe8] sm:$0xff] }
   0x5   :  { %764 = vmatpush.bf16.msra.mxu3 %v1149_v3  ;;  %v1122_v12 = vld [vmem:[%s1532_s1 + $0x20] sm:$0xff]  ;;  %v1121_v16 = vld [vmem:[%s1532_s1 + $0x18] sm:$0xff]  ;;  %v1300_v20 = vld [vmem:[%s1531_s0 + $0x10] sm:$0xf] }
   0x6   :  { %726 = vmatpush.bf16.msra.mxu0 %v1124_v4  ;;  %v1130_v13 = vld [vmem:[%s1532_s1 + $0x60] sm:$0xff]  ;;  %v1129_v17 = vld [vmem:[%s1532_s1 + $0x58] sm:$0xff]  ;;  %v1305_v21 = vld [vmem:[%s1531_s0 + $0x14] sm:$0xf]  ;;  %v64_v26 = vperm.slane %v1300_v20, 1  ;;  %v31_v32 = vperm.slane %v1300_v20, 0 }
   0x7   :  { %739 = vmatpush.bf16.msra.mxu1 %v1132_v5  ;;  %v1138_v14 = vld [vmem:[%s1532_s1 + $0xa0] sm:$0xff]  ;;  %v1137_v24 = vld [vmem:[%s1532_s1 + $0x98] sm:$0xff]  ;;  %v66_v27 = vperm.slane %v1305_v21, 1  ;;  %v33_v36 = vperm.slane %v1305_v21, 0  ;;  %v1120_v37 = vld [vmem:[%s1532_s1 + $0x10] sm:$0xff]  ;;  %v65_v49 = vperm.slane %v1300_v20, 3 }
   0x8   :  { %752 = vmatpush.bf16.msra.mxu2 %v1140_v6  ;;  %v1146_v15 = vld [vmem:[%s1532_s1 + $0xe0] sm:$0xff]  ;;  %v1145_v25 = vld [vmem:[%s1532_s1 + $0xd8] sm:$0xff]  ;;  %v83_v34 = vsel %vm76_vm0, %v64_v26, 0.0  ;;  %v1128_v38 = vld [vmem:[%s1532_s1 + $0x50] sm:$0xff]  ;;  %v50_v40 = vsel %vm43_vm1, %v31_v32, 0.0  ;;  %v67_v50 = vperm.slane %v1305_v21, 3 }
   0x9   :  { %765 = vmatpush.bf16.msra.mxu3 %v1148_v7  ;;  %v1290_v18 = vld [vmem:[%s1531_s0] sm:$0xf]  ;;  %v1295_v19 = vld [vmem:[%s1531_s0 + $0x4] sm:$0xf]  ;;  %v84_v35 = vsel %vm76_vm0, %v66_v27, 0.0  ;;  %v1136_v41 = vld [vmem:[%s1532_s1 + $0x90] sm:$0xff] }
   0xa   :  { %727 = vmatpush.bf16.msra.mxu0 %v1123_v8  ;;  %v60_v22 = vperm.slane %v1290_v18, 1  ;;  %v62_v23 = vperm.slane %v1295_v19, 1  ;;  %v27_v28 = vperm.slane %v1290_v18, 0  ;;  %v29_v31 = vperm.slane %v1295_v19, 0  ;;  %v1144_v42 = vld [vmem:[%s1532_s1 + $0xd0] sm:$0xff]  ;;  %v1119_v55 = vld [vmem:[%s1532_s1 + $0x8] sm:$0xff] }
   0xb   :  { %740 = vmatpush.bf16.msra.mxu1 %v1131_v9  ;;  %v85_v39 = vadd.f32 %v84_v35, %v83_v34  ;;  %v51_v45 = vsel %vm43_vm1, %v33_v36, 0.0  ;;  %v61_v46 = vperm.slane %v1290_v18, 3  ;;  %v63_v48 = vperm.slane %v1295_v19, 3  ;;  %v1127_v56 = vld [vmem:[%s1532_s1 + $0x48] sm:$0xff]  ;;  %v1118_v8 = vld [vmem:[%s1532_s1] sm:$0xff] }
   0xc   :  { %753 = vmatpush.bf16.msra.mxu2 %v1139_v10  ;;  %v77_v29 = vsel %vm76_vm0, %v60_v22, 0.0  ;;  %v78_v30 = vsel %vm76_vm0, %v62_v23, 0.0  ;;  %v44_v43 = vsel %vm43_vm1, %v27_v28, 0.0  ;;  %v45_v44 = vsel %vm43_vm1, %v29_v31, 0.0  ;;  %v1135_v61 = vld [vmem:[%s1532_s1 + $0x88] sm:$0xff]  ;;  %v1126_v9 = vld [vmem:[%s1532_s1 + $0x40] sm:$0xff] }
   0xd   :  { %766 = vmatpush.bf16.msra.mxu3 %v1147_v11  ;;  %v79_v33 = vadd.f32 %v78_v30, %v77_v29  ;;  %v52_v47 = vadd.f32 %v51_v45, %v50_v40  ;;  %v80_v52 = vsel %vm76_vm0, %v61_v46, 0.0  ;;  %v28_v53 = vperm.slane %v1290_v18, 2  ;;  %v1143_v62 = vld [vmem:[%s1532_s1 + $0xc8] sm:$0xff] }
   0xe   :  { %728 = vmatpush.bf16.msra.mxu0 %v1122_v12  ;;  %v30_v54 = vperm.slane %v1295_v19, 2  ;;  %v46_v57 = vadd.f32 %v45_v44, %v44_v43  ;;  %v81_v59 = vsel %vm76_vm0, %v63_v48, 0.0  ;;  %v86_v60 = vsel %vm76_vm0, %v65_v49, 0.0 }
   0xf   :  { %741 = vmatpush.bf16.msra.mxu1 %v1130_v13  ;;  %v175_v51 = vrot.slane %v79_v33, 1  ;;  %v165_v58 = vrot.slane %v52_v47, 7  ;;  %v82_v63 = vadd.f32 %v81_v59, %v80_v52  ;;  %v87_v0 = vsel %vm76_vm0, %v67_v50, 0.0 }
  0x10   :  { %754 = vmatpush.bf16.msra.mxu2 %v1138_v14  ;;  %v32_v1 = vperm.slane %v1300_v20, 2  ;;  %v34_v2 = vperm.slane %v1305_v21, 2  ;;  %v88_v3 = vadd.f32 %v87_v0, %v86_v60  ;;  %v47_v4 = vsel %vm43_vm1, %v28_v53, 0.0 }
  0x11   :  { %767 = vmatpush.bf16.msra.mxu3 %v1146_v15  ;;  %v48_v5 = vsel %vm43_vm1, %v30_v54, 0.0  ;;  %v177_v6 = vrot.slane %v82_v63, 1  ;;  %v176_v10 = vsel %vm76_vm0, %v85_v39, %v175_v51 }
  0x12   :  { %729 = vmatpush.bf16.msra.mxu0 %v1121_v16  ;;  %v53_v7 = vsel %vm43_vm1, %v32_v1, 0.0  ;;  %v54_v11 = vsel %vm43_vm1, %v34_v2, 0.0 }
  0x13   :  { %742 = vmatpush.bf16.msra.mxu1 %v1129_v17 }
  0x14   :  { %755 = vmatpush.bf16.msra.mxu2 %v1137_v24 }
  0x15   :  { %768 = vmatpush.bf16.msra.mxu3 %v1145_v25 }
  0x16   :  { %730 = vmatpush.bf16.msra.mxu0 %v1120_v37 }
  0x17   :  { %743 = vmatpush.bf16.msra.mxu1 %v1128_v38 }
  0x18   :  { %756 = vmatpush.bf16.msra.mxu2 %v1136_v41 }
  0x19   :  { %769 = vmatpush.bf16.msra.mxu3 %v1144_v42 }
  0x1a   :  { %731 = vmatpush.bf16.msra.mxu0 %v1119_v55 }
  0x1b   :  { %744 = vmatpush.bf16.msra.mxu1 %v1127_v56 }
  0x1c   :  { %8 = vsyncpa [#allocation3], 0  ;;  %757 = vmatpush.bf16.msra.mxu2 %v1135_v61  ;;  %v1134_v12 = vld [vmem:[%s1532_s1 + $0x80] sm:$0xff]  ;;  %v166_v14 = vsel %vm76_vm0, %v165_v58, %v46_v57  ;;  %v49_v15 = vadd.f32 %v48_v5, %v47_v4  ;;  %v55_v16 = vadd.f32 %v54_v11, %v53_v7  ;;  %v1157_v17 = vld [vmem:[%s1532_s1 + $0x138] sm:$0xff]  ;;  %v178_v19 = vsel %vm76_vm0, %v88_v3, %v177_v6  ;;  %s853_s23 = sshll.u32 %s1534_s3, 4  ;;  %s854_s23 = int_to_ptr.hbm [resolvable:$true] %s853_s23 }
  0x1d   :  { %770 = vmatpush.bf16.msra.mxu3 %v1143_v62  ;;  %v1142_v13 = vld [vmem:[%s1532_s1 + $0xc0] sm:$0xff]  ;;  %v1165_v18 = vld [vmem:[%s1532_s1 + $0x178] sm:$0xff]  ;;  %v203_v23 = vpack.c.bf16 %v176_v10, %v176_v10  ;;  %v201_v24 = vpack.c.bf16 %v166_v14, %v166_v14  ;;  %v204_v25 = vpack.c.bf16 %v178_v19, %v178_v19  ;;  %v1156_v27 = vld [vmem:[%s1532_s1 + $0x130] sm:$0xff]  ;;  %vm830_vm2 = vcmask 1041408  }
  0x1e   :  { %v1173_v20 = vld [vmem:[%s1532_s1 + $0x1b8] sm:$0xff]  ;;  %v167_v22 = vrot.slane %v55_v16, 7  ;;  %732 = vmatpush.bf16.msra.mxu0 %v1118_v8  ;;  %v1164_v28 = vld [vmem:[%s1532_s1 + $0x170] sm:$0xff]  ;;  %v1155_v32 = vld [vmem:[%s1532_s1 + $0x128] sm:$0xff] }
  0x1f   :  { %v1181_v21 = vld [vmem:[%s1532_s1 + $0x1f8] sm:$0xff]  ;;  %745 = vmatpush.bf16.msra.mxu1 %v1126_v9  ;;  %v1172_v30 = vld [vmem:[%s1532_s1 + $0x1b0] sm:$0xff]  ;;  %v1163_v33 = vld [vmem:[%s1532_s1 + $0x168] sm:$0xff] }
  0x20   :  { %758 = vmatpush.bf16.msra.mxu2 %v1134_v12  ;;  %v168_v26 = vsel %vm76_vm0, %v167_v22, %v49_v15  ;;  %v1180_v31 = vld [vmem:[%s1532_s1 + $0x1f0] sm:$0xff]  ;;  %v1418_v34 = vld [vmem:[%s1531_s0 + $0x18] sm:$0xf]  ;;  %v1171_v35 = vld [vmem:[%s1532_s1 + $0x1a8] sm:$0xff] }
  0x21   :  { %771 = vmatpush.bf16.msra.mxu3 %v1142_v13  ;;  %v202_v29 = vpack.c.bf16 %v168_v26, %v168_v26  ;;  %733 = vmatmul.bf16.vlgmr.msra.gmra.mxu0 %v201_v24  ;;  %v1179_v36 = vld [vmem:[%s1532_s1 + $0x1e8] sm:$0xff]  ;;  %v1429_v37 = vld [vmem:[%s1531_s0 + $0x1c] sm:$0xf]  ;;  %v101_v40 = vperm.slane %v1418_v34, 0  ;;  %v1154_v41 = vld [vmem:[%s1532_s1 + $0x120] sm:$0xff]  ;;  %v102_v44 = vperm.slane %v1418_v34, 2 }
  0x22   :  { %777 = vmatpush.bf16.msrb.mxu0 %v1157_v17  ;;  %v17_v38 = vld [vmem:[%s1531_s0 + $0x8] sm:$0xf]  ;;  %v18_v39 = vld [vmem:[%s1531_s0 + $0xc] sm:$0xf]  ;;  %v1162_v42 = vld [vmem:[%s1532_s1 + $0x160] sm:$0xff]  ;;  %v103_v43 = vperm.slane %v1429_v37, 0 }
  0x23   :  { %790 = vmatpush.bf16.msrb.mxu1 %v1165_v18  ;;  %759 = vmatmul.bf16.vlgmr.msra.gmra.mxu2 %v203_v23  ;;  %v104_v45 = vperm.slane %v1429_v37, 2  ;;  %v1170_v46 = vld [vmem:[%s1532_s1 + $0x1a0] sm:$0xff]  ;;  %v129_v48 = vperm.slane %v17_v38, 1  ;;  %v131_v49 = vperm.slane %v18_v39, 1  ;;  %v130_v50 = vperm.slane %v17_v38, 3  ;;  %v1153_v56 = vld [vmem:[%s1532_s1 + $0x118] sm:$0xff] }
  0x24   :  { %803 = vmatpush.bf16.msrb.mxu2 %v1173_v20  ;;  %772 = vmatmul.bf16.vlgmr.msra.gmra.mxu3 %v204_v25  ;;  %v1178_v47 = vld [vmem:[%s1532_s1 + $0x1e0] sm:$0xff]  ;;  %v132_v51 = vperm.slane %v18_v39, 3  ;;  %v97_v52 = vperm.slane %v17_v38, 0  ;;  %v99_v53 = vperm.slane %v18_v39, 0  ;;  %v119_v54 = vsel %vm43_vm1, %v101_v40, 0.0  ;;  %v1161_v57 = vld [vmem:[%s1532_s1 + $0x158] sm:$0xff] }
  0x25   :  { %816 = vmatpush.bf16.msrb.mxu3 %v1181_v21  ;;  %746 = vmatmul.bf16.vlgmr.msra.gmra.mxu1 %v202_v29  ;;  %v98_v55 = vperm.slane %v17_v38, 2  ;;  %v120_v58 = vsel %vm43_vm1, %v103_v43, 0.0  ;;  %v100_v59 = vperm.slane %v18_v39, 2  ;;  %v122_v60 = vsel %vm43_vm1, %v102_v44, 0.0  ;;  %v1169_v62 = vld [vmem:[%s1532_s1 + $0x198] sm:$0xff]  ;;  %v1152_v8 = vld [vmem:[%s1532_s1 + $0x110] sm:$0xff] }
  0x26   :  { %778 = vmatpush.bf16.msrb.mxu0 %v1156_v27  ;;  %v123_v61 = vsel %vm43_vm1, %v104_v45, 0.0  ;;  %v1177_v63 = vld [vmem:[%s1532_s1 + $0x1d8] sm:$0xff]  ;;  %v133_v0 = vperm.slane %v1418_v34, 1  ;;  %v135_v1 = vperm.slane %v1429_v37, 1  ;;  %v145_v2 = vsel %vm76_vm0, %v129_v48, 0.0  ;;  %v1160_v9 = vld [vmem:[%s1532_s1 + $0x150] sm:$0xff] }
  0x27   :  { %791 = vmatpush.bf16.msrb.mxu1 %v1164_v28  ;;  %v146_v3 = vsel %vm76_vm0, %v131_v49, 0.0  ;;  %v134_v4 = vperm.slane %v1418_v34, 3  ;;  %v136_v5 = vperm.slane %v1429_v37, 3  ;;  %v148_v6 = vsel %vm76_vm0, %v130_v50, 0.0  ;;  %v1168_v14 = vld [vmem:[%s1532_s1 + $0x190] sm:$0xff]  ;;  %v1151_v24 = vld [vmem:[%s1532_s1 + $0x108] sm:$0xff] }
  0x28   :  { %804 = vmatpush.bf16.msrb.mxu2 %v1172_v30  ;;  %v149_v7 = vsel %vm76_vm0, %v132_v51, 0.0  ;;  %v113_v10 = vsel %vm43_vm1, %v97_v52, 0.0  ;;  %v114_v11 = vsel %vm43_vm1, %v99_v53, 0.0  ;;  %v121_v12 = vadd.f32 %v120_v58, %v119_v54  ;;  %v1176_v15 = vld [vmem:[%s1532_s1 + $0x1d0] sm:$0xff]  ;;  %v1159_v25 = vld [vmem:[%s1532_s1 + $0x148] sm:$0xff]  ;;  %v1158_v37 = vld [vmem:[%s1532_s1 + $0x140] sm:$0xff] }
  0x29   :  { %817 = vmatpush.bf16.msrb.mxu3 %v1180_v31  ;;  %v124_v13 = vadd.f32 %v123_v61, %v122_v60  ;;  %v116_v16 = vsel %vm43_vm1, %v98_v55, 0.0  ;;  %v117_v17 = vsel %vm43_vm1, %v100_v59, 0.0  ;;  %v147_v18 = vadd.f32 %v146_v3, %v145_v2  ;;  %v1167_v30 = vld [vmem:[%s1532_s1 + $0x188] sm:$0xff]  ;;  %v1166_v40 = vld [vmem:[%s1532_s1 + $0x180] sm:$0xff] }
  0x2a   :  { %779 = vmatpush.bf16.msrb.mxu0 %v1155_v32  ;;  %v150_v19 = vadd.f32 %v149_v7, %v148_v6  ;;  %v151_v20 = vsel %vm76_vm0, %v133_v0, 0.0  ;;  %v152_v21 = vsel %vm76_vm0, %v135_v1, 0.0  ;;  %v154_v22 = vsel %vm76_vm0, %v134_v4, 0.0  ;;  %v1175_v31 = vld [vmem:[%s1532_s1 + $0x1c8] sm:$0xff]  ;;  %v1183_v54 = vld [vmem:[%s1533_s2] ss:$0 sm:$0xff] }
  0x2b   :  { %792 = vmatpush.bf16.msrb.mxu1 %v1163_v33  ;;  %v155_v23 = vsel %vm76_vm0, %v136_v5, 0.0  ;;  %v115_v26 = vadd.f32 %v114_v11, %v113_v10  ;;  %v185_v27 = vrot.slane %v121_v12, 7  ;;  %v118_v28 = vadd.f32 %v117_v17, %v116_v16  ;;  %s1212_s2 = smov [#allocation2]  }
  0x2c   :  { %805 = vmatpush.bf16.msrb.mxu2 %v1171_v35  ;;  %v187_v29 = vrot.slane %v124_v13, 7  ;;  %v153_v32 = vadd.f32 %v152_v21, %v151_v20  ;;  %v195_v33 = vrot.slane %v147_v18, 1  ;;  %v156_v34 = vadd.f32 %v155_v23, %v154_v22  ;;  %s851_s20 = sshll.u32 %s1212_s2, 4  ;;  %s852_s20 = int_to_ptr.vmem [resolvable:$true] %s851_s20 }
  0x2d   :  { %818 = vmatpush.bf16.msrb.mxu3 %v1179_v36  ;;  %v197_v35 = vrot.slane %v150_v19, 1  ;;  %v1150_v36 = vld [vmem:[%s1532_s1 + $0x100] sm:$0xff]  ;;  %v186_v38 = vsel %vm76_vm0, %v185_v27, %v115_v26 }
  0x2e   :  { %780 = vmatpush.bf16.msrb.mxu0 %v1154_v41  ;;  %v188_v39 = vsel %vm76_vm0, %v187_v29, %v118_v28  ;;  %v1174_v41 = vld [vmem:[%s1532_s1 + $0x1c0] sm:$0xff]  ;;  %v205_v44 = vpack.c.bf16 %v186_v38, %v186_v38 }
  0x2f   :  { %793 = vmatpush.bf16.msrb.mxu1 %v1162_v42  ;;  %v196_v42 = vsel %vm76_vm0, %v153_v32, %v195_v33  ;;  %v198_v43 = vsel %vm76_vm0, %v156_v34, %v197_v35  ;;  %v206_v45 = vpack.c.bf16 %v188_v39, %v188_v39 }
  0x30   :  { %806 = vmatpush.bf16.msrb.mxu2 %v1170_v46  ;;  %v207_v46 = vpack.c.bf16 %v196_v42, %v196_v42 }
  0x31   :  { %819 = vmatpush.bf16.msrb.mxu3 %v1178_v47  ;;  %v208_v47 = vpack.c.bf16 %v198_v43, %v198_v43 }
  0x32   :  { %781 = vmatpush.bf16.msrb.mxu0 %v1153_v56 }
  0x33   :  { %794 = vmatpush.bf16.msrb.mxu1 %v1161_v57 }
  0x34   :  { %807 = vmatpush.bf16.msrb.mxu2 %v1169_v62 }
  0x35   :  { %820 = vmatpush.bf16.msrb.mxu3 %v1177_v63 }
  0x36   :  { %782 = vmatpush.bf16.msrb.mxu0 %v1152_v8 }
  0x37   :  { %795 = vmatpush.bf16.msrb.mxu1 %v1160_v9 }
  0x38   :  { %808 = vmatpush.bf16.msrb.mxu2 %v1168_v14 }
  0x39   :  { %821 = vmatpush.bf16.msrb.mxu3 %v1176_v15 }
  0x3a   :  { %783 = vmatpush.bf16.msrb.mxu0 %v1151_v24 }
  0x3b   :  { %796 = vmatpush.bf16.msrb.mxu1 %v1159_v25 }
  0x3c   :  { %809 = vmatpush.bf16.msrb.mxu2 %v1167_v30 }
  0x3d   :  { %822 = vmatpush.bf16.msrb.mxu3 %v1175_v31 }
  0x3e   :  { %784 = vmatpush.bf16.msrb.mxu0 %v1150_v36 }
  0x3f   :  { %797 = vmatpush.bf16.msrb.mxu1 %v1158_v37 }
  0x40   :  { %810 = vmatpush.bf16.msrb.mxu2 %v1166_v40 }
  0x41   :  { %823 = vmatpush.bf16.msrb.mxu3 %v1174_v41  ;;  %785 = vmatmul.bf16.vlgmr.msrb.gmra.mxu0 %v205_v44 }
  0x42   :  { %798 = vmatmul.bf16.vlgmr.msrb.gmra.mxu1 %v206_v45 }
  0x43   :  { %811 = vmatmul.bf16.vlgmr.msrb.gmra.mxu2 %v207_v46 }
  0x44   :  { %824 = vmatmul.bf16.vlgmr.msrb.gmra.mxu3 %v208_v47 }
  0x9e   :  { %v734_v48 = vpop.f32.mrf.mxu0 }
  0x9f   :  { %v735_v57 = vadd.f32 %v1183_v54, %v734_v48 }
  0xa2   :  { %v747_v49 = vpop.f32.mrf.mxu1 }
  0xa3   :  { %v748_v58 = vadd.f32 %v747_v49, %v735_v57 }
  0xa6   :  { %v760_v50 = vpop.f32.mrf.mxu2  ;;  %v736_v52 = vpop.f32.mrf.mxu0 }
  0xa7   :  { %v773_v51 = vpop.f32.mrf.mxu3  ;;  %v761_v59 = vadd.f32 %v760_v50, %v748_v58 }
  0xa9   :  { %v774_v60 = vadd.f32 %v773_v51, %v761_v59 }
  0xaa   :  { %v749_v53 = vpop.f32.mrf.mxu1 }
  0xae   :  { %v762_v55 = vpop.f32.mrf.mxu2 }
  0xaf   :  { %v775_v56 = vpop.f32.mrf.mxu3 }
  0xbe   :  { %v786_v61 = vpop.f32.mrf.mxu0 }
  0xbf   :  { %v799_v62 = vpop.f32.mrf.mxu1  ;;  %v787_v63 = vadd.f32 %v786_v61, %v774_v60 }
  0xc1   :  { %v800_v0 = vadd.f32 %v799_v62, %v787_v63 }
  0xc6   :  { %v812_v1 = vpop.f32.mrf.mxu2  ;;  %v788_v4 = vpop.f32.mrf.mxu0 }
  0xc7   :  { %v825_v2 = vpop.f32.mrf.mxu3  ;;  %v813_v3 = vadd.f32 %v812_v1, %v800_v0  ;;  %v801_v5 = vpop.f32.mrf.mxu1 }
  0xc9   :  { %v826_v6 = vadd.f32 %v825_v2, %v813_v3 }
  0xcb   :  { %v829_v7 = vmul.f32 %v826_v6, %v826_v6 }
  0xcd   :  { %v831_v8 = vsel %vm830_vm2, %v829_v7, 0.0 }
  0xce   :  { %v814_v9 = vpop.f32.mrf.mxu2  ;;  %832 = vadd.xlane.f32.xlu0 %v831_v8 }
  0xcf   :  { %v827_v10 = vpop.f32.mrf.mxu3 }
 0x141   :  { %v833_v11 = vpop.xlane.xlu0 %832 }
 0x142   :  { %1184 = vrsqrt.f32 %v833_v11  ;;  %vm840_vm4 = vweird.f32 %v833_v11 }
 0x148   :  { %v1185_v12 = vpop.eup %1184 }
 0x149   :  { %v835_v13 = vmul.f32 %v1185_v12, %v833_v11  ;;  %vm841_vm3 = vweird.f32 %v1185_v12 }
 0x14a   :  { %vm842_vm5 = vmor %vm840_vm4, %vm841_vm3 }
 0x14b   :  { %v836_v14 = vmul.f32 %v1185_v12, %v835_v13 }
 0x14d   :  { %v837_v15 = vmul.f32 0.5, %v836_v14 }
 0x14f   :  { %v838_v16 = vsub.f32 1.5, %v837_v15 }
 0x151   :  { %v839_v17 = vmul.f32 %v1185_v12, %v838_v16 }
 0x153   :  { %v843_v18 = vsel %vm842_vm5, %v1185_v12, %v839_v17 }
 0x154   :  { %v844_v19 = vmul.f32 %v843_v18, %v826_v6 }
 0x156   :  { %845 = vst [vmem:[#allocation2] sm:$0x3] %v844_v19 }
 0x157   :  { %856 = dma.vmem_to_hbm [thread:$0]  %s852_s20, 32, %s854_s23, [#allocation3]  }
 0x158   :  { %1210 = dma.done.wait [#allocation3], 32  }
 0x159   :  { %1211 = vsyncadd [#allocation3], 4294967264 }
 0x15a   :  { %861 = vsyncpa [#allocation3], 1 }

// kernel: resfpn_forward.5
= control target key start
LH: loop header
LB: loop body
LE: loop exit
PB: predicated region body
PF: predicated region fallthrough
CT: control target
= control target key end

     0   :  { %s1030_s0 = inlined_call_operand.vmem [shape: f32[2,4,4,512], index: 0, kind: input, shape index: {}]   ;;  %s1031_s1 = inlined_call_operand.vmem [shape: bf16[512,128], index: 1, kind: input, shape index: {}]   ;;  %s1032_s2 = inlined_call_operand.vmem [shape: f32[1,128], index: 2, kind: input, shape index: {}]   ;;  %s1033_s3 = inlined_call_operand.hbm [shape: f32[2,128], index: 3, kind: output, shape index: {}]  }
   0x1   :  { %v760_v0 = vld [vmem:[%s1031_s1 + $0x38] sm:$0xff]  ;;  %v759_v4 = vld [vmem:[%s1031_s1 + $0x30] sm:$0xff]  ;;  %v758_v8 = vld [vmem:[%s1031_s1 + $0x28] sm:$0xff] }
   0x2   :  { %v768_v1 = vld [vmem:[%s1031_s1 + $0x78] sm:$0xff]  ;;  %540 = vmatpush.bf16.msra.mxu0 %v760_v0  ;;  %v767_v5 = vld [vmem:[%s1031_s1 + $0x70] sm:$0xff]  ;;  %v766_v9 = vld [vmem:[%s1031_s1 + $0x68] sm:$0xff] }
   0x3   :  { %v776_v2 = vld [vmem:[%s1031_s1 + $0xb8] sm:$0xff]  ;;  %553 = vmatpush.bf16.msra.mxu1 %v768_v1  ;;  %v775_v6 = vld [vmem:[%s1031_s1 + $0xb0] sm:$0xff]  ;;  %v774_v10 = vld [vmem:[%s1031_s1 + $0xa8] sm:$0xff] }
   0x4   :  { %v784_v3 = vld [vmem:[%s1031_s1 + $0xf8] sm:$0xff]  ;;  %566 = vmatpush.bf16.msra.mxu2 %v776_v2  ;;  %v783_v7 = vld [vmem:[%s1031_s1 + $0xf0] sm:$0xff]  ;;  %v782_v11 = vld [vmem:[%s1031_s1 + $0xe8] sm:$0xff] }
   0x5   :  { %579 = vmatpush.bf16.msra.mxu3 %v784_v3  ;;  %v757_v12 = vld [vmem:[%s1031_s1 + $0x20] sm:$0xff]  ;;  %v17_v17 = vld [vmem:[%s1030_s0 + $0x10] sm:$0xff]  ;;  %v16_v18 = vld [vmem:[%s1030_s0 + $0x8] sm:$0xff] }
   0x6   :  { %541 = vmatpush.bf16.msra.mxu0 %v759_v4  ;;  %v765_v13 = vld [vmem:[%s1031_s1 + $0x60] sm:$0xff]  ;;  %55 = vst [vmem:[#allocation1 + $0x20] ss:$2 sm:$0xff] %v17_v17  ;;  %v18_v19 = vld [vmem:[%s1030_s0 + $0x18] sm:$0xff]  ;;  %v755_v24 = vld [vmem:[%s1031_s1 + $0x10] sm:$0xff] }
   0x7   :  { %554 = vmatpush.bf16.msra.mxu1 %v767_v5  ;;  %v15_v14 = vld [vmem:[%s1030_s0] sm:$0xff]  ;;  %v756_v20 = vld [vmem:[%s1031_s1 + $0x18] sm:$0xff]  ;;  %49 = vst [vmem:[#allocation1 + $0x10] ss:$2 sm:$0xff] %v16_v18  ;;  %v763_v25 = vld [vmem:[%s1031_s1 + $0x50] sm:$0xff] }
   0x8   :  { %567 = vmatpush.bf16.msra.mxu2 %v775_v6  ;;  %v773_v15 = vld [vmem:[%s1031_s1 + $0xa0] sm:$0xff]  ;;  %47 = vst [vmem:[#allocation1] ss:$2 sm:$0xff] %v15_v14  ;;  %v764_v21 = vld [vmem:[%s1031_s1 + $0x58] sm:$0xff] }
   0x9   :  { %580 = vmatpush.bf16.msra.mxu3 %v783_v7  ;;  %v781_v16 = vld [vmem:[%s1031_s1 + $0xe0] sm:$0xff]  ;;  %v772_v22 = vld [vmem:[%s1031_s1 + $0x98] sm:$0xff]  ;;  %57 = vst [vmem:[#allocation1 + $0x30] ss:$2 sm:$0xff] %v18_v19 }
   0xa   :  { %542 = vmatpush.bf16.msra.mxu0 %v758_v8  ;;  %v780_v23 = vld [vmem:[%s1031_s1 + $0xd8] sm:$0xff] }
   0xb   :  { %555 = vmatpush.bf16.msra.mxu1 %v766_v9 }
   0xc   :  { %568 = vmatpush.bf16.msra.mxu2 %v774_v10 }
   0xd   :  { %581 = vmatpush.bf16.msra.mxu3 %v782_v11 }
   0xe   :  { %543 = vmatpush.bf16.msra.mxu0 %v757_v12 }
   0xf   :  { %556 = vmatpush.bf16.msra.mxu1 %v765_v13 }
  0x10   :  { %569 = vmatpush.bf16.msra.mxu2 %v773_v15 }
  0x11   :  { %582 = vmatpush.bf16.msra.mxu3 %v781_v16 }
  0x12   :  { %8 = vsyncpa [#allocation3], 0  ;;  %v771_v26 = vld [vmem:[%s1031_s1 + $0x90] sm:$0xff]  ;;  %v19_v28 = vld [vmem:[%s1030_s0 + $0x20] sm:$0xff]  ;;  %vm130_vm0 = vcmask 1043456   ;;  %544 = vmatpush.bf16.msra.mxu0 %v756_v20  ;;  %vm335_vm1 = vcmask 1041409  }
  0x13   :  { %v779_v27 = vld [vmem:[%s1031_s1 + $0xd0] sm:$0xff]  ;;  %557 = vmatpush.bf16.msra.mxu1 %v764_v21  ;;  %v50_v30 = vld.sshfl [vmem:[#allocation1] sm:$0xff pattern:$0x75316420]  ;;  %v20_v32 = vld [vmem:[%s1030_s0 + $0x28] sm:$0xff]  ;;  %vm593_vm2 = vcmask 1041408  }
  0x14   :  { %v21_v29 = vld [vmem:[%s1030_s0 + $0x30] sm:$0xff]  ;;  %v51_v31 = vld.sshfl [vmem:[#allocation1 + $0x8] sm:$0xff pattern:$0x75316420]  ;;  %570 = vmatpush.bf16.msra.mxu2 %v772_v22  ;;  %v131_v37 = vsel %vm130_vm0, %v50_v30, 0.0  ;;  %v22_v40 = vld [vmem:[%s1030_s0 + $0x38] sm:$0xff] }
  0x15   :  { %583 = vmatpush.bf16.msra.mxu3 %v780_v23  ;;  %v58_v33 = vld.sshfl [vmem:[#allocation1 + $0x20] sm:$0xff pattern:$0x75316420]  ;;  %v59_v34 = vld.sshfl [vmem:[#allocation1 + $0x28] sm:$0xff pattern:$0x75316420] }
  0x16   :  { %v754_v35 = vld [vmem:[%s1031_s1 + $0x8] sm:$0xff]  ;;  %62 = vst [vmem:[#allocation1] ss:$2 sm:$0xff] %v19_v28  ;;  %v132_v38 = vsel %vm130_vm0, %v58_v33, 0.0  ;;  %v138_v39 = vsel %vm130_vm0, %v51_v31, 0.0  ;;  %v139_v42 = vsel %vm130_vm0, %v59_v34, 0.0  ;;  %545 = vmatpush.bf16.msra.mxu0 %v755_v24 }
  0x17   :  { %v762_v36 = vld [vmem:[%s1031_s1 + $0x48] sm:$0xff]  ;;  %68 = vst [vmem:[#allocation1 + $0x20] ss:$2 sm:$0xff] %v21_v29  ;;  %v52_v43 = vld.sshfl [vmem:[#allocation1 + $0x10] sm:$0xff pattern:$0x75316420]  ;;  %558 = vmatpush.bf16.msra.mxu1 %v763_v25  ;;  %v133_v52 = vadd.f32 %v132_v38, %v131_v37  ;;  %v140_v53 = vadd.f32 %v139_v42, %v138_v39 }
  0x18   :  { %v770_v41 = vld [vmem:[%s1031_s1 + $0x88] sm:$0xff]  ;;  %v53_v44 = vld.sshfl [vmem:[#allocation1 + $0x18] sm:$0xff pattern:$0x75316420]  ;;  %571 = vmatpush.bf16.msra.mxu2 %v771_v26  ;;  %v753_v48 = vld [vmem:[%s1031_s1] sm:$0xff]  ;;  %v145_v56 = vsel %vm130_vm0, %v52_v43, 0.0 }
  0x19   :  { %v60_v45 = vld.sshfl [vmem:[#allocation1 + $0x30] sm:$0xff pattern:$0x75316420]  ;;  %584 = vmatpush.bf16.msra.mxu3 %v779_v27  ;;  %v778_v46 = vld [vmem:[%s1031_s1 + $0xc8] sm:$0xff]  ;;  %63 = vst [vmem:[#allocation1 + $0x10] ss:$2 sm:$0xff] %v20_v32 }
  0x1a   :  { %v61_v47 = vld.sshfl [vmem:[#allocation1 + $0x38] sm:$0xff pattern:$0x75316420]  ;;  %v761_v49 = vld [vmem:[%s1031_s1 + $0x40] sm:$0xff]  ;;  %546 = vmatpush.bf16.msra.mxu0 %v754_v35  ;;  %v25_v55 = vld [vmem:[%s1030_s0 + $0x50] sm:$0xff]  ;;  %v146_v57 = vsel %vm130_vm0, %v60_v45, 0.0 }
  0x1b   :  { %69 = vst [vmem:[#allocation1 + $0x30] ss:$2 sm:$0xff] %v22_v40  ;;  %v769_v50 = vld [vmem:[%s1031_s1 + $0x80] sm:$0xff]  ;;  %559 = vmatpush.bf16.msra.mxu1 %v762_v36  ;;  %v152_v58 = vsel %vm130_vm0, %v53_v44, 0.0  ;;  %v153_v59 = vsel %vm130_vm0, %v61_v47, 0.0  ;;  %v24_v62 = vld [vmem:[%s1030_s0 + $0x48] sm:$0xff]  ;;  %v147_v9 = vadd.f32 %v146_v57, %v145_v56 }
  0x1c   :  { %v777_v51 = vld [vmem:[%s1031_s1 + $0xc0] sm:$0xff]  ;;  %572 = vmatpush.bf16.msra.mxu2 %v770_v41  ;;  %v26_v7 = vld [vmem:[%s1030_s0 + $0x58] sm:$0xff]  ;;  %v154_v16 = vadd.f32 %v153_v59, %v152_v58  ;;  %v29_v22 = vld [vmem:[%s1030_s0 + $0x70] sm:$0xff]  ;;  %s616_s30 = sshll.u32 %s1033_s3, 4  ;;  %s617_s30 = int_to_ptr.hbm [resolvable:$true] %s616_s30 }
  0x1d   :  { %v23_v54 = vld [vmem:[%s1030_s0 + $0x40] sm:$0xff]  ;;  %585 = vmatpush.bf16.msra.mxu3 %v778_v46  ;;  %v65_v61 = vld.sshfl [vmem:[#allocation1 + $0x8] sm:$0xff pattern:$0x75316420]  ;;  %v30_v36 = vld [vmem:[%s1030_s0 + $0x78] sm:$0xff] }
  0x1e   :  { %v64_v60 = vld.sshfl [vmem:[#allocation1] sm:$0xff pattern:$0x75316420]  ;;  %v71_v0 = vld.sshfl [vmem:[#allocation1 + $0x28] sm:$0xff pattern:$0x75316420]  ;;  %547 = vmatpush.bf16.msra.mxu0 %v753_v48 }
  0x1f   :  { %v70_v63 = vld.sshfl [vmem:[#allocation1 + $0x20] sm:$0xff pattern:$0x75316420]  ;;  %74 = vst [vmem:[#allocation1] ss:$2 sm:$0xff] %v23_v54  ;;  %v134_v1 = vsel %vm130_vm0, %v64_v60, 0.0  ;;  %560 = vmatpush.bf16.msra.mxu1 %v761_v49 }
  0x20   :  { %v136_v2 = vsel %vm130_vm0, %v70_v63, 0.0  ;;  %v141_v3 = vsel %vm130_vm0, %v65_v61, 0.0  ;;  %v143_v4 = vsel %vm130_vm0, %v71_v0, 0.0  ;;  %80 = vst [vmem:[#allocation1 + $0x20] ss:$2 sm:$0xff] %v25_v55  ;;  %v135_v5 = vadd.f32 %v134_v1, %v133_v52  ;;  %573 = vmatpush.bf16.msra.mxu2 %v769_v50  ;;  %v27_v21 = vld [vmem:[%s1030_s0 + $0x60] sm:$0xff] }
  0x21   :  { %v142_v6 = vadd.f32 %v141_v3, %v140_v53  ;;  %v66_v8 = vld.sshfl [vmem:[#allocation1 + $0x10] sm:$0xff pattern:$0x75316420]  ;;  %586 = vmatpush.bf16.msra.mxu3 %v777_v51  ;;  %v67_v10 = vld.sshfl [vmem:[#allocation1 + $0x18] sm:$0xff pattern:$0x75316420] }
  0x22   :  { %v72_v11 = vld.sshfl [vmem:[#allocation1 + $0x30] sm:$0xff pattern:$0x75316420]  ;;  %v137_v12 = vadd.f32 %v136_v2, %v135_v5  ;;  %v73_v14 = vld.sshfl [vmem:[#allocation1 + $0x38] sm:$0xff pattern:$0x75316420] }
  0x23   :  { %v144_v13 = vadd.f32 %v143_v4, %v142_v6  ;;  %75 = vst [vmem:[#allocation1 + $0x10] ss:$2 sm:$0xff] %v24_v62  ;;  %v148_v15 = vsel %vm130_vm0, %v66_v8, 0.0  ;;  %v155_v17 = vsel %vm130_vm0, %v67_v10, 0.0  ;;  %v150_v25 = vsel %vm130_vm0, %v72_v11, 0.0  ;;  %v28_v35 = vld [vmem:[%s1030_s0 + $0x68] sm:$0xff] }
  0x24   :  { %81 = vst [vmem:[#allocation1 + $0x30] ss:$2 sm:$0xff] %v26_v7  ;;  %v187_v18 = vsel %vm130_vm0, %v137_v12, 0.0  ;;  %v149_v20 = vadd.f32 %v148_v15, %v147_v9  ;;  %v157_v26 = vsel %vm130_vm0, %v73_v14, 0.0  ;;  %v156_v29 = vadd.f32 %v155_v17, %v154_v16 }
  0x25   :  { %v194_v19 = vsel %vm130_vm0, %v144_v13, 0.0  ;;  %v188_v23 = vrot.slane %v187_v18, 4 }
  0x26   :  { %v195_v24 = vrot.slane %v194_v19, 4  ;;  %v76_v27 = vld.sshfl [vmem:[#allocation1] sm:$0xff pattern:$0x75316420]  ;;  %v151_v37 = vadd.f32 %v150_v25, %v149_v20  ;;  %v158_v44 = vadd.f32 %v157_v26, %v156_v29 }
  0x27   :  { %v77_v28 = vld.sshfl [vmem:[#allocation1 + $0x8] sm:$0xff pattern:$0x75316420]  ;;  %v82_v30 = vld.sshfl [vmem:[#allocation1 + $0x20] sm:$0xff pattern:$0x75316420]  ;;  %v189_v32 = vadd.f32 %v188_v23, %v187_v18 }
  0x28   :  { %v83_v31 = vld.sshfl [vmem:[#allocation1 + $0x28] sm:$0xff pattern:$0x75316420]  ;;  %86 = vst [vmem:[#allocation1] ss:$2 sm:$0xff] %v27_v21  ;;  %v159_v33 = vsel %vm130_vm0, %v76_v27, 0.0  ;;  %v196_v34 = vadd.f32 %v195_v24, %v194_v19 }
  0x29   :  { %92 = vst [vmem:[#allocation1 + $0x20] ss:$2 sm:$0xff] %v29_v22  ;;  %v160_v38 = vsel %vm130_vm0, %v82_v30, 0.0  ;;  %v190_v39 = vrot.slane %v189_v32, 2  ;;  %v166_v40 = vsel %vm130_vm0, %v77_v28, 0.0  ;;  %v167_v41 = vsel %vm130_vm0, %v83_v31, 0.0 }
  0x2a   :  { %v78_v42 = vld.sshfl [vmem:[#allocation1 + $0x10] sm:$0xff pattern:$0x75316420]  ;;  %v79_v43 = vld.sshfl [vmem:[#allocation1 + $0x18] sm:$0xff pattern:$0x75316420]  ;;  %v161_v47 = vadd.f32 %v160_v38, %v159_v33  ;;  %v168_v51 = vadd.f32 %v167_v41, %v166_v40 }
  0x2b   :  { %v84_v45 = vld.sshfl [vmem:[#allocation1 + $0x30] sm:$0xff pattern:$0x75316420]  ;;  %v85_v46 = vld.sshfl [vmem:[#allocation1 + $0x38] sm:$0xff pattern:$0x75316420]  ;;  %v191_v50 = vadd.f32 %v190_v39, %v189_v32 }
  0x2c   :  { %v197_v48 = vrot.slane %v196_v34, 2  ;;  %87 = vst [vmem:[#allocation1 + $0x10] ss:$2 sm:$0xff] %v28_v35  ;;  %v201_v49 = vsel %vm130_vm0, %v151_v37, 0.0  ;;  %v173_v52 = vsel %vm130_vm0, %v78_v42, 0.0  ;;  %v174_v54 = vsel %vm130_vm0, %v84_v45, 0.0 }
  0x2d   :  { %93 = vst [vmem:[#allocation1 + $0x30] ss:$2 sm:$0xff] %v30_v36  ;;  %v202_v53 = vrot.slane %v201_v49, 4  ;;  %v180_v55 = vsel %vm130_vm0, %v79_v43, 0.0  ;;  %v181_v56 = vsel %vm130_vm0, %v85_v46, 0.0  ;;  %v208_v57 = vsel %vm130_vm0, %v158_v44, 0.0 }
  0x2e   :  { %v198_v0 = vadd.f32 %v197_v48, %v196_v34  ;;  %v209_v1 = vrot.slane %v208_v57, 4  ;;  %v175_v6 = vadd.f32 %v174_v54, %v173_v52  ;;  %v192_v7 = vrot.slane %v191_v50, 1 }
  0x2f   :  { %v88_v58 = vld.sshfl [vmem:[#allocation1] sm:$0xff pattern:$0x75316420]  ;;  %v89_v59 = vld.sshfl [vmem:[#allocation1 + $0x8] sm:$0xff pattern:$0x75316420]  ;;  %v203_v60 = vadd.f32 %v202_v53, %v201_v49  ;;  %v182_v10 = vadd.f32 %v181_v56, %v180_v55 }
  0x30   :  { %v94_v61 = vld.sshfl [vmem:[#allocation1 + $0x20] sm:$0xff pattern:$0x75316420]  ;;  %v162_v62 = vsel %vm130_vm0, %v88_v58, 0.0  ;;  %v169_v63 = vsel %vm130_vm0, %v89_v59, 0.0  ;;  %v210_v15 = vadd.f32 %v209_v1, %v208_v57  ;;  %v199_v16 = vrot.slane %v198_v0, 1 }
  0x31   :  { %v163_v2 = vadd.f32 %v162_v62, %v161_v47  ;;  %v164_v3 = vsel %vm130_vm0, %v94_v61, 0.0  ;;  %v95_v4 = vld.sshfl [vmem:[#allocation1 + $0x28] sm:$0xff pattern:$0x75316420]  ;;  %v170_v5 = vadd.f32 %v169_v63, %v168_v51  ;;  %v204_v9 = vrot.slane %v203_v60, 2 }
  0x32   :  { %v171_v8 = vsel %vm130_vm0, %v95_v4, 0.0  ;;  %v211_v31 = vrot.slane %v210_v15, 2  ;;  %v193_v35 = vadd.f32 %v192_v7, %v191_v50  ;;  %v200_v36 = vadd.f32 %v199_v16, %v198_v0 }
  0x33   :  { %v165_v11 = vadd.f32 %v164_v3, %v163_v2  ;;  %v172_v12 = vadd.f32 %v171_v8, %v170_v5  ;;  %v90_v13 = vld.sshfl [vmem:[#allocation1 + $0x10] sm:$0xff pattern:$0x75316420]  ;;  %v91_v14 = vld.sshfl [vmem:[#allocation1 + $0x18] sm:$0xff pattern:$0x75316420]  ;;  %v205_v27 = vadd.f32 %v204_v9, %v203_v60 }
  0x34   :  { %v96_v17 = vld.sshfl [vmem:[#allocation1 + $0x30] sm:$0xff pattern:$0x75316420]  ;;  %v176_v18 = vsel %vm130_vm0, %v90_v13, 0.0  ;;  %v183_v19 = vsel %vm130_vm0, %v91_v14, 0.0  ;;  %v212_v38 = vadd.f32 %v211_v31, %v210_v15  ;;  %v243_v47 = vpack.c.bf16 %v193_v35, %v193_v35 }
  0x35   :  { %v215_v20 = vsel %vm130_vm0, %v165_v11, 0.0  ;;  %v222_v21 = vsel %vm130_vm0, %v172_v12, 0.0  ;;  %v177_v22 = vadd.f32 %v176_v18, %v175_v6  ;;  %v178_v23 = vsel %vm130_vm0, %v96_v17, 0.0  ;;  %v97_v24 = vld.sshfl [vmem:[#allocation1 + $0x38] sm:$0xff pattern:$0x75316420] }
  0x36   :  { %v216_v25 = vrot.slane %v215_v20, 4  ;;  %v223_v26 = vrot.slane %v222_v21, 4  ;;  %v184_v28 = vadd.f32 %v183_v19, %v182_v10  ;;  %v185_v30 = vsel %vm130_vm0, %v97_v24, 0.0  ;;  %v786_v24 = vld [vmem:[%s1032_s2] ss:$0 sm:$0xff]  ;;  %s815_s2 = smov [#allocation2]  }
  0x37   :  { %v179_v29 = vadd.f32 %v178_v23, %v177_v22  ;;  %v206_v41 = vrot.slane %v205_v27, 1  ;;  %v244_v48 = vpack.c.bf16 %v200_v36, %v200_v36  ;;  %v213_v49 = vrot.slane %v212_v38, 1  ;;  %s614_s27 = sshll.u32 %s815_s2, 4  ;;  %s615_s27 = int_to_ptr.vmem [resolvable:$true] %s614_s27 }
  0x38   :  { %v217_v32 = vadd.f32 %v216_v25, %v215_v20  ;;  %v224_v33 = vadd.f32 %v223_v26, %v222_v21  ;;  %v186_v34 = vadd.f32 %v185_v30, %v184_v28  ;;  %v327_v59 = vunpack.c.l.b16 %v243_v47 }
  0x39   :  { %v229_v37 = vsel %vm130_vm0, %v179_v29, 0.0  ;;  %v207_v50 = vadd.f32 %v206_v41, %v205_v27  ;;  %v328_v60 = vunpack.c.l.b16 %v244_v48  ;;  %v214_v61 = vadd.f32 %v213_v49, %v212_v38 }
  0x3a   :  { %v218_v39 = vrot.slane %v217_v32, 2  ;;  %v225_v40 = vrot.slane %v224_v33, 2  ;;  %v230_v42 = vrot.slane %v229_v37, 4  ;;  %v236_v43 = vsel %vm130_vm0, %v186_v34, 0.0 }
  0x3b   :  { %v237_v51 = vrot.slane %v236_v43, 4  ;;  %v245_v2 = vpack.c.bf16 %v207_v50, %v207_v50  ;;  %v246_v8 = vpack.c.bf16 %v214_v61, %v214_v61 }
  0x3c   :  { %v219_v44 = vadd.f32 %v218_v39, %v217_v32  ;;  %v226_v45 = vadd.f32 %v225_v40, %v224_v33  ;;  %v231_v46 = vadd.f32 %v230_v42, %v229_v37 }
  0x3d   :  { %v238_v55 = vadd.f32 %v237_v51, %v236_v43  ;;  %v329_v12 = vunpack.c.l.b16 %v245_v2  ;;  %v330_v18 = vunpack.c.l.b16 %v246_v8 }
  0x3e   :  { %v220_v52 = vrot.slane %v219_v44, 1  ;;  %v227_v53 = vrot.slane %v226_v45, 1  ;;  %v232_v54 = vrot.slane %v231_v46, 2 }
  0x3f   :  { %v239_v62 = vrot.slane %v238_v55, 2 }
  0x40   :  { %v221_v56 = vadd.f32 %v220_v52, %v219_v44  ;;  %v228_v57 = vadd.f32 %v227_v53, %v226_v45  ;;  %v233_v58 = vadd.f32 %v232_v54, %v231_v46 }
  0x41   :  { %v240_v3 = vadd.f32 %v239_v62, %v238_v55 }
  0x42   :  { %v247_v63 = vpack.c.bf16 %v221_v56, %v221_v56  ;;  %v248_v0 = vpack.c.bf16 %v228_v57, %v228_v57  ;;  %v234_v1 = vrot.slane %v233_v58, 1 }
  0x43   :  { %v241_v7 = vrot.slane %v240_v3, 1 }
  0x44   :  { %v331_v4 = vunpack.c.l.b16 %v247_v63  ;;  %v332_v5 = vunpack.c.l.b16 %v248_v0  ;;  %v235_v6 = vadd.f32 %v234_v1, %v233_v58 }
  0x45   :  { %v242_v15 = vadd.f32 %v241_v7, %v240_v3 }
  0x46   :  { %v336_v9 = vsel %vm335_vm1, %v331_v4, %v327_v59  ;;  %v337_v10 = vsel %vm335_vm1, %v332_v5, %v328_v60  ;;  %v249_v11 = vpack.c.bf16 %v235_v6, %v235_v6 }
  0x47   :  { %v340_v13 = vpack.c.b16 %v336_v9, %v336_v9  ;;  %v341_v14 = vpack.c.b16 %v337_v10, %v337_v10  ;;  %v250_v17 = vpack.c.bf16 %v242_v15, %v242_v15 }
  0x48   :  { %v333_v16 = vunpack.c.l.b16 %v249_v11 }
  0x49   :  { %548 = vmatmul.bf16.vlgmr.msra.gmra.mxu0 %v340_v13  ;;  %561 = vmatmul.bf16.vlgmr.msra.gmra.mxu1 %v341_v14  ;;  %v334_v21 = vunpack.c.l.b16 %v250_v17 }
  0x4a   :  { %v338_v19 = vsel %vm335_vm1, %v333_v16, %v329_v12 }
  0x4b   :  { %v342_v20 = vpack.c.b16 %v338_v19, %v338_v19  ;;  %v339_v22 = vsel %vm335_vm1, %v334_v21, %v330_v18 }
  0x4c   :  { %v343_v23 = vpack.c.b16 %v339_v22, %v339_v22 }
  0x4d   :  { %574 = vmatmul.bf16.vlgmr.msra.gmra.mxu2 %v342_v20 }
  0x4e   :  { %587 = vmatmul.bf16.vlgmr.msra.gmra.mxu3 %v343_v23 }
  0xc6   :  { %v549_v25 = vpop.f32.mrf.mxu0  ;;  %v562_v26 = vpop.f32.mrf.mxu1 }
  0xc7   :  { %v550_v27 = vadd.f32 %v786_v24, %v549_v25 }
  0xc9   :  { %v563_v28 = vadd.f32 %v562_v26, %v550_v27 }
  0xce   :  { %v551_v29 = vpop.f32.mrf.mxu0  ;;  %v564_v30 = vpop.f32.mrf.mxu1 }
  0xd0   :  { %v575_v31 = vpop.f32.mrf.mxu2 }
  0xd1   :  { %v576_v32 = vadd.f32 %v575_v31, %v563_v28  ;;  %v588_v33 = vpop.f32.mrf.mxu3 }
  0xd3   :  { %v589_v34 = vadd.f32 %v588_v33, %v576_v32 }
  0xd5   :  { %v592_v35 = vmul.f32 %v589_v34, %v589_v34 }
  0xd7   :  { %v594_v37 = vsel %vm593_vm2, %v592_v35, 0.0 }
  0xd8   :  { %v577_v36 = vpop.f32.mrf.mxu2  ;;  %595 = vadd.xlane.f32.xlu0 %v594_v37 }
  0xd9   :  { %v590_v38 = vpop.f32.mrf.mxu3 }
 0x14b   :  { %v596_v39 = vpop.xlane.xlu0 %595 }
 0x14c   :  { %787 = vrsqrt.f32 %v596_v39  ;;  %vm603_vm4 = vweird.f32 %v596_v39 }
 0x152   :  { %v788_v40 = vpop.eup %787 }
 0x153   :  { %v598_v41 = vmul.f32 %v788_v40, %v596_v39  ;;  %vm604_vm3 = vweird.f32 %v788_v40 }
 0x154   :  { %vm605_vm5 = vmor %vm603_vm4, %vm604_vm3 }
 0x155   :  { %v599_v42 = vmul.f32 %v788_v40, %v598_v41 }
 0x157   :  { %v600_v43 = vmul.f32 0.5, %v599_v42 }
 0x159   :  { %v601_v44 = vsub.f32 1.5, %v600_v43 }
 0x15b   :  { %v602_v45 = vmul.f32 %v788_v40, %v601_v44 }
 0x15d   :  { %v606_v46 = vsel %vm605_vm5, %v788_v40, %v602_v45 }
 0x15e   :  { %v607_v47 = vmul.f32 %v606_v46, %v589_v34 }
 0x160   :  { %608 = vst [vmem:[#allocation2] sm:$0x3] %v607_v47 }
 0x161   :  { %619 = dma.vmem_to_hbm [thread:$0]  %s615_s27, 32, %s617_s30, [#allocation3]  }
 0x162   :  { %813 = dma.done.wait [#allocation3], 32  }
 0x163   :  { %814 = vsyncadd [#allocation3], 4294967264 }
 0x164   :  { %624 = vsyncpa [#allocation3], 1 }

</bundles_post_ra>
